<compile_context>
chip_gen: v5e
topology: v5e:2x2
jax: 0.10.0
libtpu: 0.0.40
codegen_flags: <defaults>
</compile_context>

<pallas_src>
import functools

import jax
import jax.numpy as jnp
from jax.experimental import pallas as pl
from jax.experimental.pallas import tpu as pltpu


def _round_up(x, n):
    return ((x + n - 1) // n) * n


# ---------------------------------------------------------------------------
# Kernel
# ---------------------------------------------------------------------------
def _ffn_kernel(x_ref, w13_ref, w2_ref, o_ref, *scratch, n_sub):
    """One grid step: (tile_m x D) bf16 token tile x one hidden tile.

    x_ref   : (TM, D)    bf16 activation tile (resident across hidden axis)
    w13_ref : (D, 2*TH)  bf16 fused [w1^T tile | w3^T tile]
    w2_ref  : (TH, D)    bf16 w2^T tile
    o_ref   : (TM, D)    output tile (resident across the hidden axis)
    scratch : optional (TM, D) f32 accumulator (only when o_ref is not f32)

    The hidden tile is processed in `n_sub` column sub-chunks so the VPU/EUP
    gate math of one chunk overlaps the MXU work of the neighbouring chunks
    and the down-projection accumulate starts earlier (hides the
    matmul1 -> matmul2 bubble).
    """
    acc_ref = scratch[0] if scratch else o_ref
    h = pl.program_id(1)
    th = w2_ref.shape[0]
    sc = th // n_sub

    @pl.when(h == 0)
    def _():
        acc_ref[...] = jnp.zeros_like(acc_ref)

    x = x_ref[...]  # already bf16 (cast once in the wrapper, not per grid step)
    for k in range(n_sub):  # static unroll -> one basic block, LLO overlaps
        lo, hi = k * sc, (k + 1) * sc
        h1 = jnp.dot(x, w13_ref[:, lo:hi], preferred_element_type=jnp.float32)
        h3 = jnp.dot(x, w13_ref[:, th + lo:th + hi],
                     preferred_element_type=jnp.float32)
        gated = (h1 * jax.nn.sigmoid(h1)) * h3          # silu(h1) * h3, in f32
        acc_ref[...] += jnp.dot(gated.astype(jnp.bfloat16),
                                w2_ref[lo:hi, :],
                                preferred_element_type=jnp.float32)

    if scratch:
        @pl.when(h == pl.num_programs(1) - 1)
        def _():
            o_ref[...] = acc_ref[...].astype(o_ref.dtype)


# ---------------------------------------------------------------------------
# Weight preparation (layout is coupled to tile_hidden; it is returned)
# ---------------------------------------------------------------------------
def prepare_weights(w1, w2, w3, *, tile_hidden=512):
    """nn.Linear weights ([out, in]) -> transposed, bf16, tile-fused w1/w3.

    Pads the hidden dim to a multiple of tile_hidden (zero pad -> zero
    contribution), so production dims like H=11008 are accepted.

    Returns (w13, w2_t, tile_hidden_used) with
      w13 : [D, 2*H_pad] bf16; column block h (width 2*tile_hidden) is
            [w1^T hidden-tile h | w3^T hidden-tile h]
      w2_t: [H_pad, D] bf16
    The returned tile size MUST be passed to feed_forward (the fused layout
    is only correct for that tile size).
    """
    hdim, d = w1.shape
    assert d % 128 == 0, "model dim must be a multiple of 128"
    assert tile_hidden % 128 == 0, "tile_hidden must be a multiple of 128"
    th = min(tile_hidden, _round_up(hdim, 128))
    hdim_pad = _round_up(hdim, th)
    w1 = jnp.asarray(w1)
    w2 = jnp.asarray(w2)
    w3 = jnp.asarray(w3)
    if hdim_pad != hdim:
        pad = hdim_pad - hdim
        w1 = jnp.pad(w1, ((0, pad), (0, 0)))
        w3 = jnp.pad(w3, ((0, pad), (0, 0)))
        w2 = jnp.pad(w2, ((0, 0), (0, pad)))
    nh = hdim_pad // th
    w1_t = w1.astype(jnp.bfloat16).T.reshape(d, nh, th)
    w3_t = w3.astype(jnp.bfloat16).T.reshape(d, nh, th)
    w13 = jnp.concatenate([w1_t, w3_t], axis=2).reshape(d, 2 * hdim_pad)
    w2_t = w2.astype(jnp.bfloat16).T  # [H_pad, D]
    return w13, w2_t, th


# ---------------------------------------------------------------------------
# Per-generation configuration
# ---------------------------------------------------------------------------
def _tpu_generation():
    try:
        kind = jax.devices()[0].device_kind.lower()
    except Exception:
        return None
    for g in ("v7", "v6", "v5"):
        if g in kind:
            return g
    return None


def _default_tiling(gen):
    """(tile_m, vmem_cap_bytes) per TPU generation.

    Breakeven FLOP/byte (weights are re-streamed once per M tile, so intensity
    ~= tile_m): ~650 on v6e, ~310 on v7x, ~240 on v5e.  VMEM: 128 MiB physical
    on v5e/v6e (use ~100 MiB), only 64 MiB per TC on v7x (use ~56 MiB).
    """
    if gen == "v6":
        return 1024, 100 * 1024 * 1024
    if gen == "v5":
        return 384, 100 * 1024 * 1024
    # v7x and unknown: conservative (fits 64 MiB VMEM per TensorCore).
    return 512, 56 * 1024 * 1024


# ---------------------------------------------------------------------------
# pallas_call wrapper
# ---------------------------------------------------------------------------
@functools.partial(jax.jit,
                   static_argnames=("tile_m", "tile_hidden", "n_sub", "vmem_cap"))
def _feed_forward_impl(x2d, w13, w2_t, *, tile_m, tile_hidden, n_sub, vmem_cap):
    m, d = x2d.shape
    hdim = w2_t.shape[0]
    th = tile_hidden
    # Layout sanity (tile_hidden must be the value returned by prepare_weights).
    assert w13.shape == (d, 2 * hdim), "w13 / w2_t layouts are inconsistent"
    assert hdim % th == 0, "hidden dim (padded) must be divisible by tile_hidden"
    assert th % 128 == 0 and d % 128 == 0
    assert th % n_sub == 0 and (th // n_sub) % 128 == 0
    assert tile_m % 8 == 0

    # Pad tokens to a full tile; padded rows are zero -> zero outputs, sliced off.
    m_pad = pl.cdiv(m, tile_m) * tile_m
    if m_pad != m:
        x2d = jnp.pad(x2d, ((0, m_pad - m), (0, 0)))

    out_dtype = jnp.float32            # accumulate directly into the output block
    use_scratch = out_dtype != jnp.float32
    grid = (m_pad // tile_m, hdim // th)

    # VMEM budget: double-buffered tiles + in-kernel f32 intermediates.
    bytes_per = (
        2 * tile_m * d * 2                                  # bf16 x tiles
        + 2 * tile_m * d * jnp.dtype(out_dtype).itemsize    # out tiles
        + 2 * d * (2 * th) * 2                              # fused w1/w3 (bf16)
        + 2 * th * d * 2                                    # w2 tile (bf16)
        + tile_m * (th // n_sub) * 16                       # h1/h3/gated temporaries
        + (tile_m * d * 4 if use_scratch else 0)            # f32 acc scratch
    )
    vmem_limit = int(min(max(int(bytes_per * 1.25), 32 * 1024 * 1024), vmem_cap))

    cost = pl.CostEstimate(
        flops=6 * m_pad * d * hdim,
        transcendentals=m_pad * hdim,
        bytes_accessed=(
            m_pad * d * 2                                    # bf16 x
            + m_pad * d * jnp.dtype(out_dtype).itemsize      # output
            + grid[0] * (d * 2 * hdim * 2 + hdim * d * 2)    # weights per M tile
        ),
    )

    out = pl.pallas_call(
        functools.partial(_ffn_kernel, n_sub=n_sub),
        out_shape=jax.ShapeDtypeStruct((m_pad, d), out_dtype),
        grid_spec=pltpu.PrefetchScalarGridSpec(
            num_scalar_prefetch=0,
            grid=grid,
            in_specs=[
                pl.BlockSpec((tile_m, d), lambda i, h: (i, 0)),   # x (resident over h)
                pl.BlockSpec((d, 2 * th), lambda i, h: (0, h)),   # fused w1/w3 tile
                pl.BlockSpec((th, d), lambda i, h: (h, 0)),       # w2 tile
            ],
            out_specs=pl.BlockSpec((tile_m, d), lambda i, h: (i, 0)),
            scratch_shapes=(
                [pltpu.VMEM((tile_m, d), jnp.float32)] if use_scratch else []
            ),
        ),
        compiler_params=pltpu.CompilerParams(
            # token axis shardable across TensorCores; hidden axis = reduction.
            dimension_semantics=("parallel", "arbitrary"),
            vmem_limit_bytes=vmem_limit,
        ),
        cost_estimate=cost,
    )(x2d, w13, w2_t)
    return out[:m]


def feed_forward(x2d, w13, w2_t, *, tile_hidden, tile_m=None):
    """x2d: [M, D]; (w13, w2_t, tile_hidden) from prepare_weights -> [M, D] f32."""
    gen = _tpu_generation()
    cfg_tile_m, vmem_cap = _default_tiling(gen)
    if tile_m is None:
        tile_m = cfg_tile_m
    m = x2d.shape[0]
    # Clamp for tiny M (decode): avoid inflated x/out DMA and accumulator RMW.
    tile_m = min(tile_m, _round_up(max(m, 8), 128))
    # TODO(synk): for single-M-tile decode on v7x, split the hidden reduction
    # across the two TensorCores (two partial f32 outputs + cheap XLA add) so
    # the second core is not idle in the weight-bandwidth-bound regime.
    n_sub = 2 if (tile_hidden % 256 == 0) else 1  # hide matmul1->matmul2 bubble
    return _feed_forward_impl(
        x2d.astype(jnp.bfloat16),            # cast once here, not per grid step
        w13, w2_t,
        tile_m=int(tile_m), tile_hidden=int(tile_hidden),
        n_sub=int(n_sub), vmem_cap=int(vmem_cap),
    )


# ---------------------------------------------------------------------------
# Demo / correctness check (small ModelArgs-consistent shapes)
# ---------------------------------------------------------------------------
if __name__ == "__main__":
    # Scaled-down ModelArgs: dim=256, hidden_dim=512, batch=2, seq=8 -> M=16.
    dim, hidden_dim = 256, 512
    batch, seq = 2, 8
    m = batch * seq
    tile_hidden = 512

    key = jax.random.PRNGKey(0)
    kx, k1, k2, k3 = jax.random.split(key, 4)

    # x in [batch, seq, dim], flattened to [M, dim] for the kernel.
    x = jax.random.normal(kx, (batch, seq, dim), dtype=jnp.float32)
    x2d = x.reshape(m, dim)

    # nn.Linear weights are [out_features, in_features].
    s1 = 1.0 / (dim ** 0.5)
    s2 = 1.0 / (hidden_dim ** 0.5)
    w1 = jax.random.normal(k1, (hidden_dim, dim), dtype=jnp.float32) * s1
    w2 = jax.random.normal(k2, (dim, hidden_dim), dtype=jnp.float32) * s2
    w3 = jax.random.normal(k3, (hidden_dim, dim), dtype=jnp.float32) * s1

    w13, w2_t, th_used = prepare_weights(w1, w2, w3, tile_hidden=tile_hidden)

    out2d = feed_forward(x2d, w13, w2_t, tile_hidden=th_used)
    out = out2d.reshape(batch, seq, dim)
    jax.block_until_ready(out)

    # Reference with the same bf16-weight / f32-accumulation numerics.
    xb = x2d.astype(jnp.bfloat16)
    h1 = jnp.dot(xb, jnp.asarray(w1, jnp.bfloat16).T,
                 preferred_element_type=jnp.float32)
    h3 = jnp.dot(xb, jnp.asarray(w3, jnp.bfloat16).T,
                 preferred_element_type=jnp.float32)
    g = (jax.nn.silu(h1) * h3).astype(jnp.bfloat16)
    ref = jnp.dot(g, jnp.asarray(w2, jnp.bfloat16).T,
                  preferred_element_type=jnp.float32).reshape(batch, seq, dim)

    if not jnp.allclose(out, ref, atol=2e-2, rtol=2e-2):
        err = jnp.max(jnp.abs(out - ref))
        raise AssertionError(f"Pallas FFN output mismatch vs reference (max abs err {err})")

    print("KERNEL_OK")
</pallas_src>

<mosaic_0001>
module attributes {stable_mosaic.version = 11 : i64} {
  func.func @_ffn_kernel(%arg0: i32, %arg1: i32, %arg2: memref<128x256xbf16, #tpu.memory_space<vmem>>, %arg3: memref<256x1024xbf16, #tpu.memory_space<vmem>>, %arg4: memref<512x256xbf16, #tpu.memory_space<vmem>>, %arg5: memref<128x256xf32, #tpu.memory_space<vmem>>) attributes {dimension_semantics = [#tpu.dimension_semantics<parallel>, #tpu.dimension_semantics<arbitrary>], iteration_bounds = array<i64: 1, 1>, scalar_prefetch = 0 : i64, scratch_operands = 0 : i64, tpu.core_type = #tpu.core_type<tc>, window_params = [{transform_indices = @transform_0, window_bounds = array<i64: 128, 256>}, {transform_indices = @transform_1, window_bounds = array<i64: 256, 1024>}, {transform_indices = @transform_2, window_bounds = array<i64: 512, 256>}, {transform_indices = @transform_3, window_bounds = array<i64: 128, 256>}]} {
    %c0_i32 = arith.constant 0 : i32
    %0 = arith.cmpi eq, %arg1, %c0_i32 : i32
    %1 = arith.extui %0 : i1 to i32
    %c0_i32_0 = arith.constant 0 : i32
    %2 = arith.cmpi ne, %1, %c0_i32_0 : i32
    scf.if %2 {
      %cst_26 = arith.constant 0.000000e+00 : f32
      %38 = vector.broadcast %cst_26 : f32 to vector<128x256xf32>
      %c0_27 = arith.constant 0 : index
      %c0_28 = arith.constant 0 : index
      %39 = vector.load %arg5[%c0_27, %c0_28] : memref<128x256xf32, #tpu.memory_space<vmem>>, vector<128x256xf32>
      tpu.vector_store %arg5[%c0_27, %c0_28], %38 {strides = array<i32>} : memref<128x256xf32, #tpu.memory_space<vmem>>, vector<128x256xf32>,
    } else {
    }
    %c0 = arith.constant 0 : index
    %c0_1 = arith.constant 0 : index
    %3 = vector.load %arg2[%c0, %c0_1] : memref<128x256xbf16, #tpu.memory_space<vmem>>, vector<128x256xbf16>
    %c0_2 = arith.constant 0 : index
    %c0_3 = arith.constant 0 : index
    %4 = vector.load %arg3[%c0_2, %c0_3] : memref<256x1024xbf16, #tpu.memory_space<vmem>>, vector<256x256xbf16>
    %cst = arith.constant dense<0.000000e+00> : vector<128x256xf32>
    %5 = tpu.matmul %3, %4, %cst {dimension_numbers = #tpu.dot_dimension_numbers<[1], [0], [0], [1], [0, 0, 1, 1], [], []>} : vector<128x256xbf16>, vector<256x256xbf16>, vector<128x256xf32> -> vector<128x256xf32>
    %c0_4 = arith.constant 0 : index
    %c512 = arith.constant 512 : index
    %6 = vector.load %arg3[%c0_4, %c512] : memref<256x1024xbf16, #tpu.memory_space<vmem>>, vector<256x256xbf16>
    %cst_5 = arith.constant dense<0.000000e+00> : vector<128x256xf32>
    %7 = tpu.matmul %3, %6, %cst_5 {dimension_numbers = #tpu.dot_dimension_numbers<[1], [0], [0], [1], [0, 0, 1, 1], [], []>} : vector<128x256xbf16>, vector<256x256xbf16>, vector<128x256xf32> -> vector<128x256xf32>
    %8 = arith.negf %5 : vector<128x256xf32>
    %9 = math.exp %8 : vector<128x256xf32>
    %cst_6 = arith.constant 1.000000e+00 : f32
    %10 = vector.broadcast %cst_6 : f32 to vector<128x256xf32>
    %11 = arith.addf %10, %9 : vector<128x256xf32>
    %12 = arith.divf %10, %11 : vector<128x256xf32>
    %13 = arith.mulf %5, %12 : vector<128x256xf32>
    %14 = arith.mulf %13, %7 : vector<128x256xf32>
    %c0_7 = arith.constant 0 : index
    %c0_8 = arith.constant 0 : index
    %15 = vector.load %arg5[%c0_7, %c0_8] : memref<128x256xf32, #tpu.memory_space<vmem>>, vector<128x256xf32>
    %16 = arith.truncf %14 : vector<128x256xf32> to vector<128x256xbf16>
    %c0_9 = arith.constant 0 : index
    %c0_10 = arith.constant 0 : index
    %17 = vector.load %arg4[%c0_9, %c0_10] : memref<512x256xbf16, #tpu.memory_space<vmem>>, vector<256x256xbf16>
    %cst_11 = arith.constant dense<0.000000e+00> : vector<128x256xf32>
    %18 = tpu.matmul %16, %17, %cst_11 {dimension_numbers = #tpu.dot_dimension_numbers<[1], [0], [0], [1], [0, 0, 1, 1], [], []>} : vector<128x256xbf16>, vector<256x256xbf16>, vector<128x256xf32> -> vector<128x256xf32>
    %19 = arith.addf %15, %18 : vector<128x256xf32>
    %c0_12 = arith.constant 0 : index
    %c0_13 = arith.constant 0 : index
    %20 = vector.load %arg5[%c0_12, %c0_13] : memref<128x256xf32, #tpu.memory_space<vmem>>, vector<128x256xf32>
    tpu.vector_store %arg5[%c0_12, %c0_13], %19 {strides = array<i32>} : memref<128x256xf32, #tpu.memory_space<vmem>>, vector<128x256xf32>,
    %c0_14 = arith.constant 0 : index
    %c256 = arith.constant 256 : index
    %21 = vector.load %arg3[%c0_14, %c256] : memref<256x1024xbf16, #tpu.memory_space<vmem>>, vector<256x256xbf16>
    %cst_15 = arith.constant dense<0.000000e+00> : vector<128x256xf32>
    %22 = tpu.matmul %3, %21, %cst_15 {dimension_numbers = #tpu.dot_dimension_numbers<[1], [0], [0], [1], [0, 0, 1, 1], [], []>} : vector<128x256xbf16>, vector<256x256xbf16>, vector<128x256xf32> -> vector<128x256xf32>
    %c0_16 = arith.constant 0 : index
    %c768 = arith.constant 768 : index
    %23 = vector.load %arg3[%c0_16, %c768] : memref<256x1024xbf16, #tpu.memory_space<vmem>>, vector<256x256xbf16>
    %cst_17 = arith.constant dense<0.000000e+00> : vector<128x256xf32>
    %24 = tpu.matmul %3, %23, %cst_17 {dimension_numbers = #tpu.dot_dimension_numbers<[1], [0], [0], [1], [0, 0, 1, 1], [], []>} : vector<128x256xbf16>, vector<256x256xbf16>, vector<128x256xf32> -> vector<128x256xf32>
    %25 = arith.negf %22 : vector<128x256xf32>
    %26 = math.exp %25 : vector<128x256xf32>
    %cst_18 = arith.constant 1.000000e+00 : f32
    %27 = vector.broadcast %cst_18 : f32 to vector<128x256xf32>
    %28 = arith.addf %27, %26 : vector<128x256xf32>
    %29 = arith.divf %27, %28 : vector<128x256xf32>
    %30 = arith.mulf %22, %29 : vector<128x256xf32>
    %31 = arith.mulf %30, %24 : vector<128x256xf32>
    %c0_19 = arith.constant 0 : index
    %c0_20 = arith.constant 0 : index
    %32 = vector.load %arg5[%c0_19, %c0_20] : memref<128x256xf32, #tpu.memory_space<vmem>>, vector<128x256xf32>
    %33 = arith.truncf %31 : vector<128x256xf32> to vector<128x256xbf16>
    %c256_21 = arith.constant 256 : index
    %c0_22 = arith.constant 0 : index
    %34 = vector.load %arg4[%c256_21, %c0_22] : memref<512x256xbf16, #tpu.memory_space<vmem>>, vector<256x256xbf16>
    %cst_23 = arith.constant dense<0.000000e+00> : vector<128x256xf32>
    %35 = tpu.matmul %33, %34, %cst_23 {dimension_numbers = #tpu.dot_dimension_numbers<[1], [0], [0], [1], [0, 0, 1, 1], [], []>} : vector<128x256xbf16>, vector<256x256xbf16>, vector<128x256xf32> -> vector<128x256xf32>
    %36 = arith.addf %32, %35 : vector<128x256xf32>
    %c0_24 = arith.constant 0 : index
    %c0_25 = arith.constant 0 : index
    %37 = vector.load %arg5[%c0_24, %c0_25] : memref<128x256xf32, #tpu.memory_space<vmem>>, vector<128x256xf32>
    tpu.vector_store %arg5[%c0_24, %c0_25], %36 {strides = array<i32>} : memref<128x256xf32, #tpu.memory_space<vmem>>, vector<128x256xf32>,
    return
  }
  func.func @transform_0(%arg0: i32, %arg1: i32) -> (i32, i32) {
    %c0_i32 = arith.constant 0 : i32
    %c0_i32_0 = arith.constant 0 : i32
    return %arg0, %c0_i32 : i32, i32
  }
  func.func @transform_1(%arg0: i32, %arg1: i32) -> (i32, i32) {
    %c0_i32 = arith.constant 0 : i32
    %c0_i32_0 = arith.constant 0 : i32
    return %c0_i32, %arg1 : i32, i32
  }
  func.func @transform_2(%arg0: i32, %arg1: i32) -> (i32, i32) {
    %c0_i32 = arith.constant 0 : i32
    %c0_i32_0 = arith.constant 0 : i32
    return %arg1, %c0_i32 : i32, i32
  }
  func.func @transform_3(%arg0: i32, %arg1: i32) -> (i32, i32) {
    %c0_i32 = arith.constant 0 : i32
    %c0_i32_0 = arith.constant 0 : i32
    return %arg0, %c0_i32 : i32, i32
  }
}

</mosaic_0001>

<bundles_post_ra>
// kernel: _feed_forward_impl.1
= control target key start
LH: loop header
LB: loop body
LE: loop exit
PB: predicated region body
PF: predicated region fallthrough
CT: control target
= control target key end

     0   :  { %8 = vsyncpa [#allocation3], 0  ;;  %s8588_s0 = inlined_call_operand.vmem [shape: bf16[128,256], index: 0, kind: input, shape index: {}]   ;;  %s8589_s1 = inlined_call_operand.hbm [shape: bf16[256,1024], index: 1, kind: input, shape index: {}]   ;;  %s8590_s2 = inlined_call_operand.hbm [shape: bf16[512,256], index: 2, kind: input, shape index: {}]   ;;  %s8591_s3 = inlined_call_operand.vmem [shape: f32[128,256], index: 3, kind: output, shape index: {}]  }
   0x1   :  { %s16_s14 = sshll.u32 %s8589_s1, 4  ;;  %s17_s14 = int_to_ptr.hbm [resolvable:$true] %s16_s14 }
   0x2   :  { %9 = vsyncpa [#allocation5], 0  ;;  %s5499_s15 = smov [#allocation2]   ;;  %s29_s19 = sshll.u32 %s8590_s2, 4  ;;  %s30_s19 = int_to_ptr.hbm [resolvable:$true] %s29_s19 }
   0x3   :  { %s18_s16 = sshll.u32 %s5499_s15, 4  ;;  %s5500_s20 = smov 512   ;;  %s19_s16 = int_to_ptr.vmem [resolvable:$true] %s18_s16 }
   0x4   :  { %s5501_s21 = smov 32   ;;  %s5502_s22 = smov [#allocation4]  }
   0x5   :  { %24 = dma.hbm_to_vmem [thread:$0]  %s17_s14, 16384, %s19_s16, [#allocation3], %s5500_s20, %s5500_s20, %s5501_s21  }
   0x6   :  { %s31_s23 = sshll.u32 %s5502_s22, 4  ;;  %s5503_s24 = smov 128   ;;  %s32_s23 = int_to_ptr.vmem [resolvable:$true] %s31_s23 }
   0x7   :  { %s5504_s25 = smov 8  }
   0x8   :  { %37 = dma.hbm_to_vmem [thread:$0]  %s30_s19, 8192, %s32_s23, [#allocation5], %s5503_s24, %s5503_s24, %s5504_s25  }
   0x9   :  { %5495 = dma.done.wait [#allocation3], 16384  }
   0xa   :  { %5496 = vsyncadd [#allocation3], 4294950912 }
   0xb   :  { %5497 = dma.done.wait [#allocation5], 8192  }
   0xc   :  { %5498 = vsyncadd [#allocation5], 4294959104  ;;  %v4202_v0 = vld [vmem:[#allocation2 + $0x1c0] sm:$0xf]  ;;  %v5006_v5 = vld [vmem:[#allocation2 + $0x1c4] sm:$0xf] }
   0xd   :  { %v5007_v1 = vld [vmem:[#allocation2 + $0x1dc] sm:$0xf0]  ;;  %v4204_v6 = vld [vmem:[#allocation2 + $0x1e0] sm:$0xf0] }
   0xe   :  { %v4266_v2 = vld [vmem:[#allocation2 + $0x3c0] sm:$0xf]  ;;  %v4203_v3 = vor.u32 %v5007_v1, %v4202_v0  ;;  %v4207_v8 = vor.u32 %v5006_v5, %v4204_v6  ;;  %v5022_v9 = vld [vmem:[#allocation2 + $0x3c4] sm:$0xf] }
   0xf   :  { %v5023_v4 = vld [vmem:[#allocation2 + $0x3dc] sm:$0xf0]  ;;  %v4268_v10 = vld [vmem:[#allocation2 + $0x3e0] sm:$0xf0] }
  0x10   :  { %v4267_v7 = vor.u32 %v5023_v4, %v4266_v2  ;;  %v4194_v11 = vld [vmem:[#allocation2 + $0x180] sm:$0xf]  ;;  %370 = vmatpush.bf16.msra.mxu0 %v4203_v3  ;;  %v4271_v12 = vor.u32 %v5022_v9, %v4268_v10  ;;  %468 = vmatpush.bf16.msra.mxu2 %v4207_v8  ;;  %v5004_v18 = vld [vmem:[#allocation2 + $0x184] sm:$0xf] }
  0x11   :  { %v5005_v13 = vld [vmem:[#allocation2 + $0x19c] sm:$0xf0]  ;;  %v4196_v19 = vld [vmem:[#allocation2 + $0x1a0] sm:$0xf0] }
  0x12   :  { %v4258_v14 = vld [vmem:[#allocation2 + $0x380] sm:$0xf]  ;;  %419 = vmatpush.bf16.msra.mxu1 %v4267_v7  ;;  %v4195_v16 = vor.u32 %v5005_v13, %v4194_v11  ;;  %v5020_v20 = vld [vmem:[#allocation2 + $0x384] sm:$0xf]  ;;  %517 = vmatpush.bf16.msra.mxu3 %v4271_v12  ;;  %v4199_v21 = vor.u32 %v5004_v18, %v4196_v19 }
  0x13   :  { %v5021_v15 = vld [vmem:[#allocation2 + $0x39c] sm:$0xf0]  ;;  %v4260_v22 = vld [vmem:[#allocation2 + $0x3a0] sm:$0xf0] }
  0x14   :  { %v4259_v17 = vor.u32 %v5021_v15, %v4258_v14  ;;  %v4186_v23 = vld [vmem:[#allocation2 + $0x140] sm:$0xf]  ;;  %v4263_v25 = vor.u32 %v5020_v20, %v4260_v22  ;;  %v5002_v28 = vld [vmem:[#allocation2 + $0x144] sm:$0xf]  ;;  %371 = vmatpush.bf16.msra.mxu0 %v4195_v16  ;;  %469 = vmatpush.bf16.msra.mxu2 %v4199_v21 }
  0x15   :  { %v5003_v24 = vld [vmem:[#allocation2 + $0x15c] sm:$0xf0]  ;;  %v4188_v30 = vld [vmem:[#allocation2 + $0x160] sm:$0xf0] }
  0x16   :  { %v4250_v26 = vld [vmem:[#allocation2 + $0x340] sm:$0xf]  ;;  %v4187_v29 = vor.u32 %v5003_v24, %v4186_v23  ;;  %v5018_v31 = vld [vmem:[#allocation2 + $0x344] sm:$0xf]  ;;  %420 = vmatpush.bf16.msra.mxu1 %v4259_v17  ;;  %v4191_v34 = vor.u32 %v5002_v28, %v4188_v30  ;;  %518 = vmatpush.bf16.msra.mxu3 %v4263_v25  ;;  %v4332_v30 = vld [vmem:[#allocation2 + $0x1f0] sm:$0xf0] }
  0x17   :  { %v5019_v27 = vld [vmem:[#allocation2 + $0x35c] sm:$0xf0]  ;;  %v4252_v32 = vld [vmem:[#allocation2 + $0x360] sm:$0xf0] }
  0x18   :  { %v4251_v33 = vor.u32 %v5019_v27, %v4250_v26  ;;  %v4178_v35 = vld [vmem:[#allocation2 + $0x100] sm:$0xf]  ;;  %v4255_v38 = vor.u32 %v5018_v31, %v4252_v32  ;;  %v5000_v40 = vld [vmem:[#allocation2 + $0x104] sm:$0xf]  ;;  %372 = vmatpush.bf16.msra.mxu0 %v4187_v29  ;;  %470 = vmatpush.bf16.msra.mxu2 %v4191_v34  ;;  %v5038_v29 = vld [vmem:[#allocation2 + $0x1d4] sm:$0xf] }
  0x19   :  { %v5001_v36 = vld [vmem:[#allocation2 + $0x11c] sm:$0xf0]  ;;  %v4180_v41 = vld [vmem:[#allocation2 + $0x120] sm:$0xf0]  ;;  %v4977_v32 = vld [vmem:[%s8588_s0 + $0x4] sm:$0xf0] }
  0x1a   :  { %v4242_v37 = vld [vmem:[#allocation2 + $0x300] sm:$0xf]  ;;  %v5016_v42 = vld [vmem:[#allocation2 + $0x304] sm:$0xf]  ;;  %v4179_v44 = vor.u32 %v5001_v36, %v4178_v35  ;;  %421 = vmatpush.bf16.msra.mxu1 %v4251_v33  ;;  %v4183_v46 = vor.u32 %v5000_v40, %v4180_v41  ;;  %519 = vmatpush.bf16.msra.mxu3 %v4255_v38  ;;  %v5054_v33 = vld [vmem:[#allocation2 + $0x3d4] sm:$0xf]  ;;  %v4335_v40 = vor.u32 %v5038_v29, %v4332_v30 }
  0x1b   :  { %v5017_v39 = vld [vmem:[#allocation2 + $0x31c] sm:$0xf0]  ;;  %v4244_v43 = vld [vmem:[#allocation2 + $0x320] sm:$0xf0]  ;;  %v4396_v34 = vld [vmem:[#allocation2 + $0x3f0] sm:$0xf0] }
  0x1c   :  { %v4243_v45 = vor.u32 %v5017_v39, %v4242_v37  ;;  %v4170_v47 = vld [vmem:[#allocation2 + $0xc0] sm:$0xf]  ;;  %v4247_v50 = vor.u32 %v5016_v42, %v4244_v43  ;;  %v4998_v52 = vld [vmem:[#allocation2 + $0xc4] sm:$0xf]  ;;  %373 = vmatpush.bf16.msra.mxu0 %v4179_v44  ;;  %471 = vmatpush.bf16.msra.mxu2 %v4183_v46  ;;  %v4084_v38 = vld [vmem:[%s8588_s0 + $0x8] sm:$0xf0] }
  0x1d   :  { %v4999_v48 = vld [vmem:[#allocation2 + $0xdc] sm:$0xf0]  ;;  %v4172_v53 = vld [vmem:[#allocation2 + $0xe0] sm:$0xf0]  ;;  %v4330_v41 = vld [vmem:[#allocation2 + $0x1d0] sm:$0xf] }
  0x1e   :  { %v4234_v49 = vld [vmem:[#allocation2 + $0x2c0] sm:$0xf]  ;;  %v5014_v54 = vld [vmem:[#allocation2 + $0x2c4] sm:$0xf]  ;;  %v4171_v56 = vor.u32 %v4999_v48, %v4170_v47  ;;  %422 = vmatpush.bf16.msra.mxu1 %v4243_v45  ;;  %v4175_v58 = vor.u32 %v4998_v52, %v4172_v53  ;;  %520 = vmatpush.bf16.msra.mxu3 %v4247_v50  ;;  %v5039_v42 = vld [vmem:[#allocation2 + $0x1ec] sm:$0xf0]  ;;  %v4399_v45 = vor.u32 %v5054_v33, %v4396_v34 }
  0x1f   :  { %v5015_v51 = vld [vmem:[#allocation2 + $0x2dc] sm:$0xf0]  ;;  %v4236_v55 = vld [vmem:[#allocation2 + $0x2e0] sm:$0xf0]  ;;  %v4394_v43 = vld [vmem:[#allocation2 + $0x3d0] sm:$0xf]  ;;  %v4331_v52 = vor.u32 %v5039_v42, %v4330_v41 }
  0x20   :  { %v4235_v57 = vor.u32 %v5015_v51, %v4234_v49  ;;  %v4162_v59 = vld [vmem:[#allocation2 + $0x80] sm:$0xf]  ;;  %v4239_v62 = vor.u32 %v5014_v54, %v4236_v55  ;;  %v4996_v0 = vld [vmem:[#allocation2 + $0x84] sm:$0xf]  ;;  %374 = vmatpush.bf16.msra.mxu0 %v4171_v56  ;;  %472 = vmatpush.bf16.msra.mxu2 %v4175_v58  ;;  %v5055_v46 = vld [vmem:[#allocation2 + $0x3ec] sm:$0xf0] }
  0x21   :  { %v4997_v60 = vld [vmem:[#allocation2 + $0x9c] sm:$0xf0]  ;;  %v4164_v1 = vld [vmem:[#allocation2 + $0xa0] sm:$0xf0]  ;;  %v5036_v47 = vld [vmem:[#allocation2 + $0x194] sm:$0xf]  ;;  %v4395_v53 = vor.u32 %v5055_v46, %v4394_v43 }
  0x22   :  { %v4226_v61 = vld [vmem:[#allocation2 + $0x280] sm:$0xf]  ;;  %v5012_v2 = vld [vmem:[#allocation2 + $0x284] sm:$0xf]  ;;  %v4163_v4 = vor.u32 %v4997_v60, %v4162_v59  ;;  %423 = vmatpush.bf16.msra.mxu1 %v4235_v57  ;;  %v4167_v6 = vor.u32 %v4996_v0, %v4164_v1  ;;  %521 = vmatpush.bf16.msra.mxu3 %v4239_v62  ;;  %v4324_v48 = vld [vmem:[#allocation2 + $0x1b0] sm:$0xf0] }
  0x23   :  { %v5013_v63 = vld [vmem:[#allocation2 + $0x29c] sm:$0xf0]  ;;  %v4228_v3 = vld [vmem:[#allocation2 + $0x2a0] sm:$0xf0]  ;;  %v5052_v50 = vld [vmem:[#allocation2 + $0x394] sm:$0xf]  ;;  %v4327_v54 = vor.u32 %v5036_v47, %v4324_v48 }
  0x24   :  { %v4227_v5 = vor.u32 %v5013_v63, %v4226_v61  ;;  %v4154_v7 = vld [vmem:[#allocation2 + $0x40] sm:$0xf]  ;;  %v4231_v10 = vor.u32 %v5012_v2, %v4228_v3  ;;  %v4994_v12 = vld [vmem:[#allocation2 + $0x44] sm:$0xf]  ;;  %375 = vmatpush.bf16.msra.mxu0 %v4163_v4  ;;  %473 = vmatpush.bf16.msra.mxu2 %v4167_v6  ;;  %v4388_v51 = vld [vmem:[#allocation2 + $0x3b0] sm:$0xf0] }
  0x25   :  { %v4995_v8 = vld [vmem:[#allocation2 + $0x5c] sm:$0xf0]  ;;  %v4156_v13 = vld [vmem:[#allocation2 + $0x60] sm:$0xf0]  ;;  %v4322_v55 = vld [vmem:[#allocation2 + $0x190] sm:$0xf]  ;;  %v4391_v57 = vor.u32 %v5052_v50, %v4388_v51 }
  0x26   :  { %v4218_v9 = vld [vmem:[#allocation2 + $0x240] sm:$0xf]  ;;  %v5010_v14 = vld [vmem:[#allocation2 + $0x244] sm:$0xf]  ;;  %v4155_v16 = vor.u32 %v4995_v8, %v4154_v7  ;;  %424 = vmatpush.bf16.msra.mxu1 %v4227_v5  ;;  %v4159_v20 = vor.u32 %v4994_v12, %v4156_v13  ;;  %522 = vmatpush.bf16.msra.mxu3 %v4231_v10  ;;  %v5037_v56 = vld [vmem:[#allocation2 + $0x1ac] sm:$0xf0] }
  0x27   :  { %v5011_v11 = vld [vmem:[#allocation2 + $0x25c] sm:$0xf0]  ;;  %v4220_v15 = vld [vmem:[#allocation2 + $0x260] sm:$0xf0]  ;;  %v4386_v58 = vld [vmem:[#allocation2 + $0x390] sm:$0xf]  ;;  %v4323_v60 = vor.u32 %v5037_v56, %v4322_v55 }
  0x28   :  { %v4146_v17 = vld [vmem:[#allocation2] sm:$0xf]  ;;  %v4219_v19 = vor.u32 %v5011_v11, %v4218_v9  ;;  %v4992_v23 = vld [vmem:[#allocation2 + $0x4] sm:$0xf]  ;;  %v4223_v24 = vor.u32 %v5010_v14, %v4220_v15  ;;  %376 = vmatpush.bf16.msra.mxu0 %v4155_v16  ;;  %474 = vmatpush.bf16.msra.mxu2 %v4159_v20  ;;  %v5053_v59 = vld [vmem:[#allocation2 + $0x3ac] sm:$0xf0] }
  0x29   :  { %v4993_v18 = vld [vmem:[#allocation2 + $0x1c] sm:$0xf0]  ;;  %v4148_v25 = vld [vmem:[#allocation2 + $0x20] sm:$0xf0]  ;;  %v5034_v61 = vld [vmem:[#allocation2 + $0x154] sm:$0xf]  ;;  %v4387_v0 = vor.u32 %v5053_v59, %v4386_v58 }
  0x2a   :  { %v4210_v21 = vld [vmem:[#allocation2 + $0x200] sm:$0xf]  ;;  %v5008_v26 = vld [vmem:[#allocation2 + $0x204] sm:$0xf]  ;;  %v4147_v31 = vor.u32 %v4993_v18, %v4146_v17  ;;  %425 = vmatpush.bf16.msra.mxu1 %v4219_v19  ;;  %v4151_v36 = vor.u32 %v4992_v23, %v4148_v25  ;;  %523 = vmatpush.bf16.msra.mxu3 %v4223_v24  ;;  %v4316_v62 = vld [vmem:[#allocation2 + $0x170] sm:$0xf0] }
  0x2b   :  { %v5009_v22 = vld [vmem:[#allocation2 + $0x21c] sm:$0xf0]  ;;  %v4212_v27 = vld [vmem:[#allocation2 + $0x220] sm:$0xf0]  ;;  %v5050_v63 = vld [vmem:[#allocation2 + $0x354] sm:$0xf]  ;;  %v4319_v1 = vor.u32 %v5034_v61, %v4316_v62 }
  0x2c   :  { %v4082_v28 = vld [vmem:[%s8588_s0] sm:$0xf]  ;;  %v4211_v35 = vor.u32 %v5009_v22, %v4210_v21  ;;  %v4976_v37 = vld [vmem:[%s8588_s0 + $0x4] sm:$0xf]  ;;  %v4215_v39 = vor.u32 %v5008_v26, %v4212_v27  ;;  %377 = vmatpush.bf16.msra.mxu0 %v4147_v31  ;;  %475 = vmatpush.bf16.msra.mxu2 %v4151_v36  ;;  %v4380_v2 = vld [vmem:[#allocation2 + $0x370] sm:$0xf0] }
  0x2d   :  { %v5543_v44 = vor.u32 %v4977_v32, %v4082_v28  ;;  %v5545_v49 = vor.u32 %v4976_v37, %v4084_v38  ;;  %v4314_v3 = vld [vmem:[#allocation2 + $0x150] sm:$0xf]  ;;  %v4383_v5 = vor.u32 %v5050_v63, %v4380_v2  ;;  %v4979_v11 = vld [vmem:[%s8588_s0 + $0x14] sm:$0xf0]  ;;  %v4978_v12 = vld [vmem:[%s8588_s0 + $0x14] sm:$0xf] }
  0x2e   :  { %426 = vmatpush.bf16.msra.mxu1 %v4211_v35  ;;  %524 = vmatpush.bf16.msra.mxu3 %v4215_v39  ;;  %v5035_v4 = vld [vmem:[#allocation2 + $0x16c] sm:$0xf0]  ;;  %v4092_v13 = vld [vmem:[%s8588_s0 + $0x18] sm:$0xf0]  ;;  %v5032_v16 = vld [vmem:[#allocation2 + $0x114] sm:$0xf] }
  0x2f   :  { %8646 = vst [vmem:[#allocation8_spill] sm:$0xff] %v5543_v44  ;;  %378 = vmatmul.bf16.vlgmr.msra.gmra.mxu0 %v5543_v44  ;;  %476 = vmatmul.bf16.vlgmr.msra.gmra.mxu2 %v5543_v44  ;;  %v4378_v6 = vld [vmem:[#allocation2 + $0x350] sm:$0xf]  ;;  %v4315_v8 = vor.u32 %v5035_v4, %v4314_v3  ;;  %v5565_v15 = vor.u32 %v4978_v12, %v4092_v13  ;;  %v4308_v17 = vld [vmem:[#allocation2 + $0x130] sm:$0xf0] }
  0x30   :  { %8647 = vst [vmem:[#allocation9_spill] sm:$0xff] %v5545_v49  ;;  %856 = vmatpush.bf16.msrb.mxu2 %v4335_v40  ;;  %758 = vmatpush.bf16.msrb.mxu0 %v4331_v52  ;;  %v5051_v7 = vld [vmem:[#allocation2 + $0x36c] sm:$0xf0]  ;;  %v5048_v18 = vld [vmem:[#allocation2 + $0x314] sm:$0xf]  ;;  %v4311_v19 = vor.u32 %v5032_v16, %v4308_v17 }
  0x31   :  { %427 = vmatmul.bf16.vlgmr.msra.gmra.mxu1 %v5545_v49  ;;  %525 = vmatmul.bf16.vlgmr.msra.gmra.mxu3 %v5545_v49  ;;  %v4379_v9 = vor.u32 %v5051_v7, %v4378_v6  ;;  %v4090_v10 = vld [vmem:[%s8588_s0 + $0x10] sm:$0xf]  ;;  %8649 = vst [vmem:[#allocation11_spill] sm:$0xff] %v5565_v15  ;;  %v4372_v20 = vld [vmem:[#allocation2 + $0x330] sm:$0xf0] }
  0x32   :  { %905 = vmatpush.bf16.msrb.mxu3 %v4399_v45  ;;  %807 = vmatpush.bf16.msrb.mxu1 %v4395_v53  ;;  %v5563_v14 = vor.u32 %v4979_v11, %v4090_v10  ;;  %v4306_v21 = vld [vmem:[#allocation2 + $0x110] sm:$0xf]  ;;  %v4375_v23 = vor.u32 %v5048_v18, %v4372_v20  ;;  %v4098_v28 = vld [vmem:[%s8588_s0 + $0x20] sm:$0xf]  ;;  %v4981_v29 = vld [vmem:[%s8588_s0 + $0x24] sm:$0xf0] }
  0x33   :  { %v5033_v22 = vld [vmem:[#allocation2 + $0x12c] sm:$0xf0]  ;;  %v4980_v30 = vld [vmem:[%s8588_s0 + $0x24] sm:$0xf]  ;;  %v4100_v31 = vld [vmem:[%s8588_s0 + $0x28] sm:$0xf0]  ;;  %v5583_v32 = vor.u32 %v4981_v29, %v4098_v28 }
  0x34   :  { %857 = vmatpush.bf16.msrb.mxu2 %v4327_v54  ;;  %759 = vmatpush.bf16.msrb.mxu0 %v4323_v60  ;;  %8648 = vst [vmem:[#allocation10_spill] sm:$0xff] %v5563_v14  ;;  %v4307_v24 = vor.u32 %v5033_v22, %v4306_v21  ;;  %v4370_v25 = vld [vmem:[#allocation2 + $0x310] sm:$0xf]  ;;  %v5585_v33 = vor.u32 %v4980_v30, %v4100_v31  ;;  %v5030_v34 = vld [vmem:[#allocation2 + $0xd4] sm:$0xf] }
  0x35   :  { %v5049_v26 = vld [vmem:[#allocation2 + $0x32c] sm:$0xf0]  ;;  %8650 = vst [vmem:[#allocation12_spill] sm:$0xff] %v5583_v32  ;;  %v4300_v35 = vld [vmem:[#allocation2 + $0xf0] sm:$0xf0] }
  0x36   :  { %906 = vmatpush.bf16.msrb.mxu3 %v4391_v57  ;;  %808 = vmatpush.bf16.msrb.mxu1 %v4387_v0  ;;  %v4371_v27 = vor.u32 %v5049_v26, %v4370_v25  ;;  %8651 = vst [vmem:[#allocation13_spill] sm:$0xff] %v5585_v33  ;;  %v5046_v36 = vld [vmem:[#allocation2 + $0x2d4] sm:$0xf]  ;;  %v4303_v37 = vor.u32 %v5030_v34, %v4300_v35  ;;  %v4298_v39 = vld [vmem:[#allocation2 + $0xd0] sm:$0xf] }
  0x37   :  { %v4364_v38 = vld [vmem:[#allocation2 + $0x2f0] sm:$0xf0]  ;;  %v5031_v40 = vld [vmem:[#allocation2 + $0xec] sm:$0xf0]  ;;  %v4983_v48 = vld [vmem:[%s8588_s0 + $0x34] sm:$0xf0] }
  0x38   :  { %858 = vmatpush.bf16.msrb.mxu2 %v4319_v1  ;;  %760 = vmatpush.bf16.msrb.mxu0 %v4315_v8  ;;  %v4367_v41 = vor.u32 %v5046_v36, %v4364_v38  ;;  %v4299_v42 = vor.u32 %v5031_v40, %v4298_v39  ;;  %v4362_v43 = vld [vmem:[#allocation2 + $0x2d0] sm:$0xf]  ;;  %v4982_v50 = vld [vmem:[%s8588_s0 + $0x34] sm:$0xf]  ;;  %v4108_v51 = vld [vmem:[%s8588_s0 + $0x38] sm:$0xf0] }
  0x39   :  { %v5047_v45 = vld [vmem:[#allocation2 + $0x2ec] sm:$0xf0]  ;;  %v5605_v53 = vor.u32 %v4982_v50, %v4108_v51  ;;  %v5028_v54 = vld [vmem:[#allocation2 + $0x94] sm:$0xf]  ;;  %v4114_v2 = vld [vmem:[%s8588_s0 + $0x40] sm:$0xf] }
  0x3a   :  { %907 = vmatpush.bf16.msrb.mxu3 %v4383_v5  ;;  %809 = vmatpush.bf16.msrb.mxu1 %v4379_v9  ;;  %v4363_v46 = vor.u32 %v5047_v45, %v4362_v43  ;;  %v4106_v47 = vld [vmem:[%s8588_s0 + $0x30] sm:$0xf]  ;;  %v4292_v55 = vld [vmem:[#allocation2 + $0xb0] sm:$0xf0]  ;;  %v4985_v3 = vld [vmem:[%s8588_s0 + $0x44] sm:$0xf0] }
  0x3b   :  { %v5603_v52 = vor.u32 %v4983_v48, %v4106_v47  ;;  %8653 = vst [vmem:[#allocation15_spill] sm:$0xff] %v5605_v53  ;;  %v5044_v56 = vld [vmem:[#allocation2 + $0x294] sm:$0xf]  ;;  %v4295_v57 = vor.u32 %v5028_v54, %v4292_v55  ;;  %v4290_v59 = vld [vmem:[#allocation2 + $0x90] sm:$0xf]  ;;  %v5623_v6 = vor.u32 %v4985_v3, %v4114_v2 }
  0x3c   :  { %859 = vmatpush.bf16.msrb.mxu2 %v4311_v19  ;;  %761 = vmatpush.bf16.msrb.mxu0 %v4307_v24  ;;  %v4356_v58 = vld [vmem:[#allocation2 + $0x2b0] sm:$0xf0]  ;;  %v5029_v60 = vld [vmem:[#allocation2 + $0xac] sm:$0xf0]  ;;  %v4984_v4 = vld [vmem:[%s8588_s0 + $0x44] sm:$0xf] }
  0x3d   :  { %8652 = vst [vmem:[#allocation14_spill] sm:$0xff] %v5603_v52  ;;  %v4359_v61 = vor.u32 %v5044_v56, %v4356_v58  ;;  %v4291_v62 = vor.u32 %v5029_v60, %v4290_v59  ;;  %v4354_v63 = vld [vmem:[#allocation2 + $0x290] sm:$0xf]  ;;  %v4116_v5 = vld [vmem:[%s8588_s0 + $0x48] sm:$0xf0] }
  0x3e   :  { %908 = vmatpush.bf16.msrb.mxu3 %v4375_v23  ;;  %810 = vmatpush.bf16.msrb.mxu1 %v4371_v27  ;;  %v5045_v0 = vld [vmem:[#allocation2 + $0x2ac] sm:$0xf0]  ;;  %8654 = vst [vmem:[#allocation16_spill] sm:$0xff] %v5623_v6  ;;  %v5625_v7 = vor.u32 %v4984_v4, %v4116_v5  ;;  %v5026_v8 = vld [vmem:[#allocation2 + $0x54] sm:$0xf] }
  0x3f   :  { %383 = vmatmul.bf16.gmra.mxu0 %v5563_v14  ;;  %481 = vmatmul.bf16.gmra.mxu2 %v5563_v14  ;;  %v4355_v1 = vor.u32 %v5045_v0, %v4354_v63  ;;  %v4284_v9 = vld [vmem:[#allocation2 + $0x70] sm:$0xf0]  ;;  %v4282_v13 = vld [vmem:[#allocation2 + $0x50] sm:$0xf]  ;;  %v4987_v23 = vld [vmem:[%s8588_s0 + $0x54] sm:$0xf0] }
  0x40   :  { %860 = vmatpush.bf16.msrb.mxu2 %v4303_v37  ;;  %762 = vmatpush.bf16.msrb.mxu0 %v4299_v42  ;;  %8655 = vst [vmem:[#allocation17_spill] sm:$0xff] %v5625_v7  ;;  %v5042_v10 = vld [vmem:[#allocation2 + $0x254] sm:$0xf]  ;;  %v4287_v11 = vor.u32 %v5026_v8, %v4284_v9  ;;  %v5027_v16 = vld [vmem:[#allocation2 + $0x6c] sm:$0xf0] }
  0x41   :  { %432 = vmatmul.bf16.gmra.mxu1 %v5565_v15  ;;  %530 = vmatmul.bf16.gmra.mxu3 %v5565_v15  ;;  %v4348_v12 = vld [vmem:[#allocation2 + $0x270] sm:$0xf0]  ;;  %v4283_v18 = vor.u32 %v5027_v16, %v4282_v13  ;;  %v4346_v19 = vld [vmem:[#allocation2 + $0x250] sm:$0xf]  ;;  %v4124_v25 = vld [vmem:[%s8588_s0 + $0x58] sm:$0xf0] }
  0x42   :  { %909 = vmatpush.bf16.msrb.mxu3 %v4367_v41  ;;  %811 = vmatpush.bf16.msrb.mxu1 %v4363_v46  ;;  %v4351_v17 = vor.u32 %v5042_v10, %v4348_v12  ;;  %v5043_v20 = vld [vmem:[#allocation2 + $0x26c] sm:$0xf0]  ;;  %v4986_v24 = vld [vmem:[%s8588_s0 + $0x54] sm:$0xf]  ;;  %v4130_v42 = vld [vmem:[%s8588_s0 + $0x60] sm:$0xf] }
  0x43   :  { %v4347_v21 = vor.u32 %v5043_v20, %v4346_v19  ;;  %v4122_v22 = vld [vmem:[%s8588_s0 + $0x50] sm:$0xf]  ;;  %v5645_v27 = vor.u32 %v4986_v24, %v4124_v25  ;;  %v5024_v28 = vld [vmem:[#allocation2 + $0x14] sm:$0xf]  ;;  %v4989_v43 = vld [vmem:[%s8588_s0 + $0x64] sm:$0xf0] }
  0x44   :  { %861 = vmatpush.bf16.msrb.mxu2 %v4295_v57  ;;  %763 = vmatpush.bf16.msrb.mxu0 %v4291_v62  ;;  %v5643_v26 = vor.u32 %v4987_v23, %v4122_v22  ;;  %v4276_v29 = vld [vmem:[#allocation2 + $0x30] sm:$0xf0]  ;;  %v4274_v35 = vld [vmem:[#allocation2 + $0x10] sm:$0xf]  ;;  %v4988_v45 = vld [vmem:[%s8588_s0 + $0x64] sm:$0xf]  ;;  %v5663_v47 = vor.u32 %v4989_v43, %v4130_v42 }
  0x45   :  { %8657 = vst [vmem:[#allocation19_spill] sm:$0xff] %v5645_v27  ;;  %v5040_v30 = vld [vmem:[#allocation2 + $0x214] sm:$0xf]  ;;  %v4279_v31 = vor.u32 %v5024_v28, %v4276_v29  ;;  %v5025_v36 = vld [vmem:[#allocation2 + $0x2c] sm:$0xf0] }
  0x46   :  { %910 = vmatpush.bf16.msrb.mxu3 %v4359_v61  ;;  %812 = vmatpush.bf16.msrb.mxu1 %v4355_v1  ;;  %8656 = vst [vmem:[#allocation18_spill] sm:$0xff] %v5643_v26  ;;  %v4340_v34 = vld [vmem:[#allocation2 + $0x230] sm:$0xf0]  ;;  %v4275_v38 = vor.u32 %v5025_v36, %v4274_v35  ;;  %v4338_v39 = vld [vmem:[#allocation2 + $0x210] sm:$0xf] }
  0x47   :  { %v4343_v37 = vor.u32 %v5040_v30, %v4340_v34  ;;  %v5041_v40 = vld [vmem:[#allocation2 + $0x22c] sm:$0xf0]  ;;  %v4132_v46 = vld [vmem:[%s8588_s0 + $0x68] sm:$0xf0]  ;;  %8658 = vst [vmem:[#allocation20_spill] sm:$0xff] %v5663_v47 }
  0x48   :  { %862 = vmatpush.bf16.msrb.mxu2 %v4287_v11  ;;  %764 = vmatpush.bf16.msrb.mxu0 %v4283_v18  ;;  %v4339_v41 = vor.u32 %v5041_v40, %v4338_v39  ;;  %v5665_v48 = vor.u32 %v4988_v45, %v4132_v46  ;;  %v4138_v50 = vld [vmem:[%s8588_s0 + $0x70] sm:$0xf]  ;;  %v4991_v51 = vld [vmem:[%s8588_s0 + $0x74] sm:$0xf0]  ;;  %v4990_v54 = vld [vmem:[%s8588_s0 + $0x74] sm:$0xf] }
  0x49   :  { %v4140_v55 = vld [vmem:[%s8588_s0 + $0x78] sm:$0xf0]  ;;  %v5683_v56 = vor.u32 %v4991_v51, %v4138_v50  ;;  %v5070_v11 = vld [vmem:[#allocation4 + $0x74] sm:$0xf]  ;;  %v4490_v25 = vld [vmem:[#allocation4 + $0x70] sm:$0xf] }
  0x4a   :  { %911 = vmatpush.bf16.msrb.mxu3 %v4351_v17  ;;  %813 = vmatpush.bf16.msrb.mxu1 %v4347_v21  ;;  %8659 = vst [vmem:[#allocation21_spill] sm:$0xff] %v5665_v48  ;;  %v5685_v57 = vor.u32 %v4990_v54, %v4140_v55  ;;  %v4492_v12 = vld [vmem:[#allocation4 + $0x78] sm:$0xf0]  ;;  %v5086_v16 = vld [vmem:[#allocation4 + $0xf4] sm:$0xf] }
  0x4b   :  { %8660 = vst [vmem:[#allocation22_spill] sm:$0xff] %v5683_v56  ;;  %v4495_v13 = vor.u32 %v5070_v11, %v4492_v12  ;;  %v4556_v17 = vld [vmem:[#allocation4 + $0xf8] sm:$0xf0]  ;;  %v5071_v28 = vld [vmem:[#allocation4 + $0x74] sm:$0xf0] }
  0x4c   :  { %863 = vmatpush.bf16.msrb.mxu2 %v4279_v31  ;;  %765 = vmatpush.bf16.msrb.mxu0 %v4275_v38  ;;  %8661 = vst [vmem:[#allocation23_spill] sm:$0xff] %v5685_v57  ;;  %v4559_v21 = vor.u32 %v5086_v16, %v4556_v17  ;;  %v4491_v29 = vor.u32 %v5071_v28, %v4490_v25  ;;  %v4554_v30 = vld [vmem:[#allocation4 + $0xf0] sm:$0xf]  ;;  %v5087_v31 = vld [vmem:[#allocation4 + $0xf4] sm:$0xf0] }
  0x4d   :  { %v5068_v45 = vld [vmem:[#allocation4 + $0x64] sm:$0xf]  ;;  %v4484_v46 = vld [vmem:[#allocation4 + $0x68] sm:$0xf0]  ;;  %v5085_v12 = vld [vmem:[#allocation4 + $0xe4] sm:$0xf0] }
  0x4e   :  { %912 = vmatpush.bf16.msrb.mxu3 %v4343_v37  ;;  %814 = vmatpush.bf16.msrb.mxu1 %v4339_v41  ;;  %v4555_v37 = vor.u32 %v5087_v31, %v4554_v30  ;;  %v5084_v51 = vld [vmem:[#allocation4 + $0xe4] sm:$0xf]  ;;  %v4548_v54 = vld [vmem:[#allocation4 + $0xe8] sm:$0xf0]  ;;  %v4487_v55 = vor.u32 %v5068_v45, %v4484_v46  ;;  %v4476_v25 = vld [vmem:[#allocation4 + $0x58] sm:$0xf0] }
  0x4f   :  { %388 = vmatmul.bf16.gmra.mxu0 %v5583_v32  ;;  %486 = vmatmul.bf16.gmra.mxu2 %v5583_v32  ;;  %v5082_v30 = vld [vmem:[#allocation4 + $0xd4] sm:$0xf]  ;;  %v4540_v31 = vld [vmem:[#allocation4 + $0xd8] sm:$0xf0]  ;;  %v4474_v46 = vld [vmem:[#allocation4 + $0x50] sm:$0xf] }
  0x50   :  { %1964 = vmatpush.bf16.msra.mxu2 %v4495_v13  ;;  %1866 = vmatpush.bf16.msra.mxu0 %v4491_v29 }
  0x51   :  { %437 = vmatmul.bf16.gmra.mxu1 %v5585_v33  ;;  %535 = vmatmul.bf16.gmra.mxu3 %v5585_v33 }
  0x52   :  { %2013 = vmatpush.bf16.msra.mxu3 %v4559_v21  ;;  %1915 = vmatpush.bf16.msra.mxu1 %v4555_v37  ;;  %v5066_v21 = vld [vmem:[#allocation4 + $0x54] sm:$0xf] }
  0x54   :  { %1965 = vmatpush.bf16.msra.mxu2 %v4487_v55 }
  0x5f   :  { %393 = vmatmul.bf16.gmra.mxu0 %v5603_v52  ;;  %491 = vmatmul.bf16.gmra.mxu2 %v5603_v52 }
  0x61   :  { %442 = vmatmul.bf16.gmra.mxu1 %v5605_v53  ;;  %540 = vmatmul.bf16.gmra.mxu3 %v5605_v53 }
  0x6f   :  { %398 = vmatmul.bf16.gmra.mxu0 %v5623_v6  ;;  %496 = vmatmul.bf16.gmra.mxu2 %v5623_v6 }
  0x71   :  { %447 = vmatmul.bf16.gmra.mxu1 %v5625_v7  ;;  %545 = vmatmul.bf16.gmra.mxu3 %v5625_v7 }
  0x7f   :  { %403 = vmatmul.bf16.gmra.mxu0 %v5643_v26  ;;  %501 = vmatmul.bf16.gmra.mxu2 %v5643_v26 }
  0x81   :  { %452 = vmatmul.bf16.gmra.mxu1 %v5645_v27  ;;  %550 = vmatmul.bf16.gmra.mxu3 %v5645_v27 }
  0x8f   :  { %408 = vmatmul.bf16.gmra.mxu0 %v5663_v47  ;;  %506 = vmatmul.bf16.gmra.mxu2 %v5663_v47 }
  0x91   :  { %457 = vmatmul.bf16.gmra.mxu1 %v5665_v48  ;;  %555 = vmatmul.bf16.gmra.mxu3 %v5665_v48 }
  0x9f   :  { %413 = vmatmul.bf16.gmra.mxu0 %v5683_v56  ;;  %511 = vmatmul.bf16.gmra.mxu2 %v5683_v56 }
  0xa1   :  { %462 = vmatmul.bf16.gmra.mxu1 %v5685_v57  ;;  %560 = vmatmul.bf16.gmra.mxu3 %v5685_v57 }
  0xac   :  { %v379_v58 = vpop.f32.mrf.mxu0 }
  0xae   :  { %v428_v59 = vpop.f32.mrf.mxu1 }
  0xaf   :  { %v5691_v60 = vadd.f32 %v428_v59, %v379_v58  ;;  %766 = vmatmul.bf16.vlgmr.msrb.gmra.mxu0 %v5543_v44  ;;  %864 = vmatmul.bf16.vlgmr.msrb.gmra.mxu2 %v5543_v44  ;;  %v4551_v58 = vor.u32 %v5084_v51, %v4548_v54 }
  0xb1   :  { %815 = vmatmul.bf16.vlgmr.msrb.gmra.mxu1 %v5545_v49  ;;  %913 = vmatmul.bf16.vlgmr.msrb.gmra.mxu3 %v5545_v49  ;;  %v5079_v49 = vld [vmem:[#allocation4 + $0xb4] sm:$0xf0] }
  0xb2   :  { %v477_v61 = vpop.f32.mrf.mxu2  ;;  %2014 = vmatpush.bf16.msra.mxu3 %v4551_v58 }
  0xb4   :  { %v526_v62 = vpop.f32.mrf.mxu3  ;;  %v381_v63 = vpop.f32.mrf.mxu0 }
  0xb5   :  { %v5697_v0 = vadd.f32 %v526_v62, %v477_v61 }
  0xb6   :  { %v430_v1 = vpop.f32.mrf.mxu1 }
  0xb7   :  { %v5699_v2 = vadd.f32 %v430_v1, %v381_v63 }
  0xba   :  { %v479_v3 = vpop.f32.mrf.mxu2 }
  0xbc   :  { %v528_v4 = vpop.f32.mrf.mxu3  ;;  %v384_v5 = vpop.f32.mrf.mxu0 }
  0xbd   :  { %v5701_v8 = vadd.f32 %v528_v4, %v479_v3  ;;  %v4482_v3 = vld [vmem:[#allocation4 + $0x60] sm:$0xf]  ;;  %v5069_v4 = vld [vmem:[#allocation4 + $0x64] sm:$0xf0] }
  0xbe   :  { %v433_v9 = vpop.f32.mrf.mxu1  ;;  %v4483_v11 = vor.u32 %v5069_v4, %v4482_v3  ;;  %v4401_v4 = vmul.f32 -1.442695, %v5697_v0 }
  0xbf   :  { %v5703_v10 = vadd.f32 %v433_v9, %v384_v5  ;;  %771 = vmatmul.bf16.gmra.mxu0 %v5563_v14  ;;  %869 = vmatmul.bf16.gmra.mxu2 %v5563_v14  ;;  %v4546_v5 = vld [vmem:[#allocation4 + $0xe0] sm:$0xf]  ;;  %v4522_v14 = vld [vmem:[#allocation4 + $0xb0] sm:$0xf] }
  0xc0   :  { %1867 = vmatpush.bf16.msra.mxu0 %v4483_v11  ;;  %v4547_v13 = vor.u32 %v5085_v12, %v4546_v5 }
  0xc1   :  { %820 = vmatmul.bf16.gmra.mxu1 %v5565_v15  ;;  %918 = vmatmul.bf16.gmra.mxu3 %v5565_v15 }
  0xc2   :  { %v482_v18 = vpop.f32.mrf.mxu2  ;;  %1916 = vmatpush.bf16.msra.mxu1 %v4547_v13  ;;  %v4402_v13 = vmul.f32 -1.442695, %v5699_v2 }
  0xc4   :  { %v531_v19 = vpop.f32.mrf.mxu3  ;;  %v386_v20 = vpop.f32.mrf.mxu0 }
  0xc5   :  { %v5709_v22 = vadd.f32 %v531_v19, %v482_v18 }
  0xc6   :  { %v435_v23 = vpop.f32.mrf.mxu1 }
  0xc7   :  { %v5711_v24 = vadd.f32 %v435_v23, %v386_v20 }
  0xca   :  { %v484_v34 = vpop.f32.mrf.mxu2 }
  0xcc   :  { %v533_v35 = vpop.f32.mrf.mxu3  ;;  %v389_v36 = vpop.f32.mrf.mxu0 }
  0xcd   :  { %v5713_v39 = vadd.f32 %v533_v35, %v484_v34  ;;  %v4479_v34 = vor.u32 %v5066_v21, %v4476_v25  ;;  %v4543_v35 = vor.u32 %v5082_v30, %v4540_v31  ;;  %v5080_v21 = vld [vmem:[#allocation4 + $0xc4] sm:$0xf] }
  0xce   :  { %v438_v38 = vpop.f32.mrf.mxu1 }
  0xcf   :  { %776 = vmatmul.bf16.gmra.mxu0 %v5583_v32  ;;  %v5716_v40 = vadd.f32 %v438_v38, %v389_v36  ;;  %874 = vmatmul.bf16.gmra.mxu2 %v5583_v32 }
  0xd0   :  { %1966 = vmatpush.bf16.msra.mxu2 %v4479_v34  ;;  %2015 = vmatpush.bf16.msra.mxu3 %v4543_v35  ;;  %v4466_v35 = vld [vmem:[#allocation4 + $0x40] sm:$0xf] }
  0xd1   :  { %825 = vmatmul.bf16.gmra.mxu1 %v5585_v33  ;;  %923 = vmatmul.bf16.gmra.mxu3 %v5585_v33 }
  0xd2   :  { %v487_v41 = vpop.f32.mrf.mxu2 }
  0xd4   :  { %v536_v42 = vpop.f32.mrf.mxu3  ;;  %v391_v43 = vpop.f32.mrf.mxu0 }
  0xd5   :  { %v5721_v59 = vadd.f32 %v536_v42, %v487_v41 }
  0xd6   :  { %v440_v50 = vpop.f32.mrf.mxu1 }
  0xd7   :  { %v5723_v62 = vadd.f32 %v440_v50, %v391_v43  ;;  %v4400_v43 = vmul.f32 -1.442695, %v5691_v60  ;;  %v5067_v50 = vld [vmem:[#allocation4 + $0x54] sm:$0xf0] }
  0xd8   :  { %v4475_v58 = vor.u32 %v5067_v50, %v4474_v46  ;;  %v4404_v46 = vmul.f32 -1.442695, %v5703_v10 }
  0xd9   :  { %8662 = vst [vmem:[#allocation24_spill] sm:$0xff] %v5723_v62  ;;  %5191 = vpow2.f32 %v4400_v43  ;;  %v4410_v32 = vmul.f32 -1.442695, %v5723_v62 }
  0xda   :  { %v489_v61 = vpop.f32.mrf.mxu2  ;;  %1868 = vmatpush.bf16.msra.mxu0 %v4475_v58  ;;  %5193 = vpow2.f32 %v4401_v4 }
  0xdb   :  { %5195 = vpow2.f32 %v4402_v13 }
  0xdc   :  { %v538_v63 = vpop.f32.mrf.mxu3  ;;  %v394_v1 = vpop.f32.mrf.mxu0 }
  0xdd   :  { %v5726_v16 = vadd.f32 %v538_v63, %v489_v61  ;;  %v4538_v61 = vld [vmem:[#allocation4 + $0xd0] sm:$0xf]  ;;  %v5083_v63 = vld [vmem:[#allocation4 + $0xd4] sm:$0xf0] }
  0xde   :  { %v443_v9 = vpop.f32.mrf.mxu1 }
  0xdf   :  { %781 = vmatmul.bf16.gmra.mxu0 %v5603_v52  ;;  %8663 = vst [vmem:[#allocation25_spill] sm:$0xff] %v5726_v16  ;;  %v5728_v17 = vadd.f32 %v443_v9, %v394_v1  ;;  %879 = vmatmul.bf16.gmra.mxu2 %v5603_v52  ;;  %v4539_v1 = vor.u32 %v5083_v63, %v4538_v61  ;;  %v5192_v11 = vpop.eup %5191  ;;  %v4408_v52 = vmul.f32 -1.442695, %v5716_v40 }
  0xe0   :  { %v5757_v25 = vadd.f32 1.0, %v5192_v11 }
  0xe1   :  { %830 = vmatmul.bf16.gmra.mxu1 %v5605_v53  ;;  %928 = vmatmul.bf16.gmra.mxu3 %v5605_v53 }
  0xe2   :  { %v492_v18 = vpop.f32.mrf.mxu2  ;;  %1917 = vmatpush.bf16.msra.mxu1 %v4539_v1  ;;  %5197 = vrcp.f32 %v5757_v25  ;;  %vm1087_vm0 = vweird.f32 %v5757_v25 }
  0xe4   :  { %v541_v19 = vpop.f32.mrf.mxu3  ;;  %v396_v20 = vpop.f32.mrf.mxu0 }
  0xe5   :  { %v5733_v28 = vadd.f32 %v541_v19, %v492_v18  ;;  %v5064_v19 = vld [vmem:[#allocation4 + $0x44] sm:$0xf] }
  0xe6   :  { %v445_v23 = vpop.f32.mrf.mxu1 }
  0xe7   :  { %v5735_v29 = vadd.f32 %v445_v23, %v396_v20  ;;  %v4468_v20 = vld [vmem:[#allocation4 + $0x48] sm:$0xf0] }
  0xe8   :  { %v4532_v23 = vld [vmem:[#allocation4 + $0xc8] sm:$0xf0]  ;;  %v4471_v30 = vor.u32 %v5064_v19, %v4468_v20  ;;  %v4405_v20 = vmul.f32 -1.442695, %v5709_v22 }
  0xe9   :  { %v4535_v31 = vor.u32 %v5080_v21, %v4532_v23  ;;  %v5062_v21 = vld [vmem:[#allocation4 + $0x34] sm:$0xf] }
  0xea   :  { %v494_v36 = vpop.f32.mrf.mxu2  ;;  %1967 = vmatpush.bf16.msra.mxu2 %v4471_v30  ;;  %v4460_v30 = vld [vmem:[#allocation4 + $0x38] sm:$0xf0] }
  0xeb   :  { %2016 = vmatpush.bf16.msra.mxu3 %v4535_v31  ;;  %v5078_v31 = vld [vmem:[#allocation4 + $0xb4] sm:$0xf] }
  0xec   :  { %v543_v37 = vpop.f32.mrf.mxu3  ;;  %v399_v38 = vpop.f32.mrf.mxu0 }
  0xed   :  { %v5737_v42 = vadd.f32 %v543_v37, %v494_v36  ;;  %v5065_v36 = vld [vmem:[#allocation4 + $0x44] sm:$0xf0]  ;;  %v4403_v37 = vmul.f32 -1.442695, %v5701_v8 }
  0xee   :  { %v448_v41 = vpop.f32.mrf.mxu1  ;;  %v4467_v61 = vor.u32 %v5065_v36, %v4466_v35  ;;  %v4463_v35 = vor.u32 %v5062_v21, %v4460_v30  ;;  %v4524_v36 = vld [vmem:[#allocation4 + $0xb8] sm:$0xf0] }
  0xef   :  { %786 = vmatmul.bf16.gmra.mxu0 %v5623_v6  ;;  %884 = vmatmul.bf16.gmra.mxu2 %v5623_v6  ;;  %v5754_v18 = vadd.f32 %v448_v41, %v399_v38  ;;  %v4530_v38 = vld [vmem:[#allocation4 + $0xc0] sm:$0xf]  ;;  %v5081_v41 = vld [vmem:[#allocation4 + $0xc4] sm:$0xf0]  ;;  %5199 = vpow2.f32 %v4403_v37 }
  0xf0   :  { %1869 = vmatpush.bf16.msra.mxu0 %v4467_v61  ;;  %5201 = vpow2.f32 %v4404_v46  ;;  %1968 = vmatpush.bf16.msra.mxu2 %v4463_v35  ;;  %v4527_v61 = vor.u32 %v5078_v31, %v4524_v36 }
  0xf1   :  { %835 = vmatmul.bf16.gmra.mxu1 %v5625_v7  ;;  %933 = vmatmul.bf16.gmra.mxu3 %v5625_v7  ;;  %8665 = vst [vmem:[#allocation27_spill] sm:$0xff] %v5754_v18  ;;  %v4450_v18 = vld [vmem:[#allocation4 + $0x20] sm:$0xf] }
  0xf2   :  { %v497_v45 = vpop.f32.mrf.mxu2  ;;  %2017 = vmatpush.bf16.msra.mxu3 %v4527_v61 }
  0xf4   :  { %v546_v51 = vpop.f32.mrf.mxu3  ;;  %v5744_v54 = vpop.f32.mrf.mxu0 }
  0xf5   :  { %v5762_v34 = vadd.f32 %v546_v51, %v497_v45  ;;  %v5194_v45 = vpop.eup %5193  ;;  %v4531_v51 = vor.u32 %v5081_v41, %v4530_v38 }
  0xf6   :  { %v5746_v55 = vpop.f32.mrf.mxu1  ;;  %v5196_v4 = vpop.eup %5195  ;;  %v5775_v13 = vadd.f32 1.0, %v5194_v45 }
  0xf7   :  { %8666 = vst [vmem:[#allocation28_spill] sm:$0xff] %v5762_v34  ;;  %1918 = vmatpush.bf16.msra.mxu1 %v4531_v51  ;;  %v5777_v19 = vpop.eup %5197  ;;  %v5780_v23 = vadd.f32 1.0, %v5196_v4 }
  0xf8   :  { %v5200_v41 = vpop.eup %5199  ;;  %5203 = vrcp.f32 %v5775_v13  ;;  %vm1088_vm1 = vweird.f32 %v5777_v19  ;;  %vm1102_vm4 = vweird.f32 %v5775_v13 }
  0xf9   :  { %5205 = vpow2.f32 %v4405_v20  ;;  %v5796_v45 = vadd.f32 1.0, %v5200_v41  ;;  %v4407_v41 = vmul.f32 -1.442695, %v5713_v39  ;;  %vm5838_vm2 = vmor %vm1087_vm0, %vm1088_vm1  ;;  %vm1117_vm7 = vweird.f32 %v5780_v23 }
  0xfa   :  { %v5748_v3 = vpop.f32.mrf.mxu2  ;;  %5207 = vrcp.f32 %v5780_v23 }
  0xfb   :  { %vm1132_vm10 = vweird.f32 %v5796_v45 }
  0xfc   :  { %v5751_v5 = vpop.f32.mrf.mxu3  ;;  %v404_v9 = vpop.f32.mrf.mxu0 }
  0xfd   :  { %8664 = vst [vmem:[#allocation26_spill] sm:$0xff] %v5751_v5 }
  0xfe   :  { %v453_v12 = vpop.f32.mrf.mxu1 }
  0xff   :  { %791 = vmatmul.bf16.gmra.mxu0 %v5643_v26  ;;  %889 = vmatmul.bf16.gmra.mxu2 %v5643_v26  ;;  %v5771_v1 = vadd.f32 %v453_v12, %v404_v9  ;;  %v4406_v12 = vmul.f32 -1.442695, %v5711_v24 }
 0x101   :  { %840 = vmatmul.bf16.gmra.mxu1 %v5645_v27  ;;  %938 = vmatmul.bf16.gmra.mxu3 %v5645_v27  ;;  %8669 = vst [vmem:[#allocation31_spill] sm:$0xff] %v5771_v1  ;;  %5209 = vpow2.f32 %v4406_v12 }
 0x102   :  { %v502_v43 = vpop.f32.mrf.mxu2  ;;  %5211 = vrcp.f32 %v5796_v45 }
 0x104   :  { %v551_v50 = vpop.f32.mrf.mxu3  ;;  %v5767_v58 = vpop.f32.mrf.mxu0 }
 0x105   :  { %8667 = vst [vmem:[#allocation29_spill] sm:$0xff] %v5767_v58  ;;  %v5773_v11 = vadd.f32 %v551_v50, %v502_v43  ;;  %v1083_v43 = vmul.f32 %v5777_v19, %v5757_v25  ;;  %v5202_v50 = vpop.eup %5201 }
 0x106   :  { %v5769_v63 = vpop.f32.mrf.mxu1  ;;  %v5799_v4 = vadd.f32 1.0, %v5202_v50  ;;  %v5803_v20 = vpop.eup %5203 }
 0x107   :  { %8668 = vst [vmem:[#allocation30_spill] sm:$0xff] %v5769_v63  ;;  %v1084_v51 = vsub.f32 1.0, %v1083_v43  ;;  %v5206_v30 = vpop.eup %5205  ;;  %v1098_v61 = vmul.f32 %v5803_v20, %v5775_v13  ;;  %vm1103_vm5 = vweird.f32 %v5803_v20 }
 0x108   :  { %8670 = vst [vmem:[#allocation32_spill] sm:$0xff] %v5773_v11  ;;  %v5812_v35 = vpop.eup %5207  ;;  %5213 = vrcp.f32 %v5799_v4  ;;  %vm5915_vm11 = vmor %vm1102_vm4, %vm1103_vm5  ;;  %vm1147_vm14 = vweird.f32 %v5799_v4 }
 0x109   :  { %v1085_v36 = vmul.f32 %v5777_v19, %v1084_v51  ;;  %v5210_v50 = vpop.eup %5209  ;;  %v1091_v51 = vand.u32 2147483647, %v5757_v25  ;;  %v1113_v26 = vmul.f32 %v5812_v35, %v5780_v23  ;;  %5215 = vpow2.f32 %v4407_v41 }
 0x10a   :  { %v5782_v9 = vpop.f32.mrf.mxu2  ;;  %v5830_v7 = vadd.f32 1.0, %v5210_v50  ;;  %v5832_v6 = vpop.eup %5211  ;;  %v1099_v53 = vsub.f32 1.0, %v1098_v61  ;;  %v4409_v41 = vmul.f32 -1.442695, %v5721_v59  ;;  %v4458_v50 = vld [vmem:[#allocation4 + $0x30] sm:$0xf]  ;;  %vm1118_vm8 = vweird.f32 %v5812_v35 }
 0x10b   :  { %8671 = vst [vmem:[#allocation33_spill] sm:$0xff] %v5782_v9  ;;  %v1086_v27 = vadd.f32 %v5777_v19, %v1085_v36  ;;  %v1108_v36 = vand.u32 2147483648, %v5775_v13  ;;  %v5063_v61 = vld [vmem:[#allocation4 + $0x34] sm:$0xf0]  ;;  %v1128_v11 = vmul.f32 %v5832_v6, %v5796_v45  ;;  %vm1092_vm3 = vcmp.eq.f32.partialorder %v1091_v51, 8.507059e+37  ;;  %vm5944_vm12 = vmor %vm1117_vm7, %vm1118_vm8 }
 0x10c   :  { %v5785_v37 = vpop.f32.mrf.mxu3  ;;  %v5787_v38 = vpop.f32.mrf.mxu0  ;;  %vm1133_vm13 = vweird.f32 %v5832_v6 }
 0x10d   :  { %8672 = vst [vmem:[#allocation34_spill] sm:$0xff] %v5785_v37  ;;  %v1123_v37 = vand.u32 2147483648, %v5780_v23 }
 0x10e   :  { %v5792_v46 = vpop.f32.mrf.mxu1  ;;  %v5836_v33 = vpop.eup %5213 }
 0x10f   :  { %796 = vmatmul.bf16.gmra.mxu0 %v5663_v47  ;;  %894 = vmatmul.bf16.gmra.mxu2 %v5663_v47  ;;  %v5822_v47 = vadd.f32 1.0, %v5206_v30  ;;  %v1106_v30 = vand.u32 2147483647, %v5775_v13  ;;  %v5216_v63 = vpop.eup %5215  ;;  %vm1148_vm1 = vweird.f32 %v5836_v33 }
 0x111   :  { %845 = vmatmul.bf16.gmra.mxu1 %v5665_v48  ;;  %943 = vmatmul.bf16.gmra.mxu3 %v5665_v48  ;;  %v1093_v48 = vand.u32 2147483648, %v5757_v25  ;;  %5217 = vrcp.f32 %v5822_v47  ;;  %vm5873_vm6 = vcmp.eq.f32.partialorder %v1106_v30, 8.507059e+37  ;;  %vm1162_vm5 = vweird.f32 %v5822_v47 }
 0x112   :  { %v5805_v21 = vpop.f32.mrf.mxu2  ;;  %5219 = vrcp.f32 %v5830_v7 }
 0x113   :  { %v1094_v25 = vor.u32 1.1754944e-38, %v1093_v48  ;;  %v1090_v48 = vsel %vm5838_vm2, %v5777_v19, %v1086_v27  ;;  %5221 = vpow2.f32 %v4408_v52  ;;  %v4523_v27 = vor.u32 %v5079_v49, %v4522_v14  ;;  %vm5991_vm2 = vmor %vm1132_vm10, %vm1133_vm13 }
 0x114   :  { %v5808_v31 = vpop.f32.mrf.mxu3  ;;  %v5810_v12 = vpop.f32.mrf.mxu0  ;;  %5223 = vpow2.f32 %v4409_v41  ;;  %v5866_v19 = vor.u32 1.1754944e-38, %v1108_v36  ;;  %v5878_v14 = vor.u32 1.1754944e-38, %v1123_v37  ;;  %v1129_v36 = vsub.f32 1.0, %v1128_v11 }
 0x115   :  { %8673 = vst [vmem:[#allocation35_spill] sm:$0xff] %v5810_v12  ;;  %v1114_v12 = vsub.f32 1.0, %v1113_v26  ;;  %v4459_v26 = vor.u32 %v5063_v61, %v4458_v50  ;;  %v1095_v52 = vsel %vm1092_vm3, %v1094_v25, %v1090_v48  ;;  %1919 = vmatpush.bf16.msra.mxu1 %v4523_v27  ;;  %v5881_v61 = vadd.f32 1.0, %v5216_v63  ;;  %v5060_v25 = vld [vmem:[#allocation4 + $0x24] sm:$0xf]  ;;  %vm6005_vm3 = vmor %vm1147_vm14, %vm1148_vm1 }
 0x116   :  { %v5817_v43 = vpop.f32.mrf.mxu1  ;;  %5225 = vpow2.f32 %v4410_v32  ;;  %v4411_v37 = vmul.f32 -1.442695, %v5726_v16  ;;  %v5902_v11 = vadd.f32 %v5792_v46, %v5787_v38  ;;  %v4452_v32 = vld [vmem:[#allocation4 + $0x28] sm:$0xf0]  ;;  %v5909_v1 = vmul.f32 %v1095_v52, %v5691_v60 }
 0x117   :  { %8674 = vst [vmem:[#allocation36_spill] sm:$0xff] %v5817_v43  ;;  %v5870_v58 = vpop.eup %5217  ;;  %v1115_v49 = vmul.f32 %v5812_v35, %v1114_v12  ;;  %1870 = vmatpush.bf16.msra.mxu0 %v4459_v26  ;;  %v1136_v12 = vand.u32 2147483647, %v5796_v45  ;;  %v5076_v26 = vld [vmem:[#allocation4 + $0xa4] sm:$0xf]  ;;  %v1138_v46 = vand.u32 2147483648, %v5796_v45  ;;  %v1130_v52 = vmul.f32 %v5832_v6, %v1129_v36 }
 0x118   :  { %v5885_v30 = vpop.eup %5219  ;;  %v1158_v63 = vmul.f32 %v5870_v58, %v5822_v47  ;;  %8683 = vst [vmem:[#allocation39_spill] sm:$0xff] %v5902_v11  ;;  %v4516_v27 = vld [vmem:[#allocation4 + $0xa8] sm:$0xf0]  ;;  %v1151_v11 = vand.u32 2147483647, %v5799_v4  ;;  %5227 = vrcp.f32 %v5881_v61  ;;  %v5934_v34 = vadd.f32 %v5808_v31, %v5805_v21 }
 0x119   :  { %8685 = vst [vmem:[#allocation41_spill] sm:$0xff] %v5909_v1  ;;  %v1116_v38 = vadd.f32 %v5812_v35, %v1115_v49  ;;  %v4455_v1 = vor.u32 %v5060_v25, %v4452_v32  ;;  %v4519_v49 = vor.u32 %v5076_v26, %v4516_v27  ;;  %v1173_v16 = vmul.f32 %v5885_v30, %v5830_v7  ;;  %v5077_v36 = vld [vmem:[#allocation4 + $0xa4] sm:$0xf0] }
 0x11a   :  { %v5845_v15 = vpop.f32.mrf.mxu2  ;;  %8689 = vst [vmem:[#allocation43_spill] sm:$0xff] %v5934_v34  ;;  %v1159_v5 = vsub.f32 1.0, %v1158_v63  ;;  %5229 = vpow2.f32 %v4411_v37  ;;  %v1139_v21 = vor.u32 1.1754944e-38, %v1138_v46  ;;  %v1153_v31 = vand.u32 2147483648, %v5799_v4 }
 0x11b   :  { %8677 = vst [vmem:[#allocation37_spill] sm:$0xff] %v5845_v15  ;;  %v1100_v15 = vmul.f32 %v5803_v20, %v1099_v53  ;;  %v1121_v53 = vand.u32 2147483647, %v5780_v23  ;;  %1969 = vmatpush.bf16.msra.mxu2 %v4455_v1  ;;  %2018 = vmatpush.bf16.msra.mxu3 %v4519_v49  ;;  %v1120_v23 = vsel %vm5944_vm12, %v5812_v35, %v1116_v38  ;;  %vm5958_vm15 = vcmp.eq.f32.partialorder %v1136_v12, 8.507059e+37 }
 0x11c   :  { %v5847_v44 = vpop.f32.mrf.mxu3  ;;  %v5849_v43 = vpop.f32.mrf.mxu0  ;;  %vm5962_vm0 = vcmp.eq.f32.partialorder %v1151_v11, 8.507059e+37  ;;  %v1160_v12 = vmul.f32 %v5870_v58, %v1159_v5  ;;  %v1174_v27 = vsub.f32 1.0, %v1173_v16  ;;  %v1168_v16 = vand.u32 2147483648, %v5822_v47 }
 0x11d   :  { %8678 = vst [vmem:[#allocation38_spill] sm:$0xff] %v5847_v44  ;;  %v1143_v44 = vmul.f32 %v5836_v33, %v5799_v4  ;;  %v1101_v51 = vadd.f32 %v5803_v20, %v1100_v15  ;;  %v5222_v15 = vpop.eup %5221  ;;  %vm5893_vm9 = vcmp.eq.f32.partialorder %v1121_v53, 8.507059e+37  ;;  %vm1163_vm4 = vweird.f32 %v5870_v58  ;;  %v5074_v4 = vld [vmem:[#allocation4 + $0x94] sm:$0xf] }
 0x11e   :  { %v5856_v9 = vpop.f32.mrf.mxu1  ;;  %v5224_v53 = vpop.eup %5223  ;;  %vm6050_vm7 = vmor %vm1162_vm5, %vm1163_vm4  ;;  %vm1178_vm8 = vweird.f32 %v5885_v30  ;;  %v1196_v45 = vand.u32 2147483647, %v5881_v61  ;;  %vm1192_vm12 = vweird.f32 %v5881_v61 }
 0x11f   :  { %801 = vmatmul.bf16.gmra.mxu0 %v5683_v56  ;;  %v1144_v50 = vsub.f32 1.0, %v1143_v44  ;;  %899 = vmatmul.bf16.gmra.mxu2 %v5683_v56  ;;  %v1105_v60 = vsel %vm5915_vm11, %v5803_v20, %v1101_v51  ;;  %v5938_v20 = vadd.f32 1.0, %v5224_v53  ;;  %v4514_v51 = vld [vmem:[#allocation4 + $0xa0] sm:$0xf] }
 0x120   :  { %v1110_v37 = vsel %vm5873_vm6, %v5866_v19, %v1105_v60  ;;  %v4515_v19 = vor.u32 %v5077_v36, %v4514_v51  ;;  %v1125_v60 = vsel %vm5893_vm9, %v5878_v14, %v1120_v23  ;;  %v1166_v14 = vand.u32 2147483647, %v5822_v47 }
 0x121   :  { %850 = vmatmul.bf16.gmra.mxu1 %v5685_v57  ;;  %948 = vmatmul.bf16.gmra.mxu3 %v5685_v57  ;;  %v1145_v13 = vmul.f32 %v5836_v33, %v1144_v50  ;;  %v5226_v50 = vpop.eup %5225  ;;  %v5982_v46 = vmul.f32 %v1110_v37, %v5697_v0  ;;  %v6013_v51 = vadd.f32 %v5856_v9, %v5849_v43  ;;  %vm1177_vm9 = vweird.f32 %v5830_v7 }
 0x122   :  { %v5890_v48 = vpop.f32.mrf.mxu2  ;;  %v5971_v35 = vpop.eup %5227  ;;  %v5975_v11 = vadd.f32 1.0, %v5226_v50  ;;  %1920 = vmatpush.bf16.msra.mxu1 %v4515_v19  ;;  %v4508_v50 = vld [vmem:[#allocation4 + $0x98] sm:$0xf0]  ;;  %v1175_v37 = vmul.f32 %v5885_v30, %v1174_v27  ;;  %vm6038_vm6 = vcmp.eq.f32.partialorder %v1166_v14, 8.507059e+37  ;;  %vm6092_vm11 = vmor %vm1177_vm9, %vm1178_vm8  ;;  %vm6108_vm13 = vcmp.eq.f32.partialorder %v1196_v45, 8.507059e+37 }
 0x123   :  { %v1146_v26 = vadd.f32 %v5836_v33, %v1145_v13  ;;  %v4412_v13 = vmul.f32 -1.442695, %v5728_v17  ;;  %v5230_v0 = vpop.eup %5229  ;;  %8702 = vst [vmem:[#allocation46_spill] sm:$0xff] %v6013_v51  ;;  %v1188_v9 = vmul.f32 %v5971_v35, %v5881_v61  ;;  %v4511_v23 = vor.u32 %v5074_v4, %v4508_v50  ;;  %v5059_v4 = vld [vmem:[#allocation4 + $0x14] sm:$0xf0] }
 0x124   :  { %v5904_v57 = vpop.f32.mrf.mxu3  ;;  %v5906_v56 = vpop.f32.mrf.mxu0  ;;  %v4415_v50 = vmul.f32 -1.442695, %v5737_v42  ;;  %vm1193_vm14 = vweird.f32 %v5971_v35  ;;  %vm1222_vm4 = vweird.f32 %v5938_v20 }
 0x125   :  { %8684 = vst [vmem:[#allocation40_spill] sm:$0xff] %v5906_v56  ;;  %v5930_v56 = vadd.f32 1.0, %v5222_v15  ;;  %v1131_v15 = vadd.f32 %v5832_v6, %v1130_v52  ;;  %v1154_v52 = vor.u32 1.1754944e-38, %v1153_v31  ;;  %v6021_v25 = vadd.f32 %v5904_v57, %v5890_v48  ;;  %2019 = vmatpush.bf16.msra.mxu3 %v4511_v23 }
 0x126   :  { %v5922_v62 = vpop.f32.mrf.mxu1  ;;  %v1161_v31 = vadd.f32 %v5870_v58, %v1160_v12  ;;  %v6036_v48 = vmul.f32 %v1125_v60, %v5699_v2  ;;  %v1169_v2 = vor.u32 1.1754944e-38, %v1168_v16  ;;  %v1189_v32 = vsub.f32 1.0, %v1188_v9 }
 0x127   :  { %8688 = vst [vmem:[#allocation42_spill] sm:$0xff] %v5922_v62  ;;  %v5061_v62 = vld [vmem:[#allocation4 + $0x24] sm:$0xf0]  ;;  %5231 = vrcp.f32 %v5930_v56  ;;  %v1135_v44 = vsel %vm5991_vm2, %v5832_v6, %v1131_v15  ;;  %v1150_v6 = vsel %vm6005_vm3, %v5836_v33, %v1146_v26  ;;  %v6031_v33 = vadd.f32 1.0, %v5230_v0 }
 0x128   :  { %v4451_v1 = vor.u32 %v5061_v62, %v4450_v18  ;;  %5233 = vrcp.f32 %v5938_v20  ;;  %v5058_v62 = vld [vmem:[#allocation4 + $0x14] sm:$0xf]  ;;  %v4444_v18 = vld [vmem:[#allocation4 + $0x18] sm:$0xf0]  ;;  %8703 = vst [vmem:[#allocation47_spill] sm:$0xff] %v6021_v25  ;;  %v1183_v26 = vand.u32 2147483648, %v5830_v7  ;;  %v1140_v47 = vsel %vm5958_vm15, %v1139_v21, %v1135_v44 }
 0x129   :  { %v4447_v36 = vor.u32 %v5058_v62, %v4444_v18  ;;  %5235 = vrcp.f32 %v5975_v11  ;;  %v1155_v19 = vsel %vm5962_vm0, %v1154_v52, %v1150_v6  ;;  %v1165_v63 = vsel %vm6050_vm7, %v5870_v58, %v1161_v31  ;;  %vm6145_vm0 = vmor %vm1192_vm12, %vm1193_vm14 }
 0x12a   :  { %v5969_v41 = vpop.f32.mrf.mxu2  ;;  %1871 = vmatpush.bf16.msra.mxu0 %v4451_v1  ;;  %5237 = vpow2.f32 %v4412_v13  ;;  %v1181_v1 = vand.u32 2147483647, %v5830_v7  ;;  %v1176_v21 = vadd.f32 %v5885_v30, %v1175_v37  ;;  %v4414_v52 = vmul.f32 -1.442695, %v5735_v29 }
 0x12b   :  { %8696 = vst [vmem:[#allocation44_spill] sm:$0xff] %v5969_v41  ;;  %1970 = vmatpush.bf16.msra.mxu2 %v4447_v36  ;;  %5239 = vrcp.f32 %v6031_v33  ;;  %v1184_v44 = vor.u32 1.1754944e-38, %v1183_v26  ;;  %v4413_v7 = vmul.f32 -1.442695, %v5733_v28  ;;  %v6083_v16 = vmul.f32 %v1140_v47, %v5701_v8 }
 0x12c   :  { %v5977_v53 = vpop.f32.mrf.mxu3  ;;  %v5979_v38 = vpop.f32.mrf.mxu0  ;;  %vm6076_vm10 = vcmp.eq.f32.partialorder %v1181_v1, 8.507059e+37  ;;  %v6086_v6 = vmul.f32 %v1155_v19, %v5703_v10  ;;  %v1170_v36 = vsel %vm6038_vm6, %v1169_v2, %v1165_v63  ;;  %v1180_v31 = vsel %vm6092_vm11, %v5885_v30, %v1176_v21 }
 0x12d   :  { %8697 = vst [vmem:[#allocation45_spill] sm:$0xff] %v5977_v53  ;;  %v6028_v43 = vpop.eup %5231  ;;  %v1190_v8 = vmul.f32 %v5971_v35, %v1189_v32  ;;  %v1198_v37 = vand.u32 2147483648, %v5881_v61  ;;  %5241 = vpow2.f32 %v4414_v52  ;;  %v6106_v15 = vmul.f32 %v1170_v36, %v5709_v22 }
 0x12e   :  { %v5996_v49 = vpop.f32.mrf.mxu1  ;;  %v6033_v57 = vpop.eup %5233  ;;  %v1203_v62 = vmul.f32 %v6028_v43, %v5930_v56  ;;  %5243 = vpow2.f32 %v4413_v7  ;;  %v1185_v47 = vsel %vm6076_vm10, %v1184_v44, %v1180_v31  ;;  %v1211_v19 = vand.u32 2147483647, %v5930_v56 }
 0x12f   :  { %v1218_v5 = vmul.f32 %v6033_v57, %v5938_v20  ;;  %v6074_v13 = vpop.eup %5235  ;;  %v1213_v12 = vand.u32 2147483648, %v5930_v56  ;;  %5245 = vpow2.f32 %v4415_v50  ;;  %v1191_v22 = vadd.f32 %v5971_v35, %v1190_v8 }
 0x130   :  { %v5238_v14 = vpop.eup %5237  ;;  %v1204_v10 = vsub.f32 1.0, %v1203_v62  ;;  %v1233_v23 = vmul.f32 %v6074_v13, %v5975_v11  ;;  %v1226_v21 = vand.u32 2147483647, %v5938_v20  ;;  %vm1207_vm15 = vweird.f32 %v5930_v56 }
 0x131   :  { %v1219_v9 = vsub.f32 1.0, %v1218_v5  ;;  %v6112_v30 = vadd.f32 1.0, %v5238_v14  ;;  %v6114_v26 = vpop.eup %5239  ;;  %v1199_v5 = vor.u32 1.1754944e-38, %v1198_v37  ;;  %v6135_v45 = vmul.f32 %v1185_v47, %v5711_v24 }
 0x132   :  { %v6055_v27 = vpop.f32.mrf.mxu2  ;;  %v1205_v63 = vmul.f32 %v6028_v43, %v1204_v10  ;;  %v1234_v0 = vsub.f32 1.0, %v1233_v23  ;;  %v1228_v7 = vand.u32 2147483648, %v5938_v20  ;;  %v1248_v14 = vmul.f32 %v6114_v26, %v6031_v33  ;;  %v4442_v23 = vld [vmem:[#allocation4 + $0x10] sm:$0xf] }
 0x133   :  { %v1220_v52 = vmul.f32 %v6033_v57, %v1219_v9  ;;  %5247 = vrcp.f32 %v6112_v30  ;;  %v5242_v36 = vpop.eup %5241  ;;  %vm6149_vm1 = vcmp.eq.f32.partialorder %v1211_v19, 8.507059e+37  ;;  %v1214_v24 = vor.u32 1.1754944e-38, %v1213_v12 }
 0x134   :  { %v6063_v18 = vpop.f32.mrf.mxu3  ;;  %v6065_v60 = vpop.f32.mrf.mxu0  ;;  %v1241_v31 = vand.u32 2147483647, %v5975_v11  ;;  %v1243_v8 = vand.u32 2147483648, %v5975_v11  ;;  %v1195_v37 = vsel %vm6145_vm0, %v5971_v35, %v1191_v22  ;;  %v1206_v61 = vadd.f32 %v6028_v43, %v1205_v63  ;;  %v4506_v35 = vld [vmem:[#allocation4 + $0x90] sm:$0xf] }
 0x135   :  { %v5244_v10 = vpop.eup %5243  ;;  %vm1208_vm2 = vweird.f32 %v6028_v43  ;;  %vm6160_vm3 = vcmp.eq.f32.partialorder %v1226_v21, 8.507059e+37  ;;  %v1221_v19 = vadd.f32 %v6033_v57, %v1220_v52  ;;  %vm1223_vm5 = vweird.f32 %v6033_v57  ;;  %v5075_v22 = vld [vmem:[#allocation4 + $0x94] sm:$0xf0] }
 0x136   :  { %v6072_v58 = vpop.f32.mrf.mxu1  ;;  %v5246_v47 = vpop.eup %5245  ;;  %v1235_v12 = vmul.f32 %v6074_v13, %v1234_v0  ;;  %v1229_v63 = vor.u32 1.1754944e-38, %v1228_v7  ;;  %vm1237_vm6 = vweird.f32 %v5975_v11  ;;  %v1249_v21 = vsub.f32 1.0, %v1248_v14  ;;  %vm6177_vm7 = vmor %vm1207_vm15, %vm1208_vm2 }
 0x137   :  { %v6169_v25 = vadd.f32 1.0, %v5242_v36  ;;  %v1200_v51 = vsel %vm6108_vm13, %v1199_v5, %v1195_v37  ;;  %vm6181_vm8 = vcmp.eq.f32.partialorder %v1241_v31, 8.507059e+37  ;;  %v1244_v7 = vor.u32 1.1754944e-38, %v1243_v8  ;;  %vm6199_vm9 = vmor %vm1222_vm4, %vm1223_vm5  ;;  %v4500_v5 = vld [vmem:[#allocation4 + $0x88] sm:$0xf0] }
 0x138   :  { %v1258_v14 = vand.u32 2147483648, %v6031_v33  ;;  %v6186_v36 = vadd.f32 1.0, %v5244_v10  ;;  %v1210_v56 = vsel %vm6177_vm7, %v6028_v43, %v1206_v61  ;;  %v6203_v31 = vadd.f32 1.0, %v5246_v47 }
 0x139   :  { %v6190_v1 = vpop.eup %5247  ;;  %v4443_v8 = vor.u32 %v5059_v4, %v4442_v23  ;;  %v4507_v10 = vor.u32 %v5075_v22, %v4506_v35  ;;  %v1225_v43 = vsel %vm6199_vm9, %v6033_v57, %v1221_v19  ;;  %v1236_v61 = vadd.f32 %v6074_v13, %v1235_v12  ;;  %v5056_v4 = vld [vmem:[#allocation4 + $0x4] sm:$0xf]  ;;  %v4436_v35 = vld [vmem:[#allocation4 + $0x8] sm:$0xf0] }
 0x13a   :  { %v6120_v2 = vpop.f32.mrf.mxu2  ;;  %vm1238_vm10 = vweird.f32 %v6074_v13  ;;  %v1273_v20 = vand.u32 2147483648, %v6112_v30  ;;  %v1250_v47 = vmul.f32 %v6114_v26, %v1249_v21  ;;  %vm1252_vm11 = vweird.f32 %v6031_v33 }
 0x13b   :  { %v1256_v23 = vand.u32 2147483647, %v6031_v33  ;;  %5249 = vrcp.f32 %v6169_v25  ;;  %1872 = vmatpush.bf16.msra.mxu0 %v4443_v8  ;;  %1921 = vmatpush.bf16.msra.mxu1 %v4507_v10  ;;  %v1215_v57 = vsel %vm6149_vm1, %v1214_v24, %v1210_v56  ;;  %v6225_v19 = vmul.f32 %v6190_v1, %v6112_v30  ;;  %vm6238_vm12 = vmor %vm1237_vm6, %vm1238_vm10  ;;  %v5072_v56 = vld [vmem:[#allocation4 + $0x84] sm:$0xf] }
 0x13c   :  { %v6126_v32 = vpop.f32.mrf.mxu3  ;;  %v6128_v62 = vpop.f32.mrf.mxu0  ;;  %5251 = vrcp.f32 %v6186_v36  ;;  %v1288_v12 = vand.u32 2147483648, %v6186_v36  ;;  %v6230_v22 = vmul.f32 %v1200_v51, %v5713_v39  ;;  %v1230_v21 = vsel %vm6160_vm3, %v1229_v63, %v1225_v43  ;;  %v4434_v63 = vld [vmem:[#allocation4] sm:$0xf] }
 0x13d   :  { %5253 = vrcp.f32 %v6203_v31  ;;  %v1240_v39 = vsel %vm6238_vm12, %v6074_v13, %v1236_v61  ;;  %v6247_v51 = vor.u32 1.1754944e-38, %v1258_v14  ;;  %v6249_v9 = vor.u32 1.1754944e-38, %v1273_v20  ;;  %v5057_v13 = vld [vmem:[#allocation4 + $0x4] sm:$0xf0]  ;;  %v4498_v14 = vld [vmem:[#allocation4 + $0x80] sm:$0xf] }
 0x13e   :  { %v6132_v44 = vpop.f32.mrf.mxu1  ;;  %v6253_v8 = vmul.f32 %v1215_v57, %v5716_v40  ;;  %v1251_v10 = vadd.f32 %v6114_v26, %v1250_v47  ;;  %vm1253_vm13 = vweird.f32 %v6114_v26  ;;  %vm6257_vm14 = vcmp.eq.f32.partialorder %v1256_v23, 8.507059e+37  ;;  %v5073_v61 = vld [vmem:[#allocation4 + $0x84] sm:$0xf0] }
 0x13f   :  { %v4439_v50 = vor.u32 %v5056_v4, %v4436_v35  ;;  %v6262_v20 = vmul.f32 %v1230_v21, %v5721_v59  ;;  %v1264_v11 = vsub.f32 1.0, %v6225_v19  ;;  %v6265_v24 = vor.u32 1.1754944e-38, %v1288_v12  ;;  %v5102_v19 = vld [vmem:[#allocation2 + $0x1cc] sm:$0xf]  ;;  %vm6288_vm15 = vmor %vm1252_vm11, %vm1253_vm13  ;;  %v8732_v4 = vld [vmem:[#allocation26_spill] sm:$0xff] }
 0x140   :  { %v4503_v40 = vor.u32 %v5072_v56, %v4500_v5  ;;  %v1245_v23 = vsel %vm6181_vm8, %v1244_v7, %v1240_v39  ;;  %v817_v35 = vadd.f32 %v5996_v49, %v5979_v38  ;;  %v915_v59 = vadd.f32 %v6063_v18, %v6055_v27  ;;  %v4620_v12 = vld [vmem:[#allocation2 + $0x1e8] sm:$0xf0] }
 0x141   :  { %v6269_v47 = vpop.eup %5249  ;;  %1971 = vmatpush.bf16.msra.mxu2 %v4439_v50  ;;  %v6294_v38 = vadd.f32 %v5746_v55, %v5744_v54  ;;  %v819_v49 = vadd.f32 %v6072_v58, %v6065_v60  ;;  %v4435_v27 = vor.u32 %v5057_v13, %v4434_v63  ;;  %v4499_v18 = vor.u32 %v5073_v61, %v4498_v14  ;;  %v8733_v58 = vld [vmem:[#allocation27_spill] sm:$0xff]  ;;  %v4684_v14 = vld [vmem:[#allocation2 + $0x3e8] sm:$0xf0]  ;;  %v8734_v61 = vld [vmem:[#allocation28_spill] sm:$0xff] }
 0x142   :  { %v6188_v53 = vpop.f32.mrf.mxu2  ;;  %v6282_v5 = vpop.eup %5251  ;;  %2020 = vmatpush.bf16.msra.mxu3 %v4503_v40  ;;  %v1255_v33 = vsel %vm6288_vm15, %v6114_v26, %v1251_v10  ;;  %v1303_v50 = vand.u32 2147483648, %v6169_v25  ;;  %v6308_v54 = vadd.f32 %v8732_v4, %v5748_v3  ;;  %v917_v55 = vadd.f32 %v6126_v32, %v6120_v2  ;;  %v5118_v10 = vld [vmem:[#allocation2 + $0x3cc] sm:$0xf]  ;;  %v8736_v32 = vld [vmem:[#allocation24_spill] sm:$0xff] }
 0x143   :  { %v6300_v39 = vpop.eup %5253  ;;  %v6314_v60 = vmul.f32 %v6269_v47, %v6169_v25  ;;  %v4416_v63 = vmul.f32 -1.442695, %v8733_v58  ;;  %v1596_v13 = vmul.f32 %v6036_v48, %v819_v49  ;;  %1873 = vmatpush.bf16.msra.mxu0 %v4435_v27  ;;  %1922 = vmatpush.bf16.msra.mxu1 %v4499_v18  ;;  %v4623_v26 = vor.u32 %v5102_v19, %v4620_v12  ;;  %v8735_v3 = vld [vmem:[#allocation41_spill] sm:$0xff] }
 0x144   :  { %v6205_v37 = vpop.f32.mrf.mxu3  ;;  %v6207_v41 = vpop.f32.mrf.mxu0  ;;  %v4417_v40 = vmul.f32 -1.442695, %v8734_v61  ;;  %v1594_v4 = vmul.f32 %v8735_v3, %v817_v35  ;;  %v1595_v0 = vmul.f32 %v5982_v46, %v915_v59  ;;  %v1597_v2 = vmul.f32 %v6083_v16, %v917_v55  ;;  %v4618_v12 = vld [vmem:[#allocation2 + $0x1c8] sm:$0xf] }
 0x145   :  { %v6323_v34 = vmul.f32 %v1245_v23, %v8736_v32  ;;  %v6327_v58 = vmul.f32 %v6282_v5, %v6186_v36  ;;  %v6331_v48 = vmul.f32 %v6300_v39, %v6203_v31  ;;  %v4418_v19 = vmul.f32 -1.442695, %v6294_v38  ;;  %2416 = vmatpush.bf16.msrb.mxu2 %v4623_v26  ;;  %v5103_v35 = vld [vmem:[#allocation2 + $0x1e4] sm:$0xf0] }
 0x146   :  { %v6215_v52 = vpop.f32.mrf.mxu1  ;;  %vm1267_vm0 = vweird.f32 %v6112_v30  ;;  %vm1268_vm1 = vweird.f32 %v6190_v1  ;;  %v1658_v46 = vpack.c.bf16 %v1596_v13, %v1594_v4  ;;  %v1659_v16 = vpack.c.bf16 %v1597_v2, %v1595_v0  ;;  %v4682_v13 = vld [vmem:[#allocation2 + $0x3c8] sm:$0xf]  ;;  %v4676_v4 = vld [vmem:[#allocation2 + $0x3a8] sm:$0xf0] }
 0x147   :  { %v822_v23 = vadd.f32 %v6132_v44, %v6128_v62  ;;  %v4687_v59 = vor.u32 %v5118_v10, %v4684_v14  ;;  %v1260_v49 = vsel %vm6257_vm14, %v6247_v51, %v1255_v33  ;;  %v1265_v27 = vmul.f32 %v6190_v1, %v1264_v11  ;;  %v5119_v10 = vld [vmem:[#allocation2 + $0x3e4] sm:$0xf0]  ;;  %v5116_v14 = vld [vmem:[#allocation2 + $0x38c] sm:$0xf]  ;;  %vm6397_vm8 = vmor %vm1267_vm0, %vm1268_vm1 }
 0x148   :  { %5255 = vpow2.f32 %v4416_v63  ;;  %v4419_v18 = vmul.f32 -1.442695, %v6308_v54  ;;  %v1294_v26 = vsub.f32 1.0, %v6314_v60  ;;  %v6344_v3 = vor.u32 1.1754944e-38, %v1303_v50  ;;  %1874 = vmatmul.bf16.vlgmr.msra.gmra.mxu0 %v1658_v46  ;;  %1972 = vmatmul.bf16.vlgmr.msra.gmra.mxu2 %v1658_v46  ;;  %v5100_v60 = vld [vmem:[#allocation2 + $0x18c] sm:$0xf] }
 0x149   :  { %v824_v62 = vadd.f32 %v6215_v52, %v6207_v41  ;;  %v4619_v44 = vor.u32 %v5103_v35, %v4618_v12  ;;  %v1279_v11 = vsub.f32 1.0, %v6327_v58  ;;  %v1309_v33 = vsub.f32 1.0, %v6331_v48  ;;  %1923 = vmatmul.bf16.vlgmr.msra.gmra.mxu1 %v1659_v16  ;;  %2021 = vmatmul.bf16.vlgmr.msra.gmra.mxu3 %v1659_v16  ;;  %v4612_v58 = vld [vmem:[#allocation2 + $0x1a8] sm:$0xf0]  ;;  %v5101_v32 = vld [vmem:[#allocation2 + $0x1a4] sm:$0xf0] }
 0x14a   :  { %v6267_v57 = vpop.f32.mrf.mxu2  ;;  %5257 = vpow2.f32 %v4417_v40  ;;  %v920_v50 = vadd.f32 %v6205_v37, %v6188_v53  ;;  %vm1297_vm2 = vweird.f32 %v6169_v25  ;;  %v1598_v41 = vmul.f32 %v6086_v6, %v822_v23  ;;  %2465 = vmatpush.bf16.msrb.mxu3 %v4687_v59  ;;  %v8737_v40 = vld [vmem:[#allocation25_spill] sm:$0xff] }
 0x14b   :  { %5259 = vpow2.f32 %v4418_v19  ;;  %v1600_v52 = vmul.f32 %v6135_v45, %v824_v62  ;;  %2318 = vmatpush.bf16.msrb.mxu0 %v4619_v44  ;;  %v6356_v0 = vmul.f32 %v1260_v49, %v8737_v40  ;;  %v4683_v2 = vor.u32 %v5119_v10, %v4682_v13  ;;  %v4610_v37 = vld [vmem:[#allocation2 + $0x188] sm:$0xf]  ;;  %v5098_v16 = vld [vmem:[#allocation2 + $0x14c] sm:$0xf] }
 0x14c   :  { %v6278_v21 = vpop.f32.mrf.mxu3  ;;  %v6280_v56 = vpop.f32.mrf.mxu0  ;;  %5261 = vpow2.f32 %v4419_v18  ;;  %v4674_v19 = vld [vmem:[#allocation2 + $0x388] sm:$0xf]  ;;  %v6361_v6 = vadd.f32 %v6190_v1, %v1265_v27  ;;  %vm1283_vm3 = vweird.f32 %v6282_v5  ;;  %v1295_v45 = vmul.f32 %v6269_v47, %v1294_v26  ;;  %v4604_v23 = vld [vmem:[#allocation2 + $0x168] sm:$0xf0] }
 0x14d   :  { %v922_v53 = vadd.f32 %v6278_v21, %v6267_v57  ;;  %v6365_v12 = vpack.c.bf16 %v1600_v52, %v1598_v41  ;;  %v5117_v46 = vld [vmem:[#allocation2 + $0x3a4] sm:$0xf0]  ;;  %v8738_v57 = vand.u32 2147483647, %v6112_v30  ;;  %v1599_v49 = vmul.f32 %v6106_v15, %v920_v50  ;;  %2367 = vmatpush.bf16.msrb.mxu1 %v4683_v2  ;;  %v5114_v62 = vld [vmem:[#allocation2 + $0x34c] sm:$0xf] }
 0x14e   :  { %v6298_v7 = vpop.f32.mrf.mxu1  ;;  %v5256_v59 = vpop.eup %5255  ;;  %v4615_v18 = vor.u32 %v5100_v60, %v4612_v58  ;;  %v4679_v26 = vor.u32 %v5116_v14, %v4676_v4  ;;  %vm1282_vm5 = vweird.f32 %v6186_v36  ;;  %v4611_v41 = vor.u32 %v5101_v32, %v4610_v37  ;;  %v4668_v15 = vld [vmem:[#allocation2 + $0x368] sm:$0xf0]  ;;  %v4602_v50 = vld [vmem:[#allocation2 + $0x148] sm:$0xf] }
 0x14f   :  { %v827_v35 = vadd.f32 %v6298_v7, %v6280_v56  ;;  %vm6371_vm4 = vcmp.eq.f32.partialorder %v8738_v57, 8.507059e+37  ;;  %v1601_v27 = vmul.f32 %v6230_v22, %v922_v53  ;;  %v1280_v56 = vmul.f32 %v6282_v5, %v1279_v11  ;;  %v5099_v52 = vld [vmem:[#allocation2 + $0x164] sm:$0xf0]  ;;  %vm6455_vm13 = vmor %vm1282_vm5, %vm1283_vm3 }
 0x150   :  { %v8741_v7 = vand.u32 2147483647, %v6169_v25  ;;  %v5258_v22 = vpop.eup %5257  ;;  %vm1298_vm7 = vweird.f32 %v6269_v47  ;;  %2417 = vmatpush.bf16.msrb.mxu2 %v4615_v18  ;;  %2466 = vmatpush.bf16.msrb.mxu3 %v4679_v26  ;;  %v4675_v11 = vor.u32 %v5117_v46, %v4674_v19  ;;  %v4607_v14 = vor.u32 %v5098_v16, %v4604_v23  ;;  %v4666_v4 = vld [vmem:[#allocation2 + $0x348] sm:$0xf] }
 0x151   :  { %v6386_v60 = vpack.c.bf16 %v1601_v27, %v1599_v49  ;;  %v5115_v40 = vld [vmem:[#allocation2 + $0x364] sm:$0xf0]  ;;  %v5260_v2 = vpop.eup %5259  ;;  %v1602_v53 = vmul.f32 %v6253_v8, %v827_v35  ;;  %2319 = vmatpush.bf16.msrb.mxu0 %v4611_v41  ;;  %v4671_v23 = vor.u32 %v5114_v62, %v4668_v15  ;;  %v1270_v8 = vsel %vm6397_vm8, %v6190_v1, %v6361_v6  ;;  %vm6415_vm9 = vmor %vm1297_vm2, %vm1298_vm7  ;;  %v8753_v62 = vld [vmem:[#allocation30_spill] sm:$0xff] }
 0x152   :  { %v875_v55 = vpop.f32.mrf.mxu2  ;;  %vm6381_vm6 = vcmp.eq.f32.partialorder %v8741_v7, 8.507059e+37  ;;  %v5262_v57 = vpop.eup %5261  ;;  %2368 = vmatpush.bf16.msrb.mxu1 %v4675_v11  ;;  %v1310_v30 = vmul.f32 %v6300_v39, %v1309_v33  ;;  %v6409_v35 = vadd.f32 1.0, %v5258_v22  ;;  %v4667_v49 = vor.u32 %v5115_v40, %v4666_v4  ;;  %v5096_v4 = vld [vmem:[#allocation2 + $0x10c] sm:$0xf]  ;;  %v5097_v19 = vld [vmem:[#allocation2 + $0x124] sm:$0xf0] }
 0x153   :  { %v6419_v27 = vadd.f32 1.0, %v5260_v2  ;;  %v8749_v33 = vand.u32 2147483647, %v6186_v36  ;;  %v6434_v26 = vadd.f32 1.0, %v5262_v57  ;;  %v1281_v7 = vadd.f32 %v6282_v5, %v1280_v56  ;;  %v8758_v36 = vld [vmem:[#allocation32_spill] sm:$0xff] }
 0x154   :  { %v924_v43 = vpop.f32.mrf.mxu3  ;;  %v779_v51 = vpop.f32.mrf.mxu0  ;;  %2418 = vmatpush.bf16.msrb.mxu2 %v4607_v14  ;;  %2467 = vmatpush.bf16.msrb.mxu3 %v4671_v23  ;;  %vm1313_vm11 = vweird.f32 %v6300_v39  ;;  %vm1312_vm12 = vweird.f32 %v6203_v31  ;;  %v1318_v21 = vand.u32 2147483648, %v6203_v31  ;;  %v4596_v40 = vld [vmem:[#allocation2 + $0x128] sm:$0xf0]  ;;  %vm1342_vm1 = vweird.f32 %v6409_v35 }
 0x155   :  { %v925_v13 = vadd.f32 %v924_v43, %v875_v55  ;;  %v1296_v55 = vadd.f32 %v6269_v47, %v1295_v45  ;;  %v6389_v43 = vadd.f32 1.0, %v5256_v59  ;;  %v4603_v59 = vor.u32 %v5099_v52, %v4602_v50  ;;  %vm6465_vm14 = vmor %vm1312_vm12, %vm1313_vm11  ;;  %v5112_v2 = vld [vmem:[#allocation2 + $0x30c] sm:$0xf] }
 0x156   :  { %v828_v63 = vpop.f32.mrf.mxu1  ;;  %vm6427_vm10 = vcmp.eq.f32.partialorder %v8749_v33, 8.507059e+37  ;;  %2369 = vmatpush.bf16.msrb.mxu1 %v4667_v49  ;;  %v4421_v50 = vmul.f32 -1.442695, %v8758_v36  ;;  %v1285_v11 = vsel %vm6455_vm13, %v6282_v5, %v1281_v7  ;;  %v4660_v57 = vld [vmem:[#allocation2 + $0x328] sm:$0xf0]  ;;  %vm1357_vm2 = vweird.f32 %v6419_v27 }
 0x157   :  { %v829_v10 = vadd.f32 %v828_v63, %v779_v51  ;;  %v8744_v51 = vld [vmem:[#allocation31_spill] sm:$0xff]  ;;  %v1603_v18 = vmul.f32 %v6262_v20, %v925_v13  ;;  %v1300_v25 = vsel %vm6415_vm9, %v6269_v47, %v1296_v55  ;;  %v8752_v20 = vld [vmem:[#allocation29_spill] sm:$0xff]  ;;  %2320 = vmatpush.bf16.msrb.mxu0 %v4603_v59  ;;  %v1275_v47 = vsel %vm6371_vm4, %v6249_v9, %v1270_v8 }
 0x158   :  { %v4420_v63 = vmul.f32 -1.442695, %v8744_v51  ;;  %v1305_v41 = vsel %vm6381_vm6, %v6344_v3, %v1300_v25  ;;  %v1311_v9 = vadd.f32 %v6300_v39, %v1310_v30  ;;  %1879 = vmatmul.bf16.gmra.mxu0 %v6365_v12  ;;  %1977 = vmatmul.bf16.gmra.mxu2 %v6365_v12  ;;  %v4594_v5 = vld [vmem:[#allocation2 + $0x108] sm:$0xf]  ;;  %vm1327_vm0 = vweird.f32 %v6389_v43 }
 0x159   :  { %v1604_v45 = vmul.f32 %v6323_v34, %v829_v10  ;;  %v1316_v10 = vand.u32 2147483647, %v6203_v31  ;;  %v1574_v31 = vmul.f32 %v1275_v47, %v5728_v17  ;;  %1928 = vmatmul.bf16.gmra.mxu1 %v6386_v60  ;;  %2026 = vmatmul.bf16.gmra.mxu3 %v6386_v60  ;;  %v1576_v12 = vmul.f32 %v1305_v41, %v5735_v29  ;;  %v4658_v59 = vld [vmem:[#allocation2 + $0x308] sm:$0xf] }
 0x15a   :  { %v877_v58 = vpop.f32.mrf.mxu2  ;;  %5263 = vpow2.f32 %v4420_v63  ;;  %v8759_v63 = vld [vmem:[#allocation33_spill] sm:$0xff]  ;;  %v1315_v60 = vsel %vm6465_vm14, %v6300_v39, %v1311_v9  ;;  %v4595_v23 = vor.u32 %v5097_v19, %v4594_v5  ;;  %vm1372_vm12 = vweird.f32 %v6434_v26 }
 0x15b   :  { %v6423_v48 = vpack.c.bf16 %v1604_v45, %v1602_v53  ;;  %5265 = vrcp.f32 %v6389_v43  ;;  %v8760_v53 = vld [vmem:[#allocation34_spill] sm:$0xff]  ;;  %v5113_v29 = vld [vmem:[#allocation2 + $0x324] sm:$0xf0]  ;;  %vm1317_vm15 = vcmp.eq.f32.partialorder %v1316_v10, 8.507059e+37 }
 0x15c   :  { %v926_v37 = vpop.f32.mrf.mxu3  ;;  %v782_v32 = vpop.f32.mrf.mxu0  ;;  %5267 = vrcp.f32 %v6409_v35  ;;  %v4659_v34 = vor.u32 %v5113_v29, %v4658_v59  ;;  %2321 = vmatpush.bf16.msrb.mxu0 %v4595_v23 }
 0x15d   :  { %v927_v46 = vadd.f32 %v926_v37, %v877_v58  ;;  %5269 = vrcp.f32 %v6419_v27  ;;  %v6483_v37 = vadd.f32 %v8760_v53, %v8759_v63 }
 0x15e   :  { %v831_v16 = vpop.f32.mrf.mxu1  ;;  %5271 = vrcp.f32 %v6434_v26  ;;  %2370 = vmatpush.bf16.msrb.mxu1 %v4659_v34  ;;  %v5094_v34 = vld [vmem:[#allocation2 + $0xcc] sm:$0xf] }
 0x15f   :  { %v1605_v1 = vmul.f32 %v6356_v0, %v927_v46  ;;  %v6438_v0 = vadd.f32 %v8753_v62, %v8752_v20  ;;  %v832_v3 = vadd.f32 %v831_v16, %v782_v32  ;;  %v4599_v32 = vor.u32 %v5096_v4, %v4596_v40 }
 0x160   :  { %v5264_v55 = vpop.eup %5263  ;;  %v1319_v46 = vor.u32 1.1754944e-38, %v1318_v21  ;;  %v4663_v16 = vor.u32 %v5112_v2, %v4660_v57  ;;  %5273 = vpow2.f32 %v4421_v50  ;;  %v4423_v20 = vmul.f32 -1.442695, %v6483_v37 }
 0x161   :  { %v6443_v13 = vpack.c.bf16 %v1605_v1, %v1603_v18  ;;  %v4422_v52 = vmul.f32 -1.442695, %v6438_v0  ;;  %v6485_v45 = vpop.eup %5265  ;;  %v1606_v30 = vmul.f32 %v1574_v31, %v832_v3  ;;  %2419 = vmatpush.bf16.msrb.mxu2 %v4599_v32  ;;  %v1290_v1 = vsel %vm6427_vm10, %v6265_v24, %v1285_v11 }
 0x162   :  { %v880_v44 = vpop.f32.mrf.mxu2  ;;  %v6490_v8 = vpop.eup %5267  ;;  %v6497_v39 = vadd.f32 1.0, %v5264_v55  ;;  %2468 = vmatpush.bf16.msrb.mxu3 %v4663_v16  ;;  %v1320_v25 = vsel %vm1317_vm15, %v1319_v46, %v1315_v60  ;;  %v1575_v47 = vmul.f32 %v1290_v1, %v5733_v28  ;;  %v1323_v24 = vmul.f32 %v6485_v45, %v6389_v43  ;;  %v8761_v46 = vld [vmem:[#allocation39_spill] sm:$0xff]  ;;  %v4588_v1 = vld [vmem:[#allocation2 + $0xe8] sm:$0xf0] }
 0x163   :  { %v6492_v18 = vpop.eup %5269  ;;  %5275 = vpow2.f32 %v4422_v52  ;;  %v1338_v6 = vmul.f32 %v6490_v8, %v6409_v35  ;;  %v1577_v9 = vmul.f32 %v1320_v25, %v5737_v42  ;;  %v1333_v52 = vand.u32 2147483648, %v6389_v43  ;;  %v5110_v25 = vld [vmem:[#allocation2 + $0x2cc] sm:$0xf] }
 0x164   :  { %v929_v22 = vpop.f32.mrf.mxu3  ;;  %v784_v58 = vpop.f32.mrf.mxu0  ;;  %v1353_v10 = vmul.f32 %v6492_v18, %v6419_v27  ;;  %5277 = vrcp.f32 %v6497_v39  ;;  %v1324_v11 = vsub.f32 1.0, %v1323_v24  ;;  %v1348_v42 = vand.u32 2147483648, %v6409_v35 }
 0x165   :  { %v6499_v33 = vpop.eup %5271  ;;  %v930_v7 = vadd.f32 %v929_v22, %v880_v44  ;;  %5279 = vpow2.f32 %v4423_v20  ;;  %v1331_v55 = vand.u32 2147483647, %v6389_v43  ;;  %v6531_v53 = vor.u32 1.1754944e-38, %v1333_v52  ;;  %v8762_v20 = vld [vmem:[#allocation35_spill] sm:$0xff]  ;;  %v4650_v52 = vld [vmem:[#allocation2 + $0x2c8] sm:$0xf] }
 0x166   :  { %v833_v14 = vpop.f32.mrf.mxu1  ;;  %v1368_v21 = vmul.f32 %v6499_v33, %v6434_v26  ;;  %v5274_v28 = vpop.eup %5273  ;;  %v1361_v32 = vand.u32 2147483647, %v6419_v27  ;;  %v1325_v5 = vmul.f32 %v6485_v45, %v1324_v11  ;;  %v6537_v19 = vor.u32 1.1754944e-38, %v1348_v42 }
 0x167   :  { %v834_v17 = vadd.f32 %v833_v14, %v784_v58  ;;  %v1607_v3 = vmul.f32 %v1575_v47, %v930_v7  ;;  %v1339_v58 = vsub.f32 1.0, %v1338_v6  ;;  %v1354_v14 = vsub.f32 1.0, %v1353_v10  ;;  %v8763_v7 = vld [vmem:[#allocation36_spill] sm:$0xff]  ;;  %v4652_v6 = vld [vmem:[#allocation2 + $0x2e8] sm:$0xf0] }
 0x168   :  { %v1369_v4 = vsub.f32 1.0, %v1368_v21  ;;  %v6521_v40 = vadd.f32 1.0, %v5274_v28  ;;  %v1363_v60 = vand.u32 2147483648, %v6419_v27  ;;  %v4424_v16 = vmul.f32 -1.442695, %v8761_v46  ;;  %1884 = vmatmul.bf16.gmra.mxu0 %v6423_v48  ;;  %1982 = vmatmul.bf16.gmra.mxu2 %v6423_v48  ;;  %v8767_v21 = vld [vmem:[#allocation38_spill] sm:$0xff] }
 0x169   :  { %v1608_v49 = vmul.f32 %v1576_v12, %v834_v17  ;;  %v5276_v50 = vpop.eup %5275  ;;  %v1346_v17 = vand.u32 2147483647, %v6409_v35  ;;  %v1340_v29 = vmul.f32 %v6490_v8, %v1339_v58  ;;  %1933 = vmatmul.bf16.gmra.mxu1 %v6443_v13  ;;  %2031 = vmatmul.bf16.gmra.mxu3 %v6443_v13  ;;  %v6559_v47 = vadd.f32 %v8763_v7, %v8762_v20  ;;  %v4586_v10 = vld [vmem:[#allocation2 + $0xc8] sm:$0xf] }
 0x16a   :  { %v882_v56 = vpop.f32.mrf.mxu2  ;;  %v6527_v12 = vadd.f32 1.0, %v5276_v50  ;;  %v6529_v63 = vpop.eup %5277  ;;  %5281 = vrcp.f32 %v6521_v40  ;;  %v4591_v24 = vor.u32 %v5094_v34, %v4588_v1  ;;  %vm6561_vm3 = vcmp.eq.f32.partialorder %v1331_v55, 8.507059e+37 }
 0x16b   :  { %v6502_v62 = vpack.c.bf16 %v1608_v49, %v1606_v30  ;;  %v5280_v57 = vpop.eup %5279  ;;  %v1355_v30 = vmul.f32 %v6492_v18, %v1354_v14  ;;  %v1370_v49 = vmul.f32 %v6499_v33, %v1369_v4  ;;  %v1383_v48 = vmul.f32 %v6529_v63, %v6497_v39 }
 0x16c   :  { %v931_v41 = vpop.f32.mrf.mxu3  ;;  %v6516_v22 = vpop.f32.mrf.mxu0  ;;  %5283 = vrcp.f32 %v6527_v12  ;;  %v6565_v13 = vadd.f32 1.0, %v5280_v57  ;;  %v4655_v28 = vor.u32 %v5110_v25, %v4652_v6  ;;  %vm1328_vm4 = vweird.f32 %v6485_v45  ;;  %2420 = vmatpush.bf16.msrb.mxu2 %v4591_v24 }
 0x16d   :  { %v932_v15 = vadd.f32 %v931_v41, %v882_v56  ;;  %v5095_v56 = vld [vmem:[#allocation2 + $0xe4] sm:$0xf0]  ;;  %vm6572_vm5 = vcmp.eq.f32.partialorder %v1346_v17, 8.507059e+37  ;;  %v1376_v11 = vand.u32 2147483647, %v6434_v26  ;;  %v1378_v58 = vand.u32 2147483648, %v6434_v26  ;;  %vm6594_vm9 = vmor %vm1327_vm0, %vm1328_vm4 }
 0x16e   :  { %v6518_v31 = vpop.f32.mrf.mxu1  ;;  %v4587_v50 = vor.u32 %v5095_v56, %v4586_v10  ;;  %v1326_v14 = vadd.f32 %v6485_v45, %v1325_v5  ;;  %vm1343_vm6 = vweird.f32 %v6490_v8  ;;  %vm1358_vm7 = vweird.f32 %v6492_v18  ;;  %2469 = vmatpush.bf16.msrb.mxu3 %v4655_v28 }
 0x16f   :  { %v1609_v44 = vmul.f32 %v1577_v9, %v932_v15  ;;  %v8766_v9 = vld [vmem:[#allocation37_spill] sm:$0xff]  ;;  %vm1373_vm8 = vweird.f32 %v6499_v33  ;;  %v1341_v17 = vadd.f32 %v6490_v8, %v1340_v29  ;;  %v1384_v57 = vsub.f32 1.0, %v1383_v48  ;;  %vm6608_vm10 = vmor %vm1342_vm1, %vm1343_vm6 }
 0x170   :  { %v6569_v15 = vadd.f32 %v8767_v21, %v8766_v9  ;;  %2322 = vmatpush.bf16.msrb.mxu0 %v4587_v50  ;;  %5285 = vpow2.f32 %v4424_v16  ;;  %v4426_v34 = vmul.f32 -1.442695, %v6559_v47  ;;  %v6588_v5 = vpop.eup %5281  ;;  %v1356_v25 = vadd.f32 %v6492_v18, %v1355_v30  ;;  %vm6629_vm13 = vmor %vm1357_vm2, %vm1358_vm7  ;;  %v4642_v48 = vld [vmem:[#allocation2 + $0x288] sm:$0xf] }
 0x171   :  { %v6523_v2 = vpack.c.bf16 %v1609_v44, %v1607_v3  ;;  %v5111_v3 = vld [vmem:[#allocation2 + $0x2e4] sm:$0xf0]  ;;  %v1371_v20 = vadd.f32 %v6499_v33, %v1370_v49  ;;  %5287 = vrcp.f32 %v6565_v13  ;;  %vm6612_vm11 = vcmp.eq.f32.partialorder %v1361_v32, 8.507059e+37  ;;  %v8776_v49 = vld [vmem:[#allocation43_spill] sm:$0xff]  ;;  %vm6643_vm15 = vmor %vm1372_vm12, %vm1373_vm8 }
 0x172   :  { %v6544_v23 = vpop.f32.mrf.mxu2  ;;  %v4651_v42 = vor.u32 %v5111_v3, %v4650_v52  ;;  %v4427_v16 = vmul.f32 -1.442695, %v6569_v15  ;;  %v6602_v29 = vpop.eup %5283  ;;  %v1364_v30 = vor.u32 1.1754944e-38, %v1363_v60  ;;  %v4425_v7 = vmul.f32 -1.442695, %v8776_v49 }
 0x173   :  { %v1330_v35 = vsel %vm6594_vm9, %v6485_v45, %v1326_v14  ;;  %vm6633_vm14 = vcmp.eq.f32.partialorder %v1376_v11, 8.507059e+37  ;;  %v1379_v60 = vor.u32 1.1754944e-38, %v1378_v58  ;;  %v1393_v10 = vand.u32 2147483648, %v6497_v39  ;;  %v5108_v45 = vld [vmem:[#allocation2 + $0x28c] sm:$0xf] }
 0x174   :  { %v6546_v59 = vpop.f32.mrf.mxu3  ;;  %v6582_v4 = vpop.f32.mrf.mxu0  ;;  %2371 = vmatpush.bf16.msrb.mxu1 %v4651_v42  ;;  %v1345_v56 = vsel %vm6608_vm10, %v6490_v8, %v1341_v17  ;;  %v1385_v27 = vmul.f32 %v6529_v63, %v1384_v57  ;;  %v1398_v9 = vmul.f32 %v6588_v5, %v6521_v40  ;;  %5289 = vpow2.f32 %v4426_v34  ;;  %v8783_v17 = vld [vmem:[#allocation27_spill] sm:$0xff]  ;;  %v5109_v34 = vld [vmem:[#allocation2 + $0x2a4] sm:$0xf0] }
 0x175   :  { %v1360_v21 = vsel %vm6629_vm13, %v6492_v18, %v1356_v25  ;;  %v1375_v8 = vsel %vm6643_vm15, %v6499_v33, %v1371_v20  ;;  %v1408_v28 = vand.u32 2147483648, %v6521_v40  ;;  %5291 = vpow2.f32 %v4427_v16 }
 0x176   :  { %v6584_v55 = vpop.f32.mrf.mxu1  ;;  %v5286_v50 = vpop.eup %5285  ;;  %v1335_v52 = vsel %vm6561_vm3, %v6531_v53, %v1330_v35  ;;  %vm1387_vm0 = vweird.f32 %v6497_v39  ;;  %v6663_v3 = vmul.f32 %v6602_v29, %v6527_v12  ;;  %5293 = vpow2.f32 %v4425_v7 }
 0x177   :  { %v6665_v18 = vpop.eup %5287  ;;  %v1350_v33 = vsel %vm6572_vm5, %v6537_v19, %v1345_v56  ;;  %vm1388_vm1 = vweird.f32 %v6529_v63  ;;  %v1391_v11 = vand.u32 2147483647, %v6497_v39  ;;  %v6672_v58 = vor.u32 1.1754944e-38, %v1393_v10  ;;  %v5092_v56 = vld [vmem:[#allocation2 + $0x8c] sm:$0xf] }
 0x178   :  { %v1365_v53 = vsel %vm6612_vm11, %v1364_v30, %v1360_v21  ;;  %v1380_v41 = vsel %vm6633_vm14, %v1379_v60, %v1375_v8  ;;  %v6679_v42 = vadd.f32 %v6529_v63, %v1385_v27  ;;  %v1399_v14 = vsub.f32 1.0, %v1398_v9  ;;  %vm6694_vm2 = vmor %vm1387_vm0, %vm1388_vm1  ;;  %1889 = vmatmul.bf16.gmra.mxu0 %v6502_v62  ;;  %1987 = vmatmul.bf16.gmra.mxu2 %v6502_v62  ;;  %v4580_v62 = vld [vmem:[#allocation2 + $0xa8] sm:$0xf0]  ;;  %v8787_v21 = vld [vmem:[#allocation42_spill] sm:$0xff] }
 0x179   :  { %v6682_v57 = vmul.f32 %v1335_v52, %v8783_v17  ;;  %v1406_v19 = vand.u32 2147483647, %v6521_v40  ;;  %v6685_v44 = vor.u32 1.1754944e-38, %v1408_v28  ;;  %v1414_v43 = vsub.f32 1.0, %v6663_v3  ;;  %1938 = vmatmul.bf16.gmra.mxu1 %v6523_v2  ;;  %2036 = vmatmul.bf16.gmra.mxu3 %v6523_v2  ;;  %v4644_v28 = vld [vmem:[#allocation2 + $0x2a8] sm:$0xf0] }
 0x17a   :  { %v6618_v24 = vpop.f32.mrf.mxu2  ;;  %v5290_v20 = vpop.eup %5289  ;;  %v1428_v30 = vmul.f32 %v6665_v18, %v6565_v13  ;;  %v6702_v7 = vadd.f32 1.0, %v5286_v50  ;;  %v6711_v26 = vmul.f32 %v1350_v33, %v8734_v61  ;;  %v1580_v60 = vmul.f32 %v1365_v53, %v6294_v38  ;;  %v8786_v38 = vld [vmem:[#allocation40_spill] sm:$0xff]  ;;  %v4578_v50 = vld [vmem:[#allocation2 + $0x88] sm:$0xf] }
 0x17b   :  { %v5292_v32 = vpop.eup %5291  ;;  %v1581_v10 = vmul.f32 %v1380_v41, %v6308_v54  ;;  %vm1402_vm3 = vweird.f32 %v6521_v40  ;;  %v1400_v9 = vmul.f32 %v6588_v5, %v1399_v14  ;;  %v6725_v54 = vadd.f32 %v8787_v21, %v8786_v38  ;;  %v5093_v52 = vld [vmem:[#allocation2 + $0xa4] sm:$0xf0]  ;;  %v8788_v3 = vld [vmem:[#allocation44_spill] sm:$0xff] }
 0x17c   :  { %v6620_v6 = vpop.f32.mrf.mxu3  ;;  %v6688_v1 = vpop.f32.mrf.mxu0  ;;  %v4583_v8 = vor.u32 %v5092_v56, %v4580_v62  ;;  %v6727_v2 = vadd.f32 1.0, %v5290_v20  ;;  %v8789_v33 = vld [vmem:[#allocation45_spill] sm:$0xff]  ;;  %v4647_v41 = vor.u32 %v5108_v45, %v4644_v28  ;;  %v4579_v17 = vor.u32 %v5093_v52, %v4578_v50 }
 0x17d   :  { %v5294_v27 = vpop.eup %5293  ;;  %v6731_v53 = vadd.f32 %v8789_v33, %v8788_v3  ;;  %v1429_v61 = vsub.f32 1.0, %v1428_v30  ;;  %v6733_v14 = vadd.f32 1.0, %v5292_v32  ;;  %v839_v38 = vadd.f32 %v6584_v55, %v6582_v4 }
 0x17e   :  { %v6690_v25 = vpop.f32.mrf.mxu1  ;;  %2421 = vmatpush.bf16.msrb.mxu2 %v4583_v8  ;;  %v4643_v56 = vor.u32 %v5109_v34, %v4642_v48  ;;  %vm6737_vm4 = vcmp.eq.f32.partialorder %v1391_v11, 8.507059e+37  ;;  %vm1403_vm5 = vweird.f32 %v6588_v5  ;;  %vm1418_vm6 = vweird.f32 %v6602_v29  ;;  %2470 = vmatpush.bf16.msrb.mxu3 %v4647_v41  ;;  %v8792_v48 = vld [vmem:[#allocation46_spill] sm:$0xff] }
 0x17f   :  { %v6743_v20 = vadd.f32 1.0, %v5294_v27  ;;  %v937_v30 = vadd.f32 %v6620_v6, %v6618_v24  ;;  %2323 = vmatpush.bf16.msrb.mxu0 %v4579_v17  ;;  %v1401_v32 = vadd.f32 %v6588_v5, %v1400_v9  ;;  %5295 = vrcp.f32 %v6702_v7  ;;  %vm6764_vm7 = vmor %vm1402_vm3, %vm1403_vm5 }
 0x180   :  { %v4430_v4 = vmul.f32 -1.442695, %v6725_v54  ;;  %v837_v55 = vadd.f32 %v6518_v31, %v6516_v22  ;;  %2372 = vmatpush.bf16.msrb.mxu1 %v4643_v56  ;;  %v1415_v11 = vmul.f32 %v6602_v29, %v1414_v43  ;;  %5297 = vrcp.f32 %v6727_v2  ;;  %v5106_v22 = vld [vmem:[#allocation2 + $0x24c] sm:$0xf] }
 0x181   :  { %v4431_v34 = vmul.f32 -1.442695, %v6731_v53  ;;  %v935_v24 = vadd.f32 %v6546_v59, %v6544_v23  ;;  %v1430_v6 = vmul.f32 %v6665_v18, %v1429_v61  ;;  %5299 = vrcp.f32 %v6733_v14  ;;  %v8795_v23 = vld [vmem:[#allocation47_spill] sm:$0xff] }
 0x182   :  { %v6706_v35 = vpop.f32.mrf.mxu2  ;;  %v4428_v45 = vmul.f32 -1.442695, %v8792_v48  ;;  %v1612_v27 = vmul.f32 %v1580_v60, %v839_v38  ;;  %v1436_v31 = vand.u32 2147483647, %v6565_v13  ;;  %5301 = vrcp.f32 %v6743_v20 }
 0x183   :  { %v4429_v59 = vmul.f32 -1.442695, %v8795_v23  ;;  %v1613_v43 = vmul.f32 %v1581_v10, %v937_v30  ;;  %v1405_v60 = vsel %vm6764_vm7, %v6588_v5, %v1401_v32  ;;  %v1438_v21 = vand.u32 2147483648, %v6565_v13 }
 0x184   :  { %v6708_v39 = vpop.f32.mrf.mxu3  ;;  %v6771_v61 = vpop.f32.mrf.mxu0  ;;  %5303 = vpow2.f32 %v4430_v4  ;;  %v1610_v8 = vmul.f32 %v6682_v57, %v837_v55  ;;  %v1416_v52 = vadd.f32 %v6602_v29, %v1415_v11  ;;  %v1453_v10 = vand.u32 2147483648, %v6702_v7 }
 0x185   :  { %5305 = vpow2.f32 %v4431_v34  ;;  %v1611_v3 = vmul.f32 %v6711_v26, %v935_v24  ;;  %v6787_v33 = vpop.eup %5295  ;;  %v1431_v5 = vadd.f32 %v6665_v18, %v1430_v6  ;;  %vm1433_vm8 = vweird.f32 %v6665_v18 }
 0x186   :  { %v6773_v9 = vpop.f32.mrf.mxu1  ;;  %5307 = vpow2.f32 %v4428_v45  ;;  %v1666_v41 = vpack.c.bf16 %v1612_v27, %v1610_v8  ;;  %v6791_v57 = vpop.eup %5297  ;;  %vm1407_vm9 = vcmp.eq.f32.partialorder %v1406_v19, 8.507059e+37  ;;  %vm1417_vm10 = vweird.f32 %v6527_v12  ;;  %v4572_v27 = vld [vmem:[#allocation2 + $0x68] sm:$0xf0]  ;;  %v5091_v8 = vld [vmem:[#allocation2 + $0x64] sm:$0xf0] }
 0x187   :  { %5309 = vpow2.f32 %v4429_v59  ;;  %v1667_v17 = vpack.c.bf16 %v1613_v43, %v1611_v3  ;;  %v6796_v38 = vpop.eup %5299  ;;  %v8796_v26 = vsel %vm6694_vm2, %v6529_v63, %v6679_v42  ;;  %v1410_v30 = vsel %vm1407_vm9, %v6685_v44, %v1405_v60  ;;  %vm6809_vm11 = vmor %vm1417_vm10, %vm1418_vm6  ;;  %v4636_v60 = vld [vmem:[#allocation2 + $0x268] sm:$0xf0] }
 0x188   :  { %v1395_v56 = vsel %vm6737_vm4, %v6672_v58, %v8796_v26  ;;  %v8799_v19 = vand.u32 2147483647, %v6527_v12  ;;  %vm1432_vm13 = vweird.f32 %v6565_v13  ;;  %v6820_v63 = vpop.eup %5301  ;;  %v1420_v58 = vsel %vm6809_vm11, %v6602_v29, %v1416_v52  ;;  %1894 = vmatmul.bf16.gmra.mxu0 %v1666_v41  ;;  %1992 = vmatmul.bf16.gmra.mxu2 %v1666_v41 }
 0x189   :  { %v8802_v42 = vand.u32 2147483648, %v6527_v12  ;;  %vm6829_vm14 = vmor %vm1432_vm13, %vm1433_vm8  ;;  %vm6833_vm15 = vcmp.eq.f32.partialorder %v1436_v31, 8.507059e+37  ;;  %v1439_v13 = vor.u32 1.1754944e-38, %v1438_v21  ;;  %v1451_v29 = vand.u32 2147483647, %v6702_v7  ;;  %1943 = vmatmul.bf16.gmra.mxu1 %v1667_v17  ;;  %2041 = vmatmul.bf16.gmra.mxu3 %v1667_v17 }
 0x18a   :  { %v6780_v28 = vpop.f32.mrf.mxu2  ;;  %vm6815_vm12 = vcmp.eq.f32.partialorder %v8799_v19, 8.507059e+37  ;;  %v5304_v4 = vpop.eup %5303  ;;  %v1435_v55 = vsel %vm6829_vm14, %v6665_v18, %v1431_v5  ;;  %v6841_v12 = vor.u32 1.1754944e-38, %v1453_v10  ;;  %v1473_v11 = vmul.f32 %v6791_v57, %v6727_v2  ;;  %v5090_v18 = vld [vmem:[#allocation2 + $0x4c] sm:$0xf]  ;;  %v4570_v21 = vld [vmem:[#allocation2 + $0x48] sm:$0xf] }
 0x18b   :  { %v1424_v44 = vor.u32 1.1754944e-38, %v8802_v42  ;;  %v5306_v34 = vpop.eup %5305  ;;  %v1582_v24 = vmul.f32 %v1395_v56, %v8744_v51  ;;  %v1583_v6 = vmul.f32 %v1410_v30, %v8758_v36  ;;  %v1488_v45 = vmul.f32 %v6796_v38, %v6733_v14  ;;  %v4634_v56 = vld [vmem:[#allocation2 + $0x248] sm:$0xf] }
 0x18c   :  { %v6782_v50 = vpop.f32.mrf.mxu3  ;;  %v5308_v31 = vpop.eup %5307  ;;  %v1443_v43 = vmul.f32 %v6787_v33, %v6702_v7  ;;  %vm1447_vm0 = vweird.f32 %v6702_v7  ;;  %v1458_v51 = vmul.f32 %v6820_v63, %v6743_v20  ;;  %v4575_v36 = vor.u32 %v5090_v18, %v4572_v27  ;;  %v5107_v30 = vld [vmem:[#allocation2 + $0x264] sm:$0xf0] }
 0x18d   :  { %v1425_v59 = vsel %vm6815_vm12, %v1424_v44, %v1420_v58  ;;  %v5310_v52 = vpop.eup %5309  ;;  %v1440_v10 = vsel %vm6833_vm15, %v1439_v13, %v1435_v55  ;;  %v6858_v3 = vadd.f32 1.0, %v5304_v4  ;;  %v6860_v5 = vpop.f32.mrf.mxu0  ;;  %v4639_v17 = vor.u32 %v5106_v22, %v4636_v60 }
 0x18e   :  { %v6862_v41 = vpop.f32.mrf.mxu1  ;;  %v4571_v26 = vor.u32 %v5091_v8, %v4570_v21  ;;  %v1474_v40 = vsub.f32 1.0, %v1473_v11  ;;  %v6864_v19 = vadd.f32 1.0, %v5306_v34  ;;  %v844_v32 = vadd.f32 %v6773_v9, %v6771_v61  ;;  %2422 = vmatpush.bf16.msrb.mxu2 %v4575_v36 }
 0x18f   :  { %v4635_v44 = vor.u32 %v5107_v30, %v4634_v56  ;;  %v1584_v16 = vmul.f32 %v1425_v59, %v6438_v0  ;;  %v1489_v62 = vsub.f32 1.0, %v1488_v45  ;;  %v6873_v13 = vadd.f32 1.0, %v5308_v31  ;;  %2471 = vmatpush.bf16.msrb.mxu3 %v4639_v17 }
 0x190   :  { %v942_v4 = vadd.f32 %v6782_v50, %v6780_v28  ;;  %2324 = vmatpush.bf16.msrb.mxu0 %v4571_v26  ;;  %v1444_v55 = vsub.f32 1.0, %v1443_v43  ;;  %v1459_v11 = vsub.f32 1.0, %v1458_v51  ;;  %v6877_v34 = vadd.f32 1.0, %v5310_v52 }
 0x191   :  { %v842_v61 = vadd.f32 %v6690_v25, %v6688_v1  ;;  %2373 = vmatpush.bf16.msrb.mxu1 %v4635_v44  ;;  %v1585_v9 = vmul.f32 %v1440_v10, %v6483_v37  ;;  %v1468_v0 = vand.u32 2147483648, %v6743_v20  ;;  %5311 = vrcp.f32 %v6858_v3 }
 0x192   :  { %v6868_v58 = vpop.f32.mrf.mxu2  ;;  %v940_v45 = vadd.f32 %v6708_v39, %v6706_v35  ;;  %v1475_v28 = vmul.f32 %v6791_v57, %v1474_v40  ;;  %v1481_v50 = vand.u32 2147483647, %v6727_v2  ;;  %5313 = vrcp.f32 %v6864_v19 }
 0x193   :  { %v1616_v18 = vmul.f32 %v1584_v16, %v844_v32  ;;  %vm1448_vm1 = vweird.f32 %v6787_v33  ;;  %v1490_v1 = vmul.f32 %v6796_v38, %v1489_v62  ;;  %5315 = vrcp.f32 %v6873_v13 }
 0x194   :  { %v6870_v42 = vpop.f32.mrf.mxu3  ;;  %v1617_v37 = vmul.f32 %v1585_v9, %v942_v4  ;;  %v1445_v25 = vmul.f32 %v6787_v33, %v1444_v55  ;;  %v1460_v27 = vmul.f32 %v6820_v63, %v1459_v11  ;;  %5317 = vrcp.f32 %v6877_v34  ;;  %vm6913_vm5 = vmor %vm1447_vm0, %vm1448_vm1  ;;  %v5088_v9 = vld [vmem:[#allocation2 + $0xc] sm:$0xf] }
 0x195   :  { %v1614_v35 = vmul.f32 %v1582_v24, %v842_v61  ;;  %vm1463_vm2 = vweird.f32 %v6820_v63  ;;  %v1483_v39 = vand.u32 2147483648, %v6727_v2  ;;  %v1496_v22 = vand.u32 2147483647, %v6733_v14  ;;  %v799_v21 = vpop.f32.mrf.mxu0 }
 0x196   :  { %v1615_v31 = vmul.f32 %v1583_v6, %v940_v45  ;;  %vm6900_vm3 = vcmp.eq.f32.partialorder %v1451_v29, 8.507059e+37  ;;  %v1476_v43 = vadd.f32 %v6791_v57, %v1475_v28  ;;  %vm1478_vm4 = vweird.f32 %v6791_v57  ;;  %v848_v8 = vpop.f32.mrf.mxu1  ;;  %v5104_v45 = vld [vmem:[#allocation2 + $0x20c] sm:$0xf] }
 0x197   :  { %v1498_v51 = vand.u32 2147483648, %v6733_v14  ;;  %v1668_v24 = vpack.c.bf16 %v1616_v18, %v1614_v35  ;;  %v6907_v36 = vpop.eup %5311  ;;  %vm1462_vm6 = vweird.f32 %v6743_v20  ;;  %v1491_v29 = vadd.f32 %v6796_v38, %v1490_v1  ;;  %v4628_v1 = vld [vmem:[#allocation2 + $0x228] sm:$0xf0] }
 0x198   :  { %vm1493_vm7 = vweird.f32 %v6796_v38  ;;  %v1669_v60 = vpack.c.bf16 %v1617_v37, %v1615_v31  ;;  %v6920_v52 = vpop.eup %5313  ;;  %v1446_v10 = vadd.f32 %v6787_v33, %v1445_v25  ;;  %v1461_v17 = vadd.f32 %v6820_v63, %v1460_v27  ;;  %vm6926_vm8 = vmor %vm1462_vm6, %vm1463_vm2  ;;  %v4562_v37 = vld [vmem:[#allocation2 + $0x8] sm:$0xf] }
 0x199   :  { %v1466_v26 = vand.u32 2147483647, %v6743_v20  ;;  %vm1477_vm9 = vweird.f32 %v6727_v2  ;;  %v6932_v40 = vpop.eup %5315  ;;  %v1469_v32 = vor.u32 1.1754944e-38, %v1468_v0  ;;  %vm6940_vm11 = vcmp.eq.f32.partialorder %v1481_v50, 8.507059e+37  ;;  %1899 = vmatmul.bf16.gmra.mxu0 %v1668_v24  ;;  %1997 = vmatmul.bf16.gmra.mxu2 %v1668_v24  ;;  %v4564_v0 = vld [vmem:[#allocation2 + $0x28] sm:$0xf0] }
 0x19a   :  { %v897_v56 = vpop.f32.mrf.mxu2  ;;  %vm6936_vm10 = vmor %vm1477_vm9, %vm1478_vm4  ;;  %v1484_v62 = vor.u32 1.1754944e-38, %v1483_v39  ;;  %vm1492_vm12 = vweird.f32 %v6733_v14  ;;  %v6945_v20 = vpop.eup %5317  ;;  %vm6956_vm14 = vcmp.eq.f32.partialorder %v1496_v22, 8.507059e+37  ;;  %v1499_v11 = vor.u32 1.1754944e-38, %v1498_v51  ;;  %1948 = vmatmul.bf16.gmra.mxu1 %v1669_v60  ;;  %2046 = vmatmul.bf16.gmra.mxu3 %v1669_v60  ;;  %v5089_v25 = vld [vmem:[#allocation2 + $0x24] sm:$0xf0] }
 0x19b   :  { %v1480_v2 = vsel %vm6936_vm10, %v6791_v57, %v1476_v43  ;;  %vm6952_vm13 = vmor %vm1492_vm12, %vm1493_vm7  ;;  %v1533_v14 = vmul.f32 %v6907_v36, %v6858_v3  ;;  %v1548_v61 = vmul.f32 %v6920_v52, %v6864_v19  ;;  %v1450_v28 = vsel %vm6913_vm5, %v6787_v33, %v1446_v10  ;;  %v4626_v33 = vld [vmem:[#allocation2 + $0x208] sm:$0xf] }
 0x19c   :  { %v946_v30 = vpop.f32.mrf.mxu3  ;;  %v1495_v57 = vsel %vm6952_vm13, %v6796_v38, %v1491_v29  ;;  %v1465_v50 = vsel %vm6926_vm8, %v6820_v63, %v1461_v17  ;;  %v1503_v18 = vmul.f32 %v6932_v40, %v6873_v13  ;;  %v4567_v38 = vor.u32 %v5088_v9, %v4564_v0  ;;  %v5105_v31 = vld [vmem:[#allocation2 + $0x224] sm:$0xf0] }
 0x19d   :  { %v1485_v27 = vsel %vm6940_vm11, %v1484_v62, %v1480_v2  ;;  %v1518_v35 = vmul.f32 %v6945_v20, %v6877_v34  ;;  %v4631_v39 = vor.u32 %v5104_v45, %v4628_v1  ;;  %v4563_v22 = vor.u32 %v5089_v25, %v4562_v37 }
 0x19e   :  { %v1500_v63 = vsel %vm6956_vm14, %v1499_v11, %v1495_v57  ;;  %v1534_v43 = vsub.f32 1.0, %v1533_v14  ;;  %v849_v51 = vadd.f32 %v848_v8, %v799_v21  ;;  %2423 = vmatpush.bf16.msrb.mxu2 %v4567_v38  ;;  %v4627_v24 = vor.u32 %v5105_v31, %v4626_v33 }
 0x19f   :  { %v1455_v6 = vsel %vm6900_vm3, %v6841_v12, %v1450_v28  ;;  %vm1467_vm15 = vcmp.eq.f32.partialorder %v1466_v26, 8.507059e+37  ;;  %v1549_v29 = vsub.f32 1.0, %v1548_v61  ;;  %v947_v60 = vadd.f32 %v946_v30, %v897_v56  ;;  %2472 = vmatpush.bf16.msrb.mxu3 %v4631_v39  ;;  %2325 = vmatpush.bf16.msrb.mxu0 %v4563_v22  ;;  %v6990_v12 = vpop.f32.mrf.mxu0  ;;  %v6992_v26 = vpop.f32.mrf.mxu1  ;;  %v8829_v28 = vld [vmem:[#allocation8_spill] sm:$0xff] }
 0x1a0   :  { %v1470_v10 = vsel %vm1467_vm15, %v1469_v32, %v1465_v50  ;;  %v1588_v17 = vmul.f32 %v1485_v27, %v6559_v47  ;;  %v1504_v7 = vsub.f32 1.0, %v1503_v18  ;;  %v847_v44 = vadd.f32 %v6862_v41, %v6860_v5  ;;  %2374 = vmatpush.bf16.msrb.mxu1 %v4627_v24 }
 0x1a1   :  { %v1589_v21 = vmul.f32 %v1500_v63, %v6569_v15  ;;  %v1519_v8 = vsub.f32 1.0, %v1518_v35  ;;  %v945_v59 = vadd.f32 %v6870_v42, %v6868_v58  ;;  %v1586_v56 = vmul.f32 %v1455_v6, %v8761_v46  ;;  %v5134_v6 = vld [vmem:[#allocation2 + $0x1dc] sm:$0xf] }
 0x1a2   :  { %v1535_v30 = vmul.f32 %v6907_v36, %v1534_v43  ;;  %v1620_v47 = vmul.f32 %v1588_v17, %v849_v51  ;;  %v6996_v32 = vpop.f32.mrf.mxu2  ;;  %v1587_v5 = vmul.f32 %v1470_v10, %v8776_v49  ;;  %v1550_v15 = vmul.f32 %v6920_v52, %v1549_v29  ;;  %v4748_v29 = vld [vmem:[#allocation2 + $0x1f8] sm:$0xf0] }
 0x1a3   :  { %v1621_v41 = vmul.f32 %v1589_v21, %v947_v60  ;;  %v1505_v58 = vmul.f32 %v6932_v40, %v1504_v7  ;;  %vm1507_vm0 = vweird.f32 %v6873_v13  ;;  %v1618_v42 = vmul.f32 %v1586_v56, %v847_v44  ;;  %v5150_v60 = vld [vmem:[#allocation2 + $0x3dc] sm:$0xf] }
 0x1a4   :  { %v6998_v16 = vpop.f32.mrf.mxu3  ;;  %v1511_v62 = vand.u32 2147483647, %v6873_v13  ;;  %v1513_v46 = vand.u32 2147483648, %v6873_v13  ;;  %v1520_v2 = vmul.f32 %v6945_v20, %v1519_v8  ;;  %v1619_v4 = vmul.f32 %v1587_v5, %v945_v59  ;;  %v4812_v21 = vld [vmem:[#allocation2 + $0x3f8] sm:$0xf0] }
 0x1a5   :  { %vm1508_vm1 = vweird.f32 %v6932_v40  ;;  %v1536_v55 = vadd.f32 %v6907_v36, %v1535_v30  ;;  %vm1538_vm2 = vweird.f32 %v6907_v36  ;;  %v1670_v49 = vpack.c.bf16 %v1620_v47, %v1618_v42 }
 0x1a6   :  { %v1543_v11 = vand.u32 2147483648, %v6858_v3  ;;  %v1551_v14 = vadd.f32 %v6920_v52, %v1550_v15  ;;  %vm1553_vm3 = vweird.f32 %v6920_v52  ;;  %v1671_v57 = vpack.c.bf16 %v1621_v41, %v1619_v4  ;;  %vm7038_vm9 = vmor %vm1507_vm0, %vm1508_vm1  ;;  %v4746_v41 = vld [vmem:[#allocation2 + $0x1d8] sm:$0xf] }
 0x1a7   :  { %v1506_v61 = vadd.f32 %v6932_v40, %v1505_v58  ;;  %vm1537_vm4 = vweird.f32 %v6858_v3  ;;  %v1541_v9 = vand.u32 2147483647, %v6858_v3  ;;  %v1558_v0 = vand.u32 2147483648, %v6864_v19  ;;  %v804_v25 = vpop.f32.mrf.mxu0  ;;  %v853_v27 = vpop.f32.mrf.mxu1 }
 0x1a8   :  { %v1521_v45 = vadd.f32 %v6945_v20, %v1520_v2  ;;  %vm1523_vm5 = vweird.f32 %v6945_v20  ;;  %vm7019_vm6 = vmor %vm1537_vm4, %vm1538_vm2  ;;  %vm1552_vm7 = vweird.f32 %v6864_v19  ;;  %v1556_v50 = vand.u32 2147483647, %v6864_v19  ;;  %v4804_v2 = vld [vmem:[#allocation2 + $0x3b8] sm:$0xf0] }
 0x1a9   :  { %v1526_v18 = vand.u32 2147483647, %v6877_v34  ;;  %v1528_v38 = vand.u32 2147483648, %v6877_v34  ;;  %v1540_v3 = vsel %vm7019_vm6, %v6907_v36, %v1536_v55  ;;  %vm7030_vm8 = vmor %vm1552_vm7, %vm1553_vm3  ;;  %1904 = vmatmul.bf16.gmra.mxu0 %v1670_v49  ;;  %2002 = vmatmul.bf16.gmra.mxu2 %v1670_v49  ;;  %vm1522_vm10 = vweird.f32 %v6877_v34  ;;  %v4738_v55 = vld [vmem:[#allocation2 + $0x198] sm:$0xf] }
 0x1aa   :  { %v1544_v37 = vor.u32 1.1754944e-38, %v1543_v11  ;;  %v1555_v36 = vsel %vm7030_vm8, %v6920_v52, %v1551_v14  ;;  %1953 = vmatmul.bf16.gmra.mxu1 %v1671_v57  ;;  %2051 = vmatmul.bf16.gmra.mxu3 %v1671_v57  ;;  %v1510_v35 = vsel %vm7038_vm9, %v6932_v40, %v1506_v61  ;;  %vm1512_vm11 = vcmp.eq.f32.partialorder %v1511_v62, 8.507059e+37  ;;  %vm7051_vm12 = vmor %vm1522_vm10, %vm1523_vm5  ;;  %v902_v39 = vpop.f32.mrf.mxu2  ;;  %v5133_v49 = vld [vmem:[#allocation2 + $0x1b4] sm:$0xf0]  ;;  %v5130_v19 = vld [vmem:[#allocation2 + $0x15c] sm:$0xf] }
 0x1ab   :  { %vm1542_vm13 = vcmp.eq.f32.partialorder %v1541_v9, 8.507059e+37  ;;  %v1559_v34 = vor.u32 1.1754944e-38, %v1558_v0  ;;  %v1514_v52 = vor.u32 1.1754944e-38, %v1513_v46  ;;  %v1525_v33 = vsel %vm7051_vm12, %v6945_v20, %v1521_v45  ;;  %v4802_v11 = vld [vmem:[#allocation2 + $0x398] sm:$0xf] }
 0x1ac   :  { %v951_v22 = vpop.f32.mrf.mxu3  ;;  %v1545_v31 = vsel %vm1542_vm13, %v1544_v37, %v1540_v3  ;;  %vm1557_vm14 = vcmp.eq.f32.partialorder %v1556_v50, 8.507059e+37  ;;  %vm1527_vm15 = vcmp.eq.f32.partialorder %v1526_v18, 8.507059e+37  ;;  %v1529_v40 = vor.u32 1.1754944e-38, %v1528_v38  ;;  %v5149_v57 = vld [vmem:[#allocation2 + $0x3b4] sm:$0xf0]  ;;  %v8830_v50 = vld [vmem:[#allocation9_spill] sm:$0xff] }
 0x1ad   :  { %v1560_v63 = vsel %vm1557_vm14, %v1559_v34, %v1555_v36  ;;  %v854_v43 = vadd.f32 %v853_v27, %v804_v25  ;;  %v1515_v51 = vsel %vm1512_vm11, %v1514_v52, %v1510_v35  ;;  %v952_v24 = vadd.f32 %v951_v22, %v902_v39  ;;  %v4732_v37 = vld [vmem:[#allocation2 + $0x178] sm:$0xf0]  ;;  %v4730_v22 = vld [vmem:[#allocation2 + $0x158] sm:$0xf] }
 0x1ae   :  { %v1530_v10 = vsel %vm1527_vm15, %v1529_v40, %v1525_v33  ;;  %v1592_v17 = vmul.f32 %v1545_v31, %v6725_v54  ;;  %v852_v7 = vadd.f32 %v6992_v26, %v6990_v12  ;;  %v4751_v44 = vor.u32 %v5134_v6, %v4748_v29  ;;  %v5135_v12 = vld [vmem:[#allocation2 + $0x1f4] sm:$0xf0]  ;;  %v5146_v36 = vld [vmem:[#allocation2 + $0x35c] sm:$0xf] }
 0x1af   :  { %v1593_v20 = vmul.f32 %v1560_v63, %v6731_v53  ;;  %v950_v8 = vadd.f32 %v6998_v16, %v6996_v32  ;;  %v4815_v59 = vor.u32 %v5150_v60, %v4812_v21  ;;  %v1590_v56 = vmul.f32 %v1515_v51, %v8792_v48  ;;  %v4810_v26 = vld [vmem:[#allocation2 + $0x3d8] sm:$0xf]  ;;  %v5132_v48 = vld [vmem:[#allocation2 + $0x19c] sm:$0xf]  ;;  %v8831_v60 = vld [vmem:[#allocation10_spill] sm:$0xff] }
 0x1b0   :  { %v1624_v30 = vmul.f32 %v1592_v17, %v854_v43  ;;  %2804 = vmatpush.bf16.msra.mxu2 %v4751_v44  ;;  %v1591_v47 = vmul.f32 %v1530_v10, %v8795_v23  ;;  %v4747_v42 = vor.u32 %v5135_v12, %v4746_v41  ;;  %v5151_v53 = vld [vmem:[#allocation2 + $0x3f4] sm:$0xf0]  ;;  %v4740_v23 = vld [vmem:[#allocation2 + $0x1b8] sm:$0xf0]  ;;  %v4739_v14 = vor.u32 %v5133_v49, %v4738_v55 }
 0x1b1   :  { %v1625_v5 = vmul.f32 %v1593_v20, %v952_v24  ;;  %2853 = vmatpush.bf16.msra.mxu3 %v4815_v59  ;;  %v1622_v54 = vmul.f32 %v1590_v56, %v852_v7  ;;  %v4811_v46 = vor.u32 %v5151_v53, %v4810_v26  ;;  %v5148_v32 = vld [vmem:[#allocation2 + $0x39c] sm:$0xf]  ;;  %v4743_v16 = vor.u32 %v5132_v48, %v4740_v23  ;;  %v5131_v52 = vld [vmem:[#allocation2 + $0x174] sm:$0xf0] }
 0x1b2   :  { %v1623_v15 = vmul.f32 %v1591_v47, %v950_v8  ;;  %2706 = vmatpush.bf16.msra.mxu0 %v4747_v42  ;;  %v4807_v4 = vor.u32 %v5148_v32, %v4804_v2  ;;  %v4803_v9 = vor.u32 %v5149_v57, %v4802_v11  ;;  %v4735_v27 = vor.u32 %v5130_v19, %v4732_v37  ;;  %v4796_v35 = vld [vmem:[#allocation2 + $0x378] sm:$0xf0]  ;;  %v4794_v40 = vld [vmem:[#allocation2 + $0x358] sm:$0xf]  ;;  %v8834_v2 = vld [vmem:[#allocation13_spill] sm:$0xff] }
 0x1b3   :  { %v1672_v58 = vpack.c.bf16 %v1624_v30, %v1622_v54  ;;  %2755 = vmatpush.bf16.msra.mxu1 %v4811_v46  ;;  %v4799_v34 = vor.u32 %v5146_v36, %v4796_v35  ;;  %v4731_v31 = vor.u32 %v5131_v52, %v4730_v22  ;;  %v5147_v63 = vld [vmem:[#allocation2 + $0x374] sm:$0xf0]  ;;  %v5128_v20 = vld [vmem:[#allocation2 + $0x11c] sm:$0xf]  ;;  %v8835_v52 = vld [vmem:[#allocation14_spill] sm:$0xff] }
 0x1b4   :  { %v1673_v62 = vpack.c.bf16 %v1625_v5, %v1623_v15  ;;  %2805 = vmatpush.bf16.msra.mxu2 %v4743_v16  ;;  %v4795_v24 = vor.u32 %v5147_v63, %v4794_v40  ;;  %v8832_v10 = vld [vmem:[#allocation11_spill] sm:$0xff]  ;;  %v8833_v16 = vld [vmem:[#allocation12_spill] sm:$0xff] }
 0x1b5   :  { %2854 = vmatpush.bf16.msra.mxu3 %v4807_v4  ;;  %v4724_v8 = vld [vmem:[#allocation2 + $0x138] sm:$0xf0]  ;;  %v4722_v41 = vld [vmem:[#allocation2 + $0x118] sm:$0xf] }
 0x1b6   :  { %2707 = vmatpush.bf16.msra.mxu0 %v4739_v14  ;;  %v5144_v59 = vld [vmem:[#allocation2 + $0x31c] sm:$0xf]  ;;  %v4727_v30 = vor.u32 %v5128_v20, %v4724_v8  ;;  %v5129_v12 = vld [vmem:[#allocation2 + $0x134] sm:$0xf0] }
 0x1b7   :  { %2756 = vmatpush.bf16.msra.mxu1 %v4803_v9  ;;  %v4788_v47 = vld [vmem:[#allocation2 + $0x338] sm:$0xf0]  ;;  %v4786_v42 = vld [vmem:[#allocation2 + $0x318] sm:$0xf] }
 0x1b8   :  { %2806 = vmatpush.bf16.msra.mxu2 %v4735_v27  ;;  %v4791_v54 = vor.u32 %v5144_v59, %v4788_v47  ;;  %v5145_v53 = vld [vmem:[#allocation2 + $0x334] sm:$0xf0]  ;;  %v5126_v14 = vld [vmem:[#allocation2 + $0xdc] sm:$0xf] }
 0x1b9   :  { %1909 = vmatmul.bf16.gmra.mxu0 %v1672_v58  ;;  %2007 = vmatmul.bf16.gmra.mxu2 %v1672_v58  ;;  %v4723_v58 = vor.u32 %v5129_v12, %v4722_v41  ;;  %v4787_v48 = vor.u32 %v5145_v53, %v4786_v42  ;;  %v4716_v57 = vld [vmem:[#allocation2 + $0xf8] sm:$0xf0]  ;;  %v5127_v19 = vld [vmem:[#allocation2 + $0xf4] sm:$0xf0]  ;;  %v8838_v42 = vld [vmem:[#allocation17_spill] sm:$0xff] }
 0x1ba   :  { %1958 = vmatmul.bf16.gmra.mxu1 %v1673_v62  ;;  %2056 = vmatmul.bf16.gmra.mxu3 %v1673_v62  ;;  %v5143_v27 = vld [vmem:[#allocation2 + $0x2f4] sm:$0xf0] }
 0x1bb   :  { %2855 = vmatpush.bf16.msra.mxu3 %v4799_v34  ;;  %2708 = vmatpush.bf16.msra.mxu0 %v4731_v31  ;;  %v4706_v8 = vld [vmem:[#allocation2 + $0x98] sm:$0xf] }
 0x1bc   :  { %2757 = vmatpush.bf16.msra.mxu1 %v4795_v24  ;;  %2807 = vmatpush.bf16.msra.mxu2 %v4727_v30  ;;  %v4708_v24 = vld [vmem:[#allocation2 + $0xb8] sm:$0xf0]  ;;  %v5125_v59 = vld [vmem:[#allocation2 + $0xb4] sm:$0xf0] }
 0x1bd   :  { %v4707_v30 = vor.u32 %v5125_v59, %v4706_v8  ;;  %v4770_v47 = vld [vmem:[#allocation2 + $0x298] sm:$0xf] }
 0x1be   :  { %v4754_v8 = vld [vmem:[#allocation2 + $0x218] sm:$0xf] }
 0x1bf   :  { %2856 = vmatpush.bf16.msra.mxu3 %v4791_v54  ;;  %2709 = vmatpush.bf16.msra.mxu0 %v4723_v58  ;;  %v8837_v58 = vld [vmem:[#allocation16_spill] sm:$0xff]  ;;  %v5137_v59 = vld [vmem:[#allocation2 + $0x234] sm:$0xf0] }
 0x1c0   :  { %2758 = vmatpush.bf16.msra.mxu1 %v4787_v48 }
 0x1c5   :  { %v1875_v61 = vpop.f32.mrf.mxu0 }
 0x1c6   :  { %v1924_v0 = vpop.f32.mrf.mxu1 }
 0x1c7   :  { %v1925_v45 = vadd.f32 %v1924_v0, %v1875_v61  ;;  %v5142_v61 = vld [vmem:[#allocation2 + $0x2dc] sm:$0xf]  ;;  %v4719_v0 = vor.u32 %v5126_v14, %v4716_v57 }
 0x1c9   :  { %2424 = vmatmul.bf16.vlgmr.msrb.gmra.mxu2 %v8829_v28  ;;  %2326 = vmatmul.bf16.vlgmr.msrb.gmra.mxu0 %v8829_v28  ;;  %2094 = vst [vmem:[%s8591_s3] sm:$0xff] %v1925_v45  ;;  %v4780_v45 = vld [vmem:[#allocation2 + $0x2f8] sm:$0xf0] }
 0x1ca   :  { %2375 = vmatmul.bf16.vlgmr.msrb.gmra.mxu1 %v8830_v50  ;;  %2473 = vmatmul.bf16.vlgmr.msrb.gmra.mxu3 %v8830_v50 }
 0x1cb   :  { %v1973_v18 = vpop.f32.mrf.mxu2  ;;  %2808 = vmatpush.bf16.msra.mxu2 %v4719_v0  ;;  %v5123_v0 = vld [vmem:[#allocation2 + $0x74] sm:$0xf0] }
 0x1cc   :  { %v2022_v38 = vpop.f32.mrf.mxu3 }
 0x1cd   :  { %v1877_v3 = vpop.f32.mrf.mxu0  ;;  %v2023_v1 = vadd.f32 %v2022_v38, %v1973_v18  ;;  %v4783_v38 = vor.u32 %v5142_v61, %v4780_v45 }
 0x1ce   :  { %v1926_v25 = vpop.f32.mrf.mxu1 }
 0x1cf   :  { %v1927_v13 = vadd.f32 %v1926_v25, %v1877_v3  ;;  %2095 = vst [vmem:[%s8591_s3 + $0x8] sm:$0xff] %v2023_v1  ;;  %2857 = vmatpush.bf16.msra.mxu3 %v4783_v38  ;;  %v4714_v1 = vld [vmem:[#allocation2 + $0xd8] sm:$0xf] }
 0x1d0   :  { %v4715_v36 = vor.u32 %v5127_v19, %v4714_v1  ;;  %v4778_v25 = vld [vmem:[#allocation2 + $0x2d8] sm:$0xf] }
 0x1d1   :  { %2096 = vst [vmem:[%s8591_s3 + $0x10] sm:$0xff] %v1927_v13  ;;  %v4779_v34 = vor.u32 %v5143_v27, %v4778_v25  ;;  %v4762_v38 = vld [vmem:[#allocation2 + $0x258] sm:$0xf]  ;;  %v8839_v27 = vld [vmem:[#allocation18_spill] sm:$0xff] }
 0x1d2   :  { %2710 = vmatpush.bf16.msra.mxu0 %v4715_v36 }
 0x1d3   :  { %v1975_v39 = vpop.f32.mrf.mxu2  ;;  %2759 = vmatpush.bf16.msra.mxu1 %v4779_v34 }
 0x1d4   :  { %v2024_v33 = vpop.f32.mrf.mxu3 }
 0x1d5   :  { %v1880_v43 = vpop.f32.mrf.mxu0  ;;  %v2025_v51 = vadd.f32 %v2024_v33, %v1975_v39  ;;  %v8836_v33 = vld [vmem:[#allocation15_spill] sm:$0xff] }
 0x1d6   :  { %v1929_v6 = vpop.f32.mrf.mxu1  ;;  %2711 = vmatpush.bf16.msra.mxu0 %v4707_v30 }
 0x1d7   :  { %v1930_v29 = vadd.f32 %v1929_v6, %v1880_v43  ;;  %2097 = vst [vmem:[%s8591_s3 + $0x18] sm:$0xff] %v2025_v51  ;;  %v5124_v51 = vld [vmem:[#allocation2 + $0x9c] sm:$0xf] }
 0x1d8   :  { %v5140_v6 = vld [vmem:[#allocation2 + $0x29c] sm:$0xf] }
 0x1d9   :  { %2429 = vmatmul.bf16.gmra.mxu2 %v8831_v60  ;;  %2331 = vmatmul.bf16.gmra.mxu0 %v8831_v60  ;;  %2098 = vst [vmem:[%s8591_s3 + $0x20] sm:$0xff] %v1930_v29 }
 0x1da   :  { %2380 = vmatmul.bf16.gmra.mxu1 %v8832_v10  ;;  %2478 = vmatmul.bf16.gmra.mxu3 %v8832_v10 }
 0x1db   :  { %v1978_v17 = vpop.f32.mrf.mxu2 }
 0x1dc   :  { %v2027_v7 = vpop.f32.mrf.mxu3 }
 0x1dd   :  { %v1882_v44 = vpop.f32.mrf.mxu0  ;;  %v2028_v21 = vadd.f32 %v2027_v7, %v1978_v17  ;;  %v4711_v17 = vor.u32 %v5124_v51, %v4708_v24  ;;  %v4772_v7 = vld [vmem:[#allocation2 + $0x2b8] sm:$0xf0] }
 0x1de   :  { %v1931_v56 = vpop.f32.mrf.mxu1  ;;  %v4756_v24 = vld [vmem:[#allocation2 + $0x238] sm:$0xf0] }
 0x1df   :  { %v1932_v5 = vadd.f32 %v1931_v56, %v1882_v44  ;;  %2099 = vst [vmem:[%s8591_s3 + $0x28] sm:$0xff] %v2028_v21  ;;  %v4775_v21 = vor.u32 %v5140_v6, %v4772_v7  ;;  %2809 = vmatpush.bf16.msra.mxu2 %v4711_v17  ;;  %v4690_v7 = vld [vmem:[#allocation2 + $0x18] sm:$0xf] }
 0x1e1   :  { %2100 = vst [vmem:[%s8591_s3 + $0x30] sm:$0xff] %v1932_v5  ;;  %2858 = vmatpush.bf16.msra.mxu3 %v4775_v21  ;;  %v5141_v5 = vld [vmem:[#allocation2 + $0x2b4] sm:$0xf0] }
 0x1e2   :  { %v4771_v41 = vor.u32 %v5141_v5, %v4770_v47  ;;  %v4755_v47 = vor.u32 %v5137_v59, %v4754_v8 }
 0x1e3   :  { %v1980_v15 = vpop.f32.mrf.mxu2 }
 0x1e4   :  { %v2029_v26 = vpop.f32.mrf.mxu3  ;;  %2760 = vmatpush.bf16.msra.mxu1 %v4771_v41  ;;  %v8842_v41 = vld [vmem:[#allocation21_spill] sm:$0xff] }
 0x1e5   :  { %v1885_v62 = vpop.f32.mrf.mxu0  ;;  %v2030_v46 = vadd.f32 %v2029_v26, %v1980_v15 }
 0x1e6   :  { %v1934_v23 = vpop.f32.mrf.mxu1 }
 0x1e7   :  { %v1935_v32 = vadd.f32 %v1934_v23, %v1885_v62  ;;  %2101 = vst [vmem:[%s8591_s3 + $0x38] sm:$0xff] %v2030_v46  ;;  %v5122_v23 = vld [vmem:[#allocation2 + $0x5c] sm:$0xf] }
 0x1e9   :  { %2434 = vmatmul.bf16.gmra.mxu2 %v8833_v16  ;;  %2336 = vmatmul.bf16.gmra.mxu0 %v8833_v16  ;;  %2102 = vst [vmem:[%s8591_s3 + $0x40] sm:$0xff] %v1935_v32  ;;  %v4700_v32 = vld [vmem:[#allocation2 + $0x78] sm:$0xf0] }
 0x1ea   :  { %2385 = vmatmul.bf16.gmra.mxu1 %v8834_v2  ;;  %2483 = vmatmul.bf16.gmra.mxu3 %v8834_v2 }
 0x1eb   :  { %v1983_v4 = vpop.f32.mrf.mxu2 }
 0x1ec   :  { %v2032_v55 = vpop.f32.mrf.mxu3 }
 0x1ed   :  { %v1887_v49 = vpop.f32.mrf.mxu0  ;;  %v2033_v11 = vadd.f32 %v2032_v55, %v1983_v4  ;;  %v5138_v4 = vld [vmem:[#allocation2 + $0x25c] sm:$0xf] }
 0x1ee   :  { %v1936_v9 = vpop.f32.mrf.mxu1 }
 0x1ef   :  { %v1937_v18 = vadd.f32 %v1936_v9, %v1887_v49  ;;  %2103 = vst [vmem:[%s8591_s3 + $0x48] sm:$0xff] %v2033_v11  ;;  %v4703_v49 = vor.u32 %v5122_v23, %v4700_v32  ;;  %v4764_v11 = vld [vmem:[#allocation2 + $0x278] sm:$0xf0]  ;;  %v4698_v9 = vld [vmem:[#allocation2 + $0x58] sm:$0xf] }
 0x1f0   :  { %v4767_v57 = vor.u32 %v5138_v4, %v4764_v11 }
 0x1f1   :  { %2104 = vst [vmem:[%s8591_s3 + $0x50] sm:$0xff] %v1937_v18  ;;  %2810 = vmatpush.bf16.msra.mxu2 %v4703_v49  ;;  %v4699_v18 = vor.u32 %v5123_v0, %v4698_v9 }
 0x1f2   :  { %2859 = vmatpush.bf16.msra.mxu3 %v4767_v57  ;;  %v8844_v57 = vld [vmem:[#allocation23_spill] sm:$0xff] }
 0x1f3   :  { %v1985_v3 = vpop.f32.mrf.mxu2  ;;  %2712 = vmatpush.bf16.msra.mxu0 %v4699_v18 }
 0x1f4   :  { %v2034_v37 = vpop.f32.mrf.mxu3 }
 0x1f5   :  { %v1890_v35 = vpop.f32.mrf.mxu0  ;;  %v2035_v13 = vadd.f32 %v2034_v37, %v1985_v3  ;;  %v5139_v3 = vld [vmem:[#allocation2 + $0x274] sm:$0xf0] }
 0x1f6   :  { %v1939_v39 = vpop.f32.mrf.mxu1  ;;  %v4763_v37 = vor.u32 %v5139_v3, %v4762_v38 }
 0x1f7   :  { %v1940_v22 = vadd.f32 %v1939_v39, %v1890_v35  ;;  %2105 = vst [vmem:[%s8591_s3 + $0x58] sm:$0xff] %v2035_v13  ;;  %v8840_v35 = vld [vmem:[#allocation19_spill] sm:$0xff] }
 0x1f8   :  { %2761 = vmatpush.bf16.msra.mxu1 %v4763_v37 }
 0x1f9   :  { %2439 = vmatmul.bf16.gmra.mxu2 %v8835_v52  ;;  %2341 = vmatmul.bf16.gmra.mxu0 %v8835_v52  ;;  %2106 = vst [vmem:[%s8591_s3 + $0x60] sm:$0xff] %v1940_v22 }
 0x1fa   :  { %2390 = vmatmul.bf16.gmra.mxu1 %v8836_v33  ;;  %2488 = vmatmul.bf16.gmra.mxu3 %v8836_v33 }
 0x1fb   :  { %v1988_v31 = vpop.f32.mrf.mxu2 }
 0x1fc   :  { %v2037_v40 = vpop.f32.mrf.mxu3  ;;  %2762 = vmatpush.bf16.msra.mxu1 %v4755_v47 }
 0x1fd   :  { %v1892_v63 = vpop.f32.mrf.mxu0  ;;  %v2038_v43 = vadd.f32 %v2037_v40, %v1988_v31  ;;  %v5120_v31 = vld [vmem:[#allocation2 + $0x1c] sm:$0xf] }
 0x1fe   :  { %v1941_v29 = vpop.f32.mrf.mxu1  ;;  %v4692_v40 = vld [vmem:[#allocation2 + $0x38] sm:$0xf0] }
 0x1ff   :  { %v1942_v44 = vadd.f32 %v1941_v29, %v1892_v63  ;;  %2107 = vst [vmem:[%s8591_s3 + $0x68] sm:$0xff] %v2038_v43  ;;  %v5136_v63 = vld [vmem:[#allocation2 + $0x21c] sm:$0xf]  ;;  %v4695_v51 = vor.u32 %v5120_v31, %v4692_v40 }
 0x200   :  { %v4759_v29 = vor.u32 %v5136_v63, %v4756_v24 }
 0x201   :  { %2108 = vst [vmem:[%s8591_s3 + $0x70] sm:$0xff] %v1942_v44  ;;  %2811 = vmatpush.bf16.msra.mxu2 %v4695_v51  ;;  %v5121_v44 = vld [vmem:[#allocation2 + $0x34] sm:$0xf0] }
 0x202   :  { %2860 = vmatpush.bf16.msra.mxu3 %v4759_v29  ;;  %v4908_v29 = vld [vmem:[#allocation4 + $0x178] sm:$0xf0] }
 0x203   :  { %v1990_v20 = vpop.f32.mrf.mxu2 }
 0x204   :  { %v2039_v56 = vpop.f32.mrf.mxu3 }
 0x205   :  { %v1895_v54 = vpop.f32.mrf.mxu0  ;;  %v2040_v15 = vadd.f32 %v2039_v56, %v1990_v20  ;;  %v4691_v20 = vor.u32 %v5121_v44, %v4690_v7  ;;  %v4972_v44 = vld [vmem:[#allocation4 + $0x1f8] sm:$0xf0] }
 0x206   :  { %v1944_v12 = vpop.f32.mrf.mxu1 }
 0x207   :  { %v1945_v26 = vadd.f32 %v1944_v12, %v1895_v54  ;;  %2109 = vst [vmem:[%s8591_s3 + $0x78] sm:$0xff] %v2040_v15  ;;  %2713 = vmatpush.bf16.msra.mxu0 %v4691_v20  ;;  %v8841_v15 = vld [vmem:[#allocation20_spill] sm:$0xff] }
 0x209   :  { %2444 = vmatmul.bf16.gmra.mxu2 %v8837_v58  ;;  %2346 = vmatmul.bf16.gmra.mxu0 %v8837_v58  ;;  %2110 = vst [vmem:[%s8591_s3 + $0x80] sm:$0xff] %v1945_v26 }
 0x20a   :  { %2395 = vmatmul.bf16.gmra.mxu1 %v8838_v42  ;;  %2493 = vmatmul.bf16.gmra.mxu3 %v8838_v42 }
 0x20b   :  { %v1993_v53 = vpop.f32.mrf.mxu2 }
 0x20c   :  { %v2042_v62 = vpop.f32.mrf.mxu3 }
 0x20d   :  { %v1897_v46 = vpop.f32.mrf.mxu0  ;;  %v2043_v48 = vadd.f32 %v2042_v62, %v1993_v53 }
 0x20e   :  { %v1946_v55 = vpop.f32.mrf.mxu1 }
 0x20f   :  { %v1947_v14 = vadd.f32 %v1946_v55, %v1897_v46  ;;  %2111 = vst [vmem:[%s8591_s3 + $0x88] sm:$0xff] %v2043_v48 }
 0x211   :  { %2112 = vst [vmem:[%s8591_s3 + $0x90] sm:$0xff] %v1947_v14  ;;  %v8843_v14 = vld [vmem:[#allocation22_spill] sm:$0xff] }
 0x213   :  { %v1995_v61 = vpop.f32.mrf.mxu2 }
 0x214   :  { %v2044_v45 = vpop.f32.mrf.mxu3 }
 0x215   :  { %v2045_v19 = vadd.f32 %v2044_v45, %v1995_v61 }
 0x216   :  { %v1900_v1 = vpop.f32.mrf.mxu0 }
 0x217   :  { %v1949_v36 = vpop.f32.mrf.mxu1  ;;  %2113 = vst [vmem:[%s8591_s3 + $0x98] sm:$0xff] %v2045_v19 }
 0x218   :  { %v1950_v25 = vadd.f32 %v1949_v36, %v1900_v1 }
 0x219   :  { %2449 = vmatmul.bf16.gmra.mxu2 %v8839_v27  ;;  %2351 = vmatmul.bf16.gmra.mxu0 %v8839_v27 }
 0x21a   :  { %2400 = vmatmul.bf16.gmra.mxu1 %v8840_v35  ;;  %2498 = vmatmul.bf16.gmra.mxu3 %v8840_v35  ;;  %2114 = vst [vmem:[%s8591_s3 + $0xa0] sm:$0xff] %v1950_v25 }
 0x21c   :  { %v1998_v13 = vpop.f32.mrf.mxu2 }
 0x21d   :  { %v2047_v34 = vpop.f32.mrf.mxu3 }
 0x21e   :  { %v1902_v39 = vpop.f32.mrf.mxu0  ;;  %v2048_v22 = vadd.f32 %v2047_v34, %v1998_v13 }
 0x21f   :  { %v1951_v43 = vpop.f32.mrf.mxu1 }
 0x220   :  { %v1952_v6 = vadd.f32 %v1951_v43, %v1902_v39  ;;  %2115 = vst [vmem:[%s8591_s3 + $0xa8] sm:$0xff] %v2048_v22 }
 0x222   :  { %2116 = vst [vmem:[%s8591_s3 + $0xb0] sm:$0xff] %v1952_v6  ;;  %v5166_v6 = vld [vmem:[#allocation4 + $0x174] sm:$0xf] }
 0x223   :  { %v4911_v7 = vor.u32 %v5166_v6, %v4908_v29 }
 0x224   :  { %v2000_v17 = vpop.f32.mrf.mxu2 }
 0x225   :  { %v2049_v21 = vpop.f32.mrf.mxu3  ;;  %3912 = vmatpush.bf16.msrb.mxu2 %v4911_v7 }
 0x226   :  { %v1905_v56 = vpop.f32.mrf.mxu0  ;;  %v2050_v30 = vadd.f32 %v2049_v21, %v2000_v17 }
 0x227   :  { %v1954_v5 = vpop.f32.mrf.mxu1 }
 0x228   :  { %v1955_v54 = vadd.f32 %v1954_v5, %v1905_v56  ;;  %2117 = vst [vmem:[%s8591_s3 + $0xb8] sm:$0xff] %v2050_v30 }
 0x229   :  { %2454 = vmatmul.bf16.gmra.mxu2 %v8841_v15  ;;  %2356 = vmatmul.bf16.gmra.mxu0 %v8841_v15 }
 0x22a   :  { %2405 = vmatmul.bf16.gmra.mxu1 %v8842_v41  ;;  %2503 = vmatmul.bf16.gmra.mxu3 %v8842_v41  ;;  %2118 = vst [vmem:[%s8591_s3 + $0xc0] sm:$0xff] %v1955_v54  ;;  %v4906_v54 = vld [vmem:[#allocation4 + $0x170] sm:$0xf] }
 0x22c   :  { %v2003_v12 = vpop.f32.mrf.mxu2 }
 0x22d   :  { %v2052_v26 = vpop.f32.mrf.mxu3 }
 0x22e   :  { %v1907_v53 = vpop.f32.mrf.mxu0  ;;  %v2053_v62 = vadd.f32 %v2052_v26, %v2003_v12  ;;  %v5167_v12 = vld [vmem:[#allocation4 + $0x174] sm:$0xf0]  ;;  %v4970_v26 = vld [vmem:[#allocation4 + $0x1f0] sm:$0xf] }
 0x22f   :  { %v1956_v46 = vpop.f32.mrf.mxu1 }
 0x230   :  { %v1957_v48 = vadd.f32 %v1956_v46, %v1907_v53  ;;  %2119 = vst [vmem:[%s8591_s3 + $0xc8] sm:$0xff] %v2053_v62 }
 0x232   :  { %2120 = vst [vmem:[%s8591_s3 + $0xd0] sm:$0xff] %v1957_v48  ;;  %v4907_v48 = vor.u32 %v5167_v12, %v4906_v54 }
 0x234   :  { %v2005_v23 = vpop.f32.mrf.mxu2  ;;  %3814 = vmatpush.bf16.msrb.mxu0 %v4907_v48  ;;  %v4954_v48 = vld [vmem:[#allocation4 + $0x1d0] sm:$0xf] }
 0x235   :  { %v2054_v32 = vpop.f32.mrf.mxu3 }
 0x236   :  { %v1910_v4 = vpop.f32.mrf.mxu0  ;;  %v2055_v55 = vadd.f32 %v2054_v32, %v2005_v23 }
 0x237   :  { %v1959_v49 = vpop.f32.mrf.mxu1 }
 0x238   :  { %v1960_v11 = vadd.f32 %v1959_v49, %v1910_v4  ;;  %2121 = vst [vmem:[%s8591_s3 + $0xd8] sm:$0xff] %v2055_v55  ;;  %v5164_v55 = vld [vmem:[#allocation4 + $0x164] sm:$0xf]  ;;  %v4900_v49 = vld [vmem:[#allocation4 + $0x168] sm:$0xf0] }
 0x239   :  { %2459 = vmatmul.bf16.gmra.mxu2 %v8843_v14  ;;  %2361 = vmatmul.bf16.gmra.mxu0 %v8843_v14 }
 0x23a   :  { %2410 = vmatmul.bf16.gmra.mxu1 %v8844_v57  ;;  %2508 = vmatmul.bf16.gmra.mxu3 %v8844_v57  ;;  %2122 = vst [vmem:[%s8591_s3 + $0xe0] sm:$0xff] %v1960_v11 }
 0x23c   :  { %v2008_v61 = vpop.f32.mrf.mxu2 }
 0x23d   :  { %v2057_v9 = vpop.f32.mrf.mxu3 }
 0x23e   :  { %v1912_v0 = vpop.f32.mrf.mxu0  ;;  %v2058_v45 = vadd.f32 %v2057_v9, %v2008_v61 }
 0x23f   :  { %v1961_v18 = vpop.f32.mrf.mxu1 }
 0x240   :  { %v1962_v38 = vadd.f32 %v1961_v18, %v1912_v0  ;;  %2123 = vst [vmem:[%s8591_s3 + $0xe8] sm:$0xff] %v2058_v45  ;;  %v4903_v0 = vor.u32 %v5164_v55, %v4900_v49  ;;  %v5180_v45 = vld [vmem:[#allocation4 + $0x1e4] sm:$0xf]  ;;  %v4964_v18 = vld [vmem:[#allocation4 + $0x1e8] sm:$0xf0] }
 0x242   :  { %2124 = vst [vmem:[%s8591_s3 + $0xf0] sm:$0xff] %v1962_v38  ;;  %3913 = vmatpush.bf16.msrb.mxu2 %v4903_v0  ;;  %v4967_v38 = vor.u32 %v5180_v45, %v4964_v18  ;;  %v5176_v0 = vld [vmem:[#allocation4 + $0x1c4] sm:$0xf]  ;;  %v4948_v18 = vld [vmem:[#allocation4 + $0x1c8] sm:$0xf0] }
 0x244   :  { %v2010_v3 = vpop.f32.mrf.mxu2 }
 0x245   :  { %v2059_v1 = vpop.f32.mrf.mxu3 }
 0x246   :  { %v2060_v19 = vadd.f32 %v2059_v1, %v2010_v3  ;;  %v2327_v37 = vpop.f32.mrf.mxu0 }
 0x247   :  { %v2376_v36 = vpop.f32.mrf.mxu1 }
 0x248   :  { %v7191_v25 = vadd.f32 %v2376_v36, %v2327_v37  ;;  %2125 = vst [vmem:[%s8591_s3 + $0xf8] sm:$0xff] %v2060_v19  ;;  %v4898_v19 = vld [vmem:[#allocation4 + $0x160] sm:$0xf] }
 0x249   :  { %2812 = vmatmul.bf16.vlgmr.msra.gmra.mxu2 %v8829_v28  ;;  %2714 = vmatmul.bf16.vlgmr.msra.gmra.mxu0 %v8829_v28 }
 0x24a   :  { %2763 = vmatmul.bf16.vlgmr.msra.gmra.mxu1 %v8830_v50  ;;  %2861 = vmatmul.bf16.vlgmr.msra.gmra.mxu3 %v8830_v50  ;;  %v5182_v50 = vld [vmem:[#allocation4 + $0x1f4] sm:$0xf] }
 0x24b   :  { %v4975_v21 = vor.u32 %v5182_v50, %v4972_v44  ;;  %v5162_v44 = vld [vmem:[#allocation4 + $0x154] sm:$0xf] }
 0x24c   :  { %v2425_v13 = vpop.f32.mrf.mxu2 }
 0x24d   :  { %v2474_v34 = vpop.f32.mrf.mxu3  ;;  %3961 = vmatpush.bf16.msrb.mxu3 %v4975_v21  ;;  %v4892_v21 = vld [vmem:[#allocation4 + $0x158] sm:$0xf0] }
 0x24e   :  { %v2329_v39 = vpop.f32.mrf.mxu0  ;;  %v7200_v22 = vadd.f32 %v2474_v34, %v2425_v13 }
 0x24f   :  { %v2378_v31 = vpop.f32.mrf.mxu1 }
 0x250   :  { %v7202_v40 = vadd.f32 %v2378_v31, %v2329_v39  ;;  %v4962_v31 = vld [vmem:[#allocation4 + $0x1e0] sm:$0xf] }
 0x251   :  { %3962 = vmatpush.bf16.msrb.mxu3 %v4967_v38  ;;  %v4951_v38 = vor.u32 %v5176_v0, %v4948_v18  ;;  %v5174_v0 = vld [vmem:[#allocation4 + $0x1b4] sm:$0xf] }
 0x254   :  { %v2427_v63 = vpop.f32.mrf.mxu2 }
 0x255   :  { %v2476_v43 = vpop.f32.mrf.mxu3 }
 0x256   :  { %v2332_v51 = vpop.f32.mrf.mxu0  ;;  %v7204_v28 = vadd.f32 %v2476_v43, %v2427_v63  ;;  %v5181_v63 = vld [vmem:[#allocation4 + $0x1e4] sm:$0xf0] }
 0x257   :  { %v2381_v24 = vpop.f32.mrf.mxu1  ;;  %v4963_v43 = vor.u32 %v5181_v63, %v4962_v31  ;;  %v5161_v31 = vld [vmem:[#allocation4 + $0x144] sm:$0xf0]  ;;  %v4946_v63 = vld [vmem:[#allocation4 + $0x1c0] sm:$0xf] }
 0x258   :  { %v7206_v17 = vadd.f32 %v2381_v24, %v2332_v51 }
 0x259   :  { %2817 = vmatmul.bf16.gmra.mxu2 %v8831_v60  ;;  %2719 = vmatmul.bf16.gmra.mxu0 %v8831_v60  ;;  %v5183_v60 = vld [vmem:[#allocation4 + $0x1f4] sm:$0xf0] }
 0x25a   :  { %2768 = vmatmul.bf16.gmra.mxu1 %v8832_v10  ;;  %2866 = vmatmul.bf16.gmra.mxu3 %v8832_v10  ;;  %v4971_v10 = vor.u32 %v5183_v60, %v4970_v26 }
 0x25c   :  { %v2430_v20 = vpop.f32.mrf.mxu2  ;;  %3863 = vmatpush.bf16.msrb.mxu1 %v4971_v10  ;;  %v5179_v10 = vld [vmem:[#allocation4 + $0x1d4] sm:$0xf0] }
 0x25d   :  { %v2479_v8 = vpop.f32.mrf.mxu3  ;;  %v4955_v49 = vor.u32 %v5179_v10, %v4954_v48  ;;  %v5158_v10 = vld [vmem:[#allocation4 + $0x134] sm:$0xf] }
 0x25e   :  { %v2334_v59 = vpop.f32.mrf.mxu0  ;;  %v7212_v56 = vadd.f32 %v2479_v8, %v2430_v20  ;;  %v5178_v20 = vld [vmem:[#allocation4 + $0x1d4] sm:$0xf]  ;;  %v4956_v8 = vld [vmem:[#allocation4 + $0x1d8] sm:$0xf0] }
 0x25f   :  { %v2383_v30 = vpop.f32.mrf.mxu1 }
 0x260   :  { %v7214_v47 = vadd.f32 %v2383_v30, %v2334_v59  ;;  %3864 = vmatpush.bf16.msrb.mxu1 %v4963_v43  ;;  %v4895_v30 = vor.u32 %v5162_v44, %v4892_v21  ;;  %v4818_v44 = vmul.f32 -1.442695, %v7202_v40  ;;  %v4821_v48 = vmul.f32 -1.442695, %v7212_v56 }
 0x262   :  { %3914 = vmatpush.bf16.msrb.mxu2 %v4895_v30  ;;  %v4820_v30 = vmul.f32 -1.442695, %v7206_v17 }
 0x264   :  { %v2432_v5 = vpop.f32.mrf.mxu2  ;;  %3865 = vmatpush.bf16.msrb.mxu1 %v4955_v49 }
 0x265   :  { %v2481_v53 = vpop.f32.mrf.mxu3 }
 0x266   :  { %v2337_v62 = vpop.f32.mrf.mxu0  ;;  %v7217_v23 = vadd.f32 %v2481_v53, %v2432_v5  ;;  %v4959_v5 = vor.u32 %v5178_v20, %v4956_v8  ;;  %v4890_v53 = vld [vmem:[#allocation4 + $0x150] sm:$0xf] }
 0x267   :  { %v2386_v46 = vpop.f32.mrf.mxu1 }
 0x268   :  { %v7220_v32 = vadd.f32 %v2386_v46, %v2337_v62  ;;  %3963 = vmatpush.bf16.msrb.mxu3 %v4959_v5  ;;  %v5163_v62 = vld [vmem:[#allocation4 + $0x154] sm:$0xf0] }
 0x269   :  { %2822 = vmatmul.bf16.gmra.mxu2 %v8833_v16  ;;  %2724 = vmatmul.bf16.gmra.mxu0 %v8833_v16  ;;  %v4891_v55 = vor.u32 %v5163_v62, %v4890_v53 }
 0x26a   :  { %2773 = vmatmul.bf16.gmra.mxu1 %v8834_v2  ;;  %2871 = vmatmul.bf16.gmra.mxu3 %v8834_v2  ;;  %v5165_v2 = vld [vmem:[#allocation4 + $0x164] sm:$0xf0] }
 0x26b   :  { %v4899_v39 = vor.u32 %v5165_v2, %v4898_v19 }
 0x26c   :  { %v2435_v4 = vpop.f32.mrf.mxu2  ;;  %3964 = vmatpush.bf16.msrb.mxu3 %v4951_v38 }
 0x26d   :  { %v2484_v11 = vpop.f32.mrf.mxu3  ;;  %3815 = vmatpush.bf16.msrb.mxu0 %v4899_v39  ;;  %v4882_v39 = vld [vmem:[#allocation4 + $0x140] sm:$0xf] }
 0x26e   :  { %v2339_v61 = vpop.f32.mrf.mxu0  ;;  %v7224_v16 = vadd.f32 %v2484_v11, %v2435_v4 }
 0x26f   :  { %v2388_v9 = vpop.f32.mrf.mxu1 }
 0x270   :  { %v7226_v1 = vadd.f32 %v2388_v9, %v2339_v61  ;;  %v5160_v61 = vld [vmem:[#allocation4 + $0x144] sm:$0xf]  ;;  %v4884_v9 = vld [vmem:[#allocation4 + $0x148] sm:$0xf0] }
 0x271   :  { %3816 = vmatpush.bf16.msrb.mxu0 %v4891_v55  ;;  %v4887_v45 = vor.u32 %v5160_v61, %v4884_v9  ;;  %v4876_v55 = vld [vmem:[#allocation4 + $0x138] sm:$0xf0] }
 0x272   :  { %8845 = vst [vmem:[#allocation26_spill] sm:$0xff] %v7226_v1  ;;  %v4879_v61 = vor.u32 %v5158_v10, %v4876_v55 }
 0x273   :  { %3915 = vmatpush.bf16.msrb.mxu2 %v4887_v45  ;;  %v4940_v45 = vld [vmem:[#allocation4 + $0x1b8] sm:$0xf0] }
 0x274   :  { %v2437_v3 = vpop.f32.mrf.mxu2 }
 0x275   :  { %v2486_v37 = vpop.f32.mrf.mxu3 }
 0x276   :  { %v2342_v36 = vpop.f32.mrf.mxu0  ;;  %v7228_v13 = vadd.f32 %v2486_v37, %v2437_v3  ;;  %v4816_v37 = vmul.f32 -1.442695, %v7191_v25 }
 0x277   :  { %v2391_v34 = vpop.f32.mrf.mxu1  ;;  %3916 = vmatpush.bf16.msrb.mxu2 %v4879_v61 }
 0x278   :  { %8846 = vst [vmem:[#allocation28_spill] sm:$0xff] %v7228_v13  ;;  %v7234_v6 = vadd.f32 %v2391_v34, %v2342_v36  ;;  %v4817_v34 = vmul.f32 -1.442695, %v7200_v22  ;;  %5319 = vpow2.f32 %v4816_v37  ;;  %v4822_v37 = vmul.f32 -1.442695, %v7214_v47 }
 0x279   :  { %2827 = vmatmul.bf16.gmra.mxu2 %v8835_v52  ;;  %2729 = vmatmul.bf16.gmra.mxu0 %v8835_v52 }
 0x27a   :  { %2778 = vmatmul.bf16.gmra.mxu1 %v8836_v33  ;;  %2876 = vmatmul.bf16.gmra.mxu3 %v8836_v33  ;;  %8847 = vst [vmem:[#allocation41_spill] sm:$0xff] %v7234_v6  ;;  %5321 = vpow2.f32 %v4817_v34  ;;  %v4943_v34 = vor.u32 %v5174_v0, %v4940_v45 }
 0x27b   :  { %5323 = vpow2.f32 %v4818_v44  ;;  %v5159_v44 = vld [vmem:[#allocation4 + $0x134] sm:$0xf0] }
 0x27c   :  { %v2440_v51 = vpop.f32.mrf.mxu2  ;;  %3965 = vmatpush.bf16.msrb.mxu3 %v4943_v34 }
 0x27d   :  { %v2489_v24 = vpop.f32.mrf.mxu3 }
 0x27e   :  { %v2344_v29 = vpop.f32.mrf.mxu0  ;;  %v7236_v7 = vadd.f32 %v2489_v24, %v2440_v51  ;;  %v5177_v51 = vld [vmem:[#allocation4 + $0x1c4] sm:$0xf0] }
 0x27f   :  { %v2393_v50 = vpop.f32.mrf.mxu1  ;;  %v4947_v21 = vor.u32 %v5177_v51, %v4946_v63 }
 0x280   :  { %8848 = vst [vmem:[#allocation24_spill] sm:$0xff] %v7236_v7  ;;  %v7240_v33 = vadd.f32 %v2393_v50, %v2344_v29  ;;  %v4883_v29 = vor.u32 %v5161_v31, %v4882_v39 }
 0x281   :  { %3866 = vmatpush.bf16.msrb.mxu1 %v4947_v21 }
 0x282   :  { %8849 = vst [vmem:[#allocation25_spill] sm:$0xff] %v7240_v33  ;;  %3817 = vmatpush.bf16.msrb.mxu0 %v4883_v29  ;;  %v4874_v29 = vld [vmem:[#allocation4 + $0x130] sm:$0xf] }
 0x284   :  { %v2442_v52 = vpop.f32.mrf.mxu2 }
 0x285   :  { %v2491_v59 = vpop.f32.mrf.mxu3 }
 0x286   :  { %v2347_v54 = vpop.f32.mrf.mxu0  ;;  %v7248_v11 = vadd.f32 %v2491_v59, %v2442_v52  ;;  %v5320_v52 = vpop.eup %5319 }
 0x287   :  { %v2396_v12 = vpop.f32.mrf.mxu1  ;;  %v5322_v59 = vpop.eup %5321 }
 0x288   :  { %8850 = vst [vmem:[#allocation31_spill] sm:$0xff] %v7248_v11  ;;  %v5324_v53 = vpop.eup %5323 }
 0x289   :  { %2832 = vmatmul.bf16.gmra.mxu2 %v8837_v58  ;;  %2734 = vmatmul.bf16.gmra.mxu0 %v8837_v58  ;;  %v7250_v58 = vadd.f32 %v2396_v12, %v2347_v54  ;;  %v7279_v12 = vadd.f32 1.0, %v5322_v59  ;;  %v7286_v49 = vadd.f32 1.0, %v5324_v53  ;;  %v4823_v59 = vmul.f32 -1.442695, %v7217_v23 }
 0x28a   :  { %2783 = vmatmul.bf16.gmra.mxu1 %v8838_v42  ;;  %2881 = vmatmul.bf16.gmra.mxu3 %v8838_v42 }
 0x28b   :  { %vm3050_vm2 = vweird.f32 %v7279_v12  ;;  %vm3065_vm7 = vweird.f32 %v7286_v49 }
 0x28c   :  { %v2445_v26 = vpop.f32.mrf.mxu2 }
 0x28d   :  { %v2494_v60 = vpop.f32.mrf.mxu3 }
 0x28e   :  { %v7244_v46 = vpop.f32.mrf.mxu0  ;;  %v7252_v42 = vadd.f32 %v2494_v60, %v2445_v26 }
 0x28f   :  { %v7246_v4 = vpop.f32.mrf.mxu1 }
 0x294   :  { %v7254_v3 = vpop.f32.mrf.mxu2 }
 0x295   :  { %v7256_v19 = vpop.f32.mrf.mxu3 }
 0x296   :  { %v2352_v2 = vpop.f32.mrf.mxu0 }
 0x297   :  { %v2401_v36 = vpop.f32.mrf.mxu1 }
 0x298   :  { %v7262_v43 = vadd.f32 %v2401_v36, %v2352_v2 }
 0x299   :  { %2837 = vmatmul.bf16.gmra.mxu2 %v8839_v27  ;;  %2739 = vmatmul.bf16.gmra.mxu0 %v8839_v27  ;;  %v4819_v27 = vmul.f32 -1.442695, %v7204_v28 }
 0x29a   :  { %8851 = vst [vmem:[#allocation29_spill] sm:$0xff] %v7262_v43  ;;  %2788 = vmatmul.bf16.gmra.mxu1 %v8840_v35  ;;  %2886 = vmatmul.bf16.gmra.mxu3 %v8840_v35  ;;  %v7272_v35 = vadd.f32 1.0, %v5320_v52  ;;  %v5175_v52 = vld [vmem:[#allocation4 + $0x1b4] sm:$0xf0] }
 0x29b   :  { %5325 = vpow2.f32 %v4819_v27  ;;  %v4938_v27 = vld [vmem:[#allocation4 + $0x1b0] sm:$0xf] }
 0x29c   :  { %v2450_v24 = vpop.f32.mrf.mxu2  ;;  %5327 = vrcp.f32 %v7272_v35  ;;  %v4939_v10 = vor.u32 %v5175_v52, %v4938_v27  ;;  %v3039_v0 = vand.u32 2147483647, %v7272_v35  ;;  %v5172_v52 = vld [vmem:[#allocation4 + $0x1a4] sm:$0xf]  ;;  %vm3035_vm0 = vweird.f32 %v7272_v35 }
 0x29d   :  { %v2499_v50 = vpop.f32.mrf.mxu3  ;;  %5329 = vpow2.f32 %v4820_v30 }
 0x29e   :  { %v7267_v20 = vpop.f32.mrf.mxu0  ;;  %5331 = vrcp.f32 %v7279_v12  ;;  %v7298_v39 = vadd.f32 %v2499_v50, %v2450_v24  ;;  %v4875_v50 = vor.u32 %v5159_v44, %v4874_v29  ;;  %3867 = vmatpush.bf16.msrb.mxu1 %v4939_v10  ;;  %v4868_v44 = vld [vmem:[#allocation4 + $0x128] sm:$0xf0]  ;;  %vm7344_vm1 = vcmp.eq.f32.partialorder %v3039_v0, 8.507059e+37 }
 0x29f   :  { %8852 = vst [vmem:[#allocation30_spill] sm:$0xff] %v7267_v20  ;;  %v7270_v8 = vpop.f32.mrf.mxu1  ;;  %5333 = vpow2.f32 %v4821_v48  ;;  %v3041_v48 = vand.u32 2147483648, %v7272_v35  ;;  %v3056_v10 = vand.u32 2147483648, %v7279_v12  ;;  %v3069_v0 = vand.u32 2147483647, %v7286_v49 }
 0x2a0   :  { %8853 = vst [vmem:[#allocation32_spill] sm:$0xff] %v7270_v8  ;;  %5335 = vrcp.f32 %v7286_v49  ;;  %3818 = vmatpush.bf16.msrb.mxu0 %v4875_v50  ;;  %v5171_v8 = vld [vmem:[#allocation4 + $0x194] sm:$0xf0] }
 0x2a1   :  { %v5326_v62 = vpop.eup %5325  ;;  %8857 = vst [vmem:[#allocation35_spill] sm:$0xff] %v7298_v39  ;;  %vm7403_vm9 = vcmp.eq.f32.partialorder %v3069_v0, 8.507059e+37 }
 0x2a2   :  { %v7290_v9 = vadd.f32 1.0, %v5326_v62  ;;  %v7292_v38 = vpop.eup %5327 }
 0x2a3   :  { %v5330_v2 = vpop.eup %5329  ;;  %v3031_v63 = vmul.f32 %v7292_v38, %v7272_v35  ;;  %vm3036_vm3 = vweird.f32 %v7292_v38 }
 0x2a4   :  { %v7275_v5 = vpop.f32.mrf.mxu2  ;;  %v7302_v31 = vpop.eup %5331  ;;  %5337 = vrcp.f32 %v7290_v9  ;;  %v7307_v51 = vadd.f32 1.0, %v5330_v2  ;;  %vm7385_vm6 = vmor %vm3035_vm0, %vm3036_vm3  ;;  %vm3080_vm13 = vweird.f32 %v7290_v9 }
 0x2a5   :  { %8854 = vst [vmem:[#allocation33_spill] sm:$0xff] %v7275_v5  ;;  %v7277_v54 = vpop.f32.mrf.mxu3  ;;  %5339 = vpow2.f32 %v4822_v37  ;;  %v5334_v21 = vpop.eup %5333  ;;  %v3046_v24 = vmul.f32 %v7302_v31, %v7279_v12  ;;  %v3032_v62 = vsub.f32 1.0, %v3031_v63  ;;  %v5156_v63 = vld [vmem:[#allocation4 + $0x124] sm:$0xf]  ;;  %vm3051_vm4 = vweird.f32 %v7302_v31 }
 0x2a6   :  { %8855 = vst [vmem:[#allocation34_spill] sm:$0xff] %v7277_v54  ;;  %v2357_v26 = vpop.f32.mrf.mxu0  ;;  %v7314_v53 = vpop.eup %5335  ;;  %5341 = vrcp.f32 %v7307_v51  ;;  %v7323_v45 = vadd.f32 1.0, %v5334_v21  ;;  %vm7399_vm8 = vmor %vm3050_vm2, %vm3051_vm4  ;;  %vm3095_vm0 = vweird.f32 %v7307_v51 }
 0x2a7   :  { %v2406_v60 = vpop.f32.mrf.mxu1  ;;  %v3047_v34 = vsub.f32 1.0, %v3046_v24  ;;  %v3061_v27 = vmul.f32 %v7314_v53, %v7286_v49  ;;  %5343 = vpow2.f32 %v4823_v59  ;;  %v3033_v21 = vmul.f32 %v7292_v38, %v3032_v62 }
 0x2a8   :  { %v7325_v29 = vadd.f32 %v2406_v60, %v2357_v26  ;;  %5345 = vrcp.f32 %v7323_v45  ;;  %v3054_v62 = vand.u32 2147483647, %v7279_v12  ;;  %v3084_v12 = vand.u32 2147483647, %v7290_v9 }
 0x2a9   :  { %2842 = vmatmul.bf16.gmra.mxu2 %v8841_v15  ;;  %2744 = vmatmul.bf16.gmra.mxu0 %v8841_v15  ;;  %v3048_v59 = vmul.f32 %v7302_v31, %v3047_v34  ;;  %v3034_v34 = vadd.f32 %v7292_v38, %v3033_v21  ;;  %vm3066_vm10 = vweird.f32 %v7314_v53  ;;  %vm3110_vm3 = vweird.f32 %v7323_v45 }
 0x2aa   :  { %2793 = vmatmul.bf16.gmra.mxu1 %v8842_v41  ;;  %2891 = vmatmul.bf16.gmra.mxu3 %v8842_v41  ;;  %v7320_v61 = vpop.eup %5337  ;;  %8861 = vst [vmem:[#allocation43_spill] sm:$0xff] %v7325_v29  ;;  %vm7373_vm5 = vcmp.eq.f32.partialorder %v3054_v62, 8.507059e+37  ;;  %v4826_v62 = vmul.f32 -1.442695, %v7226_v1  ;;  %vm7441_vm12 = vmor %vm3065_vm7, %vm3066_vm10  ;;  %vm7446_vm14 = vcmp.eq.f32.partialorder %v3084_v12, 8.507059e+37 }
 0x2ab   :  { %v5340_v2 = vpop.eup %5339  ;;  %v3076_v26 = vmul.f32 %v7320_v61, %v7290_v9  ;;  %v3049_v39 = vadd.f32 %v7302_v31, %v3048_v59  ;;  %v3057_v59 = vor.u32 1.1754944e-38, %v3056_v10  ;;  %vm3081_vm11 = vweird.f32 %v7320_v61 }
 0x2ac   :  { %v2455_v18 = vpop.f32.mrf.mxu2  ;;  %v7340_v60 = vadd.f32 1.0, %v5340_v2  ;;  %v3062_v2 = vsub.f32 1.0, %v3061_v27  ;;  %v3071_v27 = vand.u32 2147483648, %v7286_v49  ;;  %vm7467_vm15 = vmor %vm3080_vm13, %vm3081_vm11  ;;  %v3114_v12 = vand.u32 2147483647, %v7323_v45 }
 0x2ad   :  { %v2504_v15 = vpop.f32.mrf.mxu3 }
 0x2ae   :  { %v7295_v36 = vpop.f32.mrf.mxu0  ;;  %5347 = vrcp.f32 %v7340_v60  ;;  %vm3125_vm7 = vweird.f32 %v7340_v60 }
 0x2af   :  { %8856 = vst [vmem:[#allocation39_spill] sm:$0xff] %v7295_v36  ;;  %v7300_v41 = vpop.f32.mrf.mxu1  ;;  %v3077_v36 = vsub.f32 1.0, %v3076_v26 }
 0x2b0   :  { %8858 = vst [vmem:[#allocation36_spill] sm:$0xff] %v7300_v41  ;;  %v7333_v41 = vor.u32 1.1754944e-38, %v3041_v48 }
 0x2b4   :  { %v7312_v30 = vpop.f32.mrf.mxu2 }
 0x2b5   :  { %8859 = vst [vmem:[#allocation37_spill] sm:$0xff] %v7312_v30  ;;  %v7318_v55 = vpop.f32.mrf.mxu3  ;;  %v7327_v30 = vadd.f32 %v2504_v15, %v2455_v18  ;;  %v4871_v18 = vor.u32 %v5156_v63, %v4868_v44  ;;  %v7342_v15 = vpop.eup %5341  ;;  %v4866_v44 = vld [vmem:[#allocation4 + $0x120] sm:$0xf] }
 0x2b6   :  { %8860 = vst [vmem:[#allocation38_spill] sm:$0xff] %v7318_v55  ;;  %v2362_v37 = vpop.f32.mrf.mxu0  ;;  %v4932_v55 = vld [vmem:[#allocation4 + $0x1a8] sm:$0xf0]  ;;  %v5344_v29 = vpop.eup %5343  ;;  %vm3096_vm2 = vweird.f32 %v7342_v15 }
 0x2b7   :  { %8862 = vst [vmem:[#allocation27_spill] sm:$0xff] %v7327_v30  ;;  %v2411_v50 = vpop.f32.mrf.mxu1  ;;  %v4935_v48 = vor.u32 %v5172_v52, %v4932_v55  ;;  %3917 = vmatpush.bf16.msrb.mxu2 %v4871_v18  ;;  %v4825_v55 = vmul.f32 -1.442695, %v7224_v16  ;;  %v5157_v52 = vld [vmem:[#allocation4 + $0x124] sm:$0xf0]  ;;  %v3091_v18 = vmul.f32 %v7342_v15, %v7307_v51  ;;  %vm7498_vm4 = vmor %vm3095_vm0, %vm3096_vm2 }
 0x2b9   :  { %2847 = vmatmul.bf16.gmra.mxu2 %v8843_v14  ;;  %2749 = vmatmul.bf16.gmra.mxu0 %v8843_v14  ;;  %v4824_v14 = vmul.f32 -1.442695, %v7220_v32 }
 0x2ba   :  { %2798 = vmatmul.bf16.gmra.mxu1 %v8844_v57  ;;  %2896 = vmatmul.bf16.gmra.mxu3 %v8844_v57  ;;  %v7361_v57 = vadd.f32 %v2411_v50, %v2362_v37 }
 0x2bb   :  { %3966 = vmatpush.bf16.msrb.mxu3 %v4935_v48  ;;  %5349 = vpow2.f32 %v4824_v14  ;;  %v7379_v48 = vpop.eup %5345  ;;  %v3038_v14 = vsel %vm7385_vm6, %v7292_v38, %v3034_v34  ;;  %v4827_v38 = vmul.f32 -1.442695, %v7228_v13  ;;  %v3086_v34 = vand.u32 2147483648, %v7290_v9 }
 0x2bc   :  { %v7356_v63 = vpop.f32.mrf.mxu2  ;;  %8865 = vst [vmem:[#allocation40_spill] sm:$0xff] %v7361_v57  ;;  %v3063_v57 = vmul.f32 %v7314_v53, %v3062_v2  ;;  %5351 = vpow2.f32 %v4825_v55  ;;  %v3072_v2 = vor.u32 1.1754944e-38, %v3071_v27  ;;  %v3106_v0 = vmul.f32 %v7379_v48, %v7323_v45  ;;  %v7416_v55 = vpop.eup %5347 }
 0x2bd   :  { %v7363_v30 = vpop.f32.mrf.mxu3  ;;  %5353 = vpow2.f32 %v4826_v62  ;;  %vm7527_vm6 = vcmp.eq.f32.partialorder %v3114_v12, 8.507059e+37  ;;  %vm3126_vm10 = vweird.f32 %v7416_v55 }
 0x2be   :  { %v7369_v21 = vpop.f32.mrf.mxu0  ;;  %v3064_v27 = vadd.f32 %v7314_v53, %v3063_v57  ;;  %vm7583_vm11 = vmor %vm3125_vm7, %vm3126_vm10 }
 0x2bf   :  { %8866 = vst [vmem:[#allocation42_spill] sm:$0xff] %v7369_v21  ;;  %v7377_v50 = vpop.f32.mrf.mxu1  ;;  %v4867_v21 = vor.u32 %v5157_v52, %v4866_v44  ;;  %v3078_v44 = vmul.f32 %v7320_v61, %v3077_v36  ;;  %v3092_v52 = vsub.f32 1.0, %v3091_v18  ;;  %v3043_v36 = vsel %vm7344_vm1, %v7333_v41, %v3038_v14 }
 0x2c0   :  { %8869 = vst [vmem:[#allocation44_spill] sm:$0xff] %v7377_v50  ;;  %v7395_v50 = vadd.f32 1.0, %v5344_v29  ;;  %v3053_v29 = vsel %vm7399_vm8, %v7302_v31, %v3049_v39  ;;  %v3099_v31 = vand.u32 2147483647, %v7307_v51  ;;  %v3068_v49 = vsel %vm7441_vm12, %v7314_v53, %v3064_v27  ;;  %v4930_v53 = vld [vmem:[#allocation4 + $0x1a0] sm:$0xf] }
 0x2c1   :  { %3819 = vmatpush.bf16.msrb.mxu0 %v4867_v21  ;;  %v5350_v39 = vpop.eup %5349  ;;  %v3101_v21 = vand.u32 2147483648, %v7307_v51  ;;  %v3058_v41 = vsel %vm7373_vm5, %v3057_v59, %v3053_v29  ;;  %v3079_v24 = vadd.f32 %v7320_v61, %v3078_v44  ;;  %v3093_v57 = vmul.f32 %v7342_v15, %v3092_v52 }
 0x2c2   :  { %5355 = vrcp.f32 %v7395_v50  ;;  %v5352_v14 = vpop.eup %5351  ;;  %v3107_v59 = vsub.f32 1.0, %v3106_v0  ;;  %v3121_v44 = vmul.f32 %v7416_v55, %v7340_v60  ;;  %v3087_v29 = vor.u32 1.1754944e-38, %v3086_v34  ;;  %v5173_v34 = vld [vmem:[#allocation4 + $0x1a4] sm:$0xf0] }
 0x2c3   :  { %5357 = vpow2.f32 %v4827_v38  ;;  %v7455_v38 = vmul.f32 %v3043_v36, %v7191_v25  ;;  %v7463_v9 = vmul.f32 %v3058_v41, %v7200_v22  ;;  %vm7472_vm1 = vcmp.eq.f32.partialorder %v3099_v31, 8.507059e+37  ;;  %v5354_v36 = vpop.eup %5353 }
 0x2c4   :  { %v7423_v18 = vpop.f32.mrf.mxu2  ;;  %v3102_v0 = vor.u32 1.1754944e-38, %v3101_v21  ;;  %v3083_v22 = vsel %vm7467_vm15, %v7320_v61, %v3079_v24  ;;  %v3094_v27 = vadd.f32 %v7342_v15, %v3093_v57  ;;  %v3073_v31 = vsel %vm7403_vm9, %v3072_v2, %v3068_v49 }
 0x2c5   :  { %8876 = vst [vmem:[#allocation45_spill] sm:$0xff] %v7423_v18  ;;  %v7429_v26 = vpop.f32.mrf.mxu3  ;;  %v3108_v21 = vmul.f32 %v7379_v48, %v3107_v59  ;;  %v3122_v35 = vsub.f32 1.0, %v3121_v44  ;;  %v3116_v61 = vand.u32 2147483648, %v7323_v45  ;;  %v4931_v24 = vor.u32 %v5173_v34, %v4930_v53  ;;  %v4858_v45 = vld [vmem:[#allocation4 + $0x110] sm:$0xf] }
 0x2c6   :  { %8877 = vst [vmem:[#allocation46_spill] sm:$0xff] %v7429_v26  ;;  %v7435_v62 = vpop.f32.mrf.mxu0  ;;  %v7460_v26 = vadd.f32 1.0, %v5350_v39  ;;  %v7481_v39 = vadd.f32 1.0, %v5352_v14  ;;  %v3088_v14 = vsel %vm7446_vm14, %v3087_v29, %v3083_v22  ;;  %v3129_v2 = vand.u32 2147483647, %v7340_v60 }
 0x2c7   :  { %v7452_v52 = vpop.f32.mrf.mxu1  ;;  %v3131_v59 = vand.u32 2147483648, %v7340_v60  ;;  %v7504_v44 = vadd.f32 1.0, %v5354_v36  ;;  %v3098_v53 = vsel %vm7498_vm4, %v7342_v15, %v3094_v27  ;;  %vm3111_vm5 = vweird.f32 %v7379_v48  ;;  %3868 = vmatpush.bf16.msrb.mxu1 %v4931_v24 }
 0x2c8   :  { %v7483_v41 = vpop.eup %5355  ;;  %5359 = vrcp.f32 %v7460_v26  ;;  %v4828_v51 = vmul.f32 -1.442695, %v7234_v6  ;;  %v3109_v29 = vadd.f32 %v7379_v48, %v3108_v21  ;;  %v3123_v34 = vmul.f32 %v7416_v55, %v3122_v35  ;;  %vm7549_vm9 = vmor %vm3110_vm3, %vm3111_vm5 }
 0x2c9   :  { %v5358_v18 = vpop.eup %5357  ;;  %5361 = vrcp.f32 %v7481_v39  ;;  %v3136_v36 = vmul.f32 %v7483_v41, %v7395_v50  ;;  %v7525_v15 = vmul.f32 %v3073_v31, %v7202_v40  ;;  %v3117_v24 = vor.u32 1.1754944e-38, %v3116_v61  ;;  %v5154_v40 = vld [vmem:[#allocation4 + $0x114] sm:$0xf]  ;;  %v4860_v31 = vld [vmem:[#allocation4 + $0x118] sm:$0xf0] }
 0x2ca   :  { %v7520_v22 = vadd.f32 1.0, %v5358_v18  ;;  %v4830_v6 = vmul.f32 -1.442695, %v7240_v33  ;;  %v7533_v21 = vmul.f32 %v3088_v14, %v7204_v28  ;;  %vm7536_vm8 = vcmp.eq.f32.partialorder %v3129_v2, 8.507059e+37  ;;  %v5170_v14 = vld [vmem:[#allocation4 + $0x194] sm:$0xf] }
 0x2cb   :  { %5363 = vrcp.f32 %v7504_v44  ;;  %v3103_v12 = vsel %vm7472_vm1, %v3102_v0, %v3098_v53  ;;  %v3132_v61 = vor.u32 1.1754944e-38, %v3131_v59  ;;  %v4924_v2 = vld [vmem:[#allocation4 + $0x198] sm:$0xf0]  ;;  %v3113_v33 = vsel %vm7549_vm9, %v7379_v48, %v3109_v29  ;;  %v5155_v53 = vld [vmem:[#allocation4 + $0x114] sm:$0xf0] }
 0x2cc   :  { %v7492_v57 = vpop.f32.mrf.mxu2  ;;  %5365 = vpow2.f32 %v4828_v51  ;;  %v3124_v25 = vadd.f32 %v7416_v55, %v3123_v34  ;;  %v3137_v0 = vsub.f32 1.0, %v3136_v36  ;;  %v3144_v5 = vand.u32 2147483647, %v7395_v50  ;;  %v4922_v28 = vld [vmem:[#allocation4 + $0x190] sm:$0xf] }
 0x2cd   :  { %v7506_v49 = vpop.f32.mrf.mxu3  ;;  %5367 = vrcp.f32 %v7520_v22  ;;  %v3146_v59 = vand.u32 2147483648, %v7395_v50  ;;  %v4863_v51 = vor.u32 %v5154_v40, %v4860_v31  ;;  %v4829_v29 = vmul.f32 -1.442695, %v7236_v7  ;;  %v5152_v31 = vld [vmem:[#allocation4 + $0x104] sm:$0xf] }
 0x2ce   :  { %v7514_v37 = vpop.f32.mrf.mxu0  ;;  %v7541_v35 = vpop.eup %5359  ;;  %5369 = vpow2.f32 %v4830_v6  ;;  %v4927_v34 = vor.u32 %v5170_v14, %v4924_v2  ;;  %v7570_v36 = vadd.f32 %v7363_v30, %v7356_v63  ;;  %v7575_v13 = vmul.f32 %v3103_v12, %v7206_v17  ;;  %v4852_v14 = vld [vmem:[#allocation4 + $0x108] sm:$0xf0] }
 0x2cf   :  { %v7522_v10 = vpop.f32.mrf.mxu1  ;;  %v7559_v54 = vpop.eup %5361  ;;  %v3151_v48 = vmul.f32 %v7541_v35, %v7460_v26  ;;  %v3118_v6 = vsel %vm7527_vm6, %v3117_v24, %v3113_v33  ;;  %v4831_v30 = vmul.f32 -1.442695, %v7248_v11  ;;  %3918 = vmatpush.bf16.msrb.mxu2 %v4863_v51  ;;  %v4859_v63 = vor.u32 %v5155_v53, %v4858_v45  ;;  %v5168_v24 = vld [vmem:[#allocation4 + $0x184] sm:$0xf]  ;;  %v4916_v12 = vld [vmem:[#allocation4 + $0x188] sm:$0xf0] }
 0x2d0   :  { %8894 = vst [vmem:[#allocation47_spill] sm:$0xff] %v7570_v36  ;;  %v3128_v33 = vsel %vm7583_vm11, %v7416_v55, %v3124_v25  ;;  %v3138_v60 = vmul.f32 %v7483_v41, %v3137_v0  ;;  %vm3140_vm12 = vweird.f32 %v7395_v50  ;;  %v3166_v27 = vmul.f32 %v7559_v54, %v7481_v39  ;;  %3967 = vmatpush.bf16.msrb.mxu3 %v4927_v34 }
 0x2d1   :  { %v7590_v17 = vpop.eup %5363  ;;  %v7601_v51 = vor.u32 1.1754944e-38, %v3146_v59  ;;  %v3159_v36 = vand.u32 2147483647, %v7460_v26  ;;  %v3161_v40 = vand.u32 2147483648, %v7460_v26  ;;  %3820 = vmatpush.bf16.msrb.mxu0 %v4859_v63  ;;  %v4923_v55 = vor.u32 %v5171_v8, %v4922_v28 }
 0x2d2   :  { %v5366_v53 = vpop.eup %5365  ;;  %v7608_v0 = vmul.f32 %v3118_v6, %v7212_v56  ;;  %vm7610_vm13 = vcmp.eq.f32.partialorder %v3144_v5, 8.507059e+37  ;;  %v3152_v11 = vsub.f32 1.0, %v3151_v48  ;;  %vm3155_vm14 = vweird.f32 %v7460_v26  ;;  %v5153_v6 = vld [vmem:[#allocation4 + $0x104] sm:$0xf0] }
 0x2d3   :  { %v7605_v25 = vpop.eup %5367  ;;  %5371 = vpow2.f32 %v4829_v29  ;;  %v4855_v59 = vor.u32 %v5152_v31, %v4852_v14  ;;  %v3133_v1 = vsel %vm7536_vm8, %v3132_v61, %v3128_v33  ;;  %v3176_v8 = vand.u32 2147483648, %v7481_v39  ;;  %3869 = vmatpush.bf16.msrb.mxu1 %v4923_v55  ;;  %v4850_v29 = vld [vmem:[#allocation4 + $0x100] sm:$0xf] }
 0x2d4   :  { %v7563_v43 = vpop.f32.mrf.mxu2  ;;  %v5370_v7 = vpop.eup %5369  ;;  %5373 = vpow2.f32 %v4831_v30  ;;  %v4919_v28 = vor.u32 %v5168_v24, %v4916_v12  ;;  %v3139_v56 = vadd.f32 %v7483_v41, %v3138_v60  ;;  %vm3141_vm15 = vweird.f32 %v7483_v41  ;;  %v4914_v24 = vld [vmem:[#allocation4 + $0x180] sm:$0xf]  ;;  %v5169_v12 = vld [vmem:[#allocation4 + $0x184] sm:$0xf0] }
 0x2d5   :  { %v7572_v20 = vpop.f32.mrf.mxu3  ;;  %v3167_v5 = vsub.f32 1.0, %v3166_v27  ;;  %v3181_v48 = vmul.f32 %v7590_v17, %v7504_v44  ;;  %3919 = vmatpush.bf16.msrb.mxu2 %v4855_v59  ;;  %v7622_v63 = vor.u32 1.1754944e-38, %v3161_v40  ;;  %v3174_v18 = vand.u32 2147483647, %v7481_v39  ;;  %vm7645_vm0 = vmor %vm3140_vm12, %vm3141_vm15 }
 0x2d6   :  { %v7588_v2 = vpop.f32.mrf.mxu0  ;;  %v7625_v61 = vadd.f32 1.0, %v5366_v53  ;;  %v2765_v30 = vadd.f32 %v7452_v52, %v7435_v62  ;;  %3968 = vmatpush.bf16.msrb.mxu3 %v4919_v28  ;;  %v7632_v14 = vmul.f32 %v3133_v1, %v7214_v47  ;;  %v3153_v33 = vmul.f32 %v7541_v35, %v3152_v11 }
 0x2d7   :  { %v7599_v45 = vpop.f32.mrf.mxu1  ;;  %v3196_v60 = vmul.f32 %v7605_v25, %v7520_v22  ;;  %v7637_v27 = vadd.f32 1.0, %v5370_v7  ;;  %vm3156_vm1 = vweird.f32 %v7541_v35  ;;  %vm3170_vm2 = vweird.f32 %v7481_v39 }
 0x2d8   :  { %v7651_v47 = vor.u32 1.1754944e-38, %v3176_v8  ;;  %v2767_v1 = vadd.f32 %v7522_v10, %v7514_v37  ;;  %v4851_v7 = vor.u32 %v5153_v6, %v4850_v29  ;;  %v3143_v50 = vsel %vm7645_vm0, %v7483_v41, %v3139_v56  ;;  %vm7692_vm6 = vmor %vm3155_vm14, %vm3156_vm1 }
 0x2d9   :  { %v5372_v52 = vpop.eup %5371  ;;  %vm7660_vm3 = vcmp.eq.f32.partialorder %v3159_v36, 8.507059e+37  ;;  %v3168_v55 = vmul.f32 %v7559_v54, %v3167_v5  ;;  %v3182_v59 = vsub.f32 1.0, %v3181_v48  ;;  %v3191_v8 = vand.u32 2147483648, %v7504_v44 }
 0x2da   :  { %v5374_v37 = vpop.eup %5373  ;;  %5375 = vrcp.f32 %v7625_v61  ;;  %v3542_v10 = vmul.f32 %v7455_v38, %v2765_v30  ;;  %v3544_v29 = vmul.f32 %v7525_v15, %v2767_v1  ;;  %3821 = vmatpush.bf16.msrb.mxu0 %v4851_v7  ;;  %v4915_v41 = vor.u32 %v5169_v12, %v4914_v24 }
 0x2db   :  { %v3154_v36 = vadd.f32 %v7541_v35, %v3153_v33  ;;  %vm3185_vm4 = vweird.f32 %v7504_v44  ;;  %v3189_v56 = vand.u32 2147483647, %v7504_v44  ;;  %v3197_v5 = vsub.f32 1.0, %v3196_v60 }
 0x2dc   :  { %v7629_v31 = vpop.f32.mrf.mxu2  ;;  %5377 = vrcp.f32 %v7637_v27  ;;  %v3148_v48 = vsel %vm7610_vm13, %v7601_v51, %v3143_v50  ;;  %vm3171_vm5 = vweird.f32 %v7559_v54  ;;  %v7679_v38 = vadd.f32 1.0, %v5372_v52  ;;  %3870 = vmatpush.bf16.msrb.mxu1 %v4915_v41 }
 0x2dd   :  { %v7639_v53 = vpop.f32.mrf.mxu3  ;;  %v3606_v15 = vpack.c.bf16 %v3544_v29, %v3542_v10  ;;  %v3183_v6 = vmul.f32 %v7590_v17, %v3182_v59  ;;  %v3192_v30 = vor.u32 1.1754944e-38, %v3191_v8  ;;  %v7682_v33 = vadd.f32 1.0, %v5374_v37  ;;  %vm7730_vm11 = vmor %vm3170_vm2, %vm3171_vm5 }
 0x2de   :  { %v7655_v11 = vpop.f32.mrf.mxu0  ;;  %v7686_v60 = vadd.f32 %v7246_v4, %v7244_v46  ;;  %v3169_v34 = vadd.f32 %v7559_v54, %v3168_v55  ;;  %vm7697_vm7 = vcmp.eq.f32.partialorder %v3174_v18, 8.507059e+37  ;;  %vm3200_vm8 = vweird.f32 %v7520_v22 }
 0x2df   :  { %v7666_v28 = vpop.f32.mrf.mxu1  ;;  %v3204_v12 = vand.u32 2147483647, %v7520_v22  ;;  %v3206_v46 = vand.u32 2147483648, %v7520_v22  ;;  %3822 = vmatmul.bf16.vlgmr.msrb.gmra.mxu0 %v3606_v15  ;;  %3920 = vmatmul.bf16.vlgmr.msrb.gmra.mxu2 %v3606_v15  ;;  %v7705_v26 = vmul.f32 %v3148_v48, %v7217_v23  ;;  %v3158_v62 = vsel %vm7692_vm6, %v7541_v35, %v3154_v36  ;;  %v8922_v15 = vld [vmem:[#allocation32_spill] sm:$0xff] }
 0x2e0   :  { %vm7710_vm9 = vcmp.eq.f32.partialorder %v3189_v56, 8.507059e+37  ;;  %v3198_v1 = vmul.f32 %v7605_v25, %v3197_v5  ;;  %v2865_v7 = vadd.f32 %v7572_v20, %v7563_v43  ;;  %v7717_v50 = vpop.eup %5375  ;;  %vm3186_vm10 = vweird.f32 %v7590_v17  ;;  %v8917_v43 = vld [vmem:[#allocation26_spill] sm:$0xff] }
 0x2e1   :  { %5379 = vrcp.f32 %v7679_v38  ;;  %v4832_v23 = vmul.f32 -1.442695, %v7250_v58  ;;  %v2863_v35 = vadd.f32 %v7506_v49, %v7492_v57  ;;  %v3184_v20 = vadd.f32 %v7590_v17, %v3183_v6  ;;  %vm7760_vm14 = vmor %vm3185_vm4, %vm3186_vm10 }
 0x2e2   :  { %v7724_v59 = vpop.eup %5377  ;;  %5381 = vrcp.f32 %v7682_v33  ;;  %v4834_v8 = vmul.f32 -1.442695, %v7686_v60  ;;  %v7739_v57 = vadd.f32 %v7256_v19, %v7254_v3  ;;  %v3163_v49 = vsel %vm7660_vm3, %v7622_v63, %v3158_v62 }
 0x2e3   :  { %v3173_v39 = vsel %vm7730_vm11, %v7559_v54, %v3169_v34  ;;  %vm7747_vm12 = vcmp.eq.f32.partialorder %v3204_v12, 8.507059e+37  ;;  %v3207_v10 = vor.u32 1.1754944e-38, %v3206_v46  ;;  %v3199_v41 = vadd.f32 %v7605_v25, %v3198_v1 }
 0x2e4   :  { %v2820_v4 = vpop.f32.mrf.mxu2  ;;  %vm3201_vm13 = vweird.f32 %v7605_v25  ;;  %v3211_v3 = vmul.f32 %v7717_v50, %v7625_v61  ;;  %v3545_v19 = vmul.f32 %v7533_v21, %v2865_v7  ;;  %v3241_v63 = vmul.f32 %v7724_v59, %v7637_v27 }
 0x2e5   :  { %v2869_v52 = vpop.f32.mrf.mxu3  ;;  %5383 = vpow2.f32 %v4832_v23  ;;  %v4833_v40 = vmul.f32 -1.442695, %v7252_v42  ;;  %v3543_v36 = vmul.f32 %v7463_v9, %v2863_v35  ;;  %v3188_v21 = vsel %vm7760_vm14, %v7590_v17, %v3184_v20  ;;  %vm7779_vm15 = vmor %vm3200_vm8, %vm3201_vm13 }
 0x2e6   :  { %v2725_v55 = vpop.f32.mrf.mxu0  ;;  %5385 = vpow2.f32 %v4834_v8  ;;  %v4835_v56 = vmul.f32 -1.442695, %v7739_v57  ;;  %v2770_v44 = vadd.f32 %v7599_v45, %v7588_v2  ;;  %v3518_v48 = vmul.f32 %v3163_v49, %v7220_v32 }
 0x2e7   :  { %v2774_v29 = vpop.f32.mrf.mxu1  ;;  %v7774_v5 = vpop.eup %5379  ;;  %v3219_v9 = vand.u32 2147483647, %v7625_v61  ;;  %v3221_v17 = vand.u32 2147483648, %v7625_v61  ;;  %v3607_v6 = vpack.c.bf16 %v3545_v19, %v3543_v36  ;;  %v3178_v2 = vsel %vm7697_vm7, %v7651_v47, %v3173_v39  ;;  %v8918_v39 = vld [vmem:[#allocation28_spill] sm:$0xff] }
 0x2e8   :  { %v7785_v34 = vpop.eup %5381  ;;  %v3203_v32 = vsel %vm7779_vm15, %v7605_v25, %v3199_v41  ;;  %v2868_v22 = vadd.f32 %v7639_v53, %v7629_v31  ;;  %v2772_v45 = vadd.f32 %v7666_v28, %v7655_v11  ;;  %v3193_v12 = vsel %vm7710_vm9, %v3192_v30, %v3188_v21 }
 0x2e9   :  { %v3212_v46 = vsub.f32 1.0, %v3211_v3  ;;  %vm3215_vm0 = vweird.f32 %v7625_v61  ;;  %v3242_v62 = vsub.f32 1.0, %v3241_v63  ;;  %5387 = vpow2.f32 %v4833_v40  ;;  %3871 = vmatmul.bf16.vlgmr.msrb.gmra.mxu1 %v3607_v6  ;;  %3969 = vmatmul.bf16.vlgmr.msrb.gmra.mxu3 %v3607_v6 }
 0x2ea   :  { %5389 = vpow2.f32 %v4835_v56  ;;  %v3546_v25 = vmul.f32 %v7575_v13, %v2770_v44  ;;  %v3548_v31 = vmul.f32 %v7632_v14, %v2772_v45  ;;  %v2870_v53 = vadd.f32 %v2869_v52, %v2820_v4  ;;  %v8921_v44 = vld [vmem:[#allocation30_spill] sm:$0xff] }
 0x2eb   :  { %v5384_v1 = vpop.eup %5383  ;;  %v3208_v11 = vsel %vm7747_vm12, %v3207_v10, %v3203_v32  ;;  %v7804_v28 = vor.u32 1.1754944e-38, %v3221_v17  ;;  %v3226_v30 = vmul.f32 %v7774_v5, %v7679_v38  ;;  %v3256_v18 = vmul.f32 %v7785_v34, %v7682_v33 }
 0x2ec   :  { %v2823_v51 = vpop.f32.mrf.mxu2  ;;  %v5386_v23 = vpop.eup %5385  ;;  %v3547_v35 = vmul.f32 %v7608_v0, %v2868_v22  ;;  %v3549_v13 = vmul.f32 %v7705_v26, %v2870_v53  ;;  %v3608_v14 = vpack.c.bf16 %v3548_v31, %v3546_v25  ;;  %v2775_v4 = vadd.f32 %v2774_v29, %v2725_v55 }
 0x2ed   :  { %v2872_v24 = vpop.f32.mrf.mxu3  ;;  %v3519_v52 = vmul.f32 %v3178_v2, %v7224_v16  ;;  %v3520_v20 = vmul.f32 %v3193_v12, %v8917_v43  ;;  %v3213_v8 = vmul.f32 %v7717_v50, %v3212_v46  ;;  %v3521_v37 = vmul.f32 %v3208_v11, %v8918_v39  ;;  %v8930_v39 = vld [vmem:[#allocation33_spill] sm:$0xff] }
 0x2ee   :  { %v2727_v47 = vpop.f32.mrf.mxu0  ;;  %vm3216_vm1 = vweird.f32 %v7717_v50  ;;  %v3243_v10 = vmul.f32 %v7724_v59, %v3242_v62  ;;  %v3609_v41 = vpack.c.bf16 %v3549_v13, %v3547_v35  ;;  %vm7818_vm2 = vcmp.eq.f32.partialorder %v3219_v9, 8.507059e+37 }
 0x2ef   :  { %v2776_v7 = vpop.f32.mrf.mxu1  ;;  %v5388_v3 = vpop.eup %5387  ;;  %v3227_v26 = vsub.f32 1.0, %v3226_v30  ;;  %vm3245_vm3 = vweird.f32 %v7637_v27  ;;  %v7823_v16 = vadd.f32 1.0, %v5384_v1  ;;  %v7825_v55 = vadd.f32 1.0, %v5386_v23  ;;  %3827 = vmatmul.bf16.gmra.mxu0 %v3608_v14  ;;  %3925 = vmatmul.bf16.gmra.mxu2 %v3608_v14  ;;  %vm7849_vm6 = vmor %vm3215_vm0, %vm3216_vm1 }
 0x2f0   :  { %v2777_v49 = vadd.f32 %v2776_v7, %v2727_v47  ;;  %v5390_v19 = vpop.eup %5389  ;;  %v3257_v54 = vsub.f32 1.0, %v3256_v18  ;;  %v3550_v63 = vmul.f32 %v3518_v48, %v2775_v4  ;;  %v2873_v40 = vadd.f32 %v2872_v24, %v2823_v51 }
 0x2f1   :  { %v3214_v21 = vadd.f32 %v7717_v50, %v3213_v8  ;;  %vm3230_vm4 = vweird.f32 %v7679_v38  ;;  %vm3246_vm5 = vweird.f32 %v7724_v59  ;;  %v3249_v56 = vand.u32 2147483647, %v7637_v27 }
 0x2f2   :  { %v3552_v36 = vmul.f32 %v3520_v20, %v2777_v49  ;;  %v7833_v9 = vadd.f32 %v8922_v15, %v8921_v44  ;;  %v3244_v2 = vadd.f32 %v7724_v59, %v3243_v10  ;;  %v7836_v32 = vadd.f32 1.0, %v5388_v3  ;;  %vm7864_vm7 = vmor %vm3245_vm3, %vm3246_vm5 }
 0x2f3   :  { %v3228_v22 = vmul.f32 %v7774_v5, %v3227_v26  ;;  %v3251_v45 = vand.u32 2147483648, %v7637_v27  ;;  %5391 = vrcp.f32 %v7823_v16  ;;  %v7843_v12 = vadd.f32 1.0, %v5390_v19 }
 0x2f4   :  { %v2825_v29 = vpop.f32.mrf.mxu2  ;;  %v7838_v51 = vpack.c.bf16 %v3552_v36, %v3550_v63  ;;  %v3258_v47 = vmul.f32 %v7785_v34, %v3257_v54  ;;  %5393 = vrcp.f32 %v7825_v55  ;;  %v3551_v24 = vmul.f32 %v3519_v52, %v2873_v40  ;;  %v8935_v54 = vld [vmem:[#allocation25_spill] sm:$0xff] }
 0x2f5   :  { %v2874_v6 = vpop.f32.mrf.mxu3  ;;  %v3218_v31 = vsel %vm7849_vm6, %v7717_v50, %v3214_v21  ;;  %v3234_v53 = vand.u32 2147483647, %v7679_v38  ;;  %v3236_v1 = vand.u32 2147483648, %v7679_v38  ;;  %v4838_v11 = vmul.f32 -1.442695, %v7833_v9  ;;  %v8927_v50 = vld [vmem:[#allocation29_spill] sm:$0xff] }
 0x2f6   :  { %v2730_v17 = vpop.f32.mrf.mxu0  ;;  %v2875_v48 = vadd.f32 %v2874_v6, %v2825_v29  ;;  %v3248_v30 = vsel %vm7864_vm7, %v7724_v59, %v3244_v2  ;;  %5395 = vrcp.f32 %v7836_v32  ;;  %v4836_v18 = vmul.f32 -1.442695, %v8927_v50  ;;  %v8934_v29 = vld [vmem:[#allocation41_spill] sm:$0xff] }
 0x2f7   :  { %v2779_v46 = vpop.f32.mrf.mxu1  ;;  %v3229_v23 = vadd.f32 %v7774_v5, %v3228_v22  ;;  %vm3231_vm8 = vweird.f32 %v7774_v5  ;;  %v3252_v27 = vor.u32 1.1754944e-38, %v3251_v45  ;;  %5397 = vrcp.f32 %v7843_v12  ;;  %v8936_v45 = vld [vmem:[#allocation35_spill] sm:$0xff] }
 0x2f8   :  { %v3553_v25 = vmul.f32 %v3521_v37, %v2875_v48  ;;  %v3223_v13 = vsel %vm7818_vm2, %v7804_v28, %v3218_v31  ;;  %vm3250_vm9 = vcmp.eq.f32.partialorder %v3249_v56, 8.507059e+37  ;;  %v3259_v59 = vadd.f32 %v7785_v34, %v3258_v47  ;;  %vm7894_vm11 = vmor %vm3230_vm4, %vm3231_vm8  ;;  %v8931_v37 = vld [vmem:[#allocation34_spill] sm:$0xff]  ;;  %v8938_v31 = vld [vmem:[#allocation36_spill] sm:$0xff] }
 0x2f9   :  { %vm3261_vm10 = vweird.f32 %v7785_v34  ;;  %v7884_v14 = vpop.eup %5391  ;;  %v3253_v4 = vsel %vm3250_vm9, %v3252_v27, %v3248_v30  ;;  %v3264_v52 = vand.u32 2147483647, %v7682_v33  ;;  %v3266_v43 = vand.u32 2147483648, %v7682_v33  ;;  %3876 = vmatmul.bf16.gmra.mxu1 %v3609_v41  ;;  %3974 = vmatmul.bf16.gmra.mxu3 %v3609_v41 }
 0x2fa   :  { %v7874_v7 = vpack.c.bf16 %v3553_v25, %v3551_v24  ;;  %5399 = vpow2.f32 %v4838_v11  ;;  %v7888_v49 = vpop.eup %5393  ;;  %vm3260_vm12 = vweird.f32 %v7682_v33  ;;  %v7901_v10 = vadd.f32 %v8931_v37, %v8930_v39  ;;  %v8937_v25 = vld [vmem:[#allocation39_spill] sm:$0xff]  ;;  %v8939_v11 = vld [vmem:[#allocation24_spill] sm:$0xff] }
 0x2fb   :  { %5401 = vpow2.f32 %v4836_v18  ;;  %v2780_v41 = vadd.f32 %v2779_v46, %v2730_v17  ;;  %v3233_v3 = vsel %vm7894_vm11, %v7774_v5, %v3229_v23  ;;  %vm3235_vm13 = vcmp.eq.f32.partialorder %v3234_v53, 8.507059e+37  ;;  %vm7908_vm14 = vmor %vm3260_vm12, %vm3261_vm10 }
 0x2fc   :  { %v2828_v35 = vpop.f32.mrf.mxu2  ;;  %v3237_v0 = vor.u32 1.1754944e-38, %v3236_v1  ;;  %v7912_v33 = vpop.eup %5395  ;;  %v3522_v19 = vmul.f32 %v3223_v13, %v8934_v29  ;;  %v3524_v63 = vmul.f32 %v3253_v4, %v8935_v54  ;;  %v3263_v40 = vsel %vm7908_vm14, %v7785_v34, %v3259_v59  ;;  %v8940_v59 = vld [vmem:[#allocation31_spill] sm:$0xff] }
 0x2fd   :  { %v2877_v8 = vpop.f32.mrf.mxu3  ;;  %v7919_v36 = vpop.eup %5397  ;;  %vm3265_vm15 = vcmp.eq.f32.partialorder %v3264_v52, 8.507059e+37  ;;  %v3267_v21 = vor.u32 1.1754944e-38, %v3266_v43  ;;  %v3271_v56 = vmul.f32 %v7884_v14, %v7823_v16  ;;  %v3301_v44 = vmul.f32 %v7888_v49, %v7825_v55  ;;  %v8941_v29 = vld [vmem:[#allocation43_spill] sm:$0xff] }
 0x2fe   :  { %v2732_v20 = vpop.f32.mrf.mxu0  ;;  %v3238_v15 = vsel %vm3235_vm13, %v3237_v0, %v3233_v3  ;;  %v4839_v17 = vmul.f32 -1.442695, %v7901_v10  ;;  %v3554_v6 = vmul.f32 %v3522_v19, %v2780_v41  ;;  %v3286_v34 = vmul.f32 %v7912_v33, %v7836_v32 }
 0x2ff   :  { %v2781_v26 = vpop.f32.mrf.mxu1  ;;  %v3268_v22 = vsel %vm3265_vm15, %v3267_v21, %v3263_v40  ;;  %v4837_v46 = vmul.f32 -1.442695, %v8936_v45  ;;  %3832 = vmatmul.bf16.gmra.mxu0 %v7838_v51  ;;  %3930 = vmatmul.bf16.gmra.mxu2 %v7838_v51  ;;  %v3316_v24 = vmul.f32 %v7919_v36, %v7843_v12  ;;  %v7935_v53 = vadd.f32 %v8938_v31, %v8937_v25  ;;  %v8948_v25 = vld [vmem:[#allocation37_spill] sm:$0xff]  ;;  %v8949_v31 = vld [vmem:[#allocation38_spill] sm:$0xff] }
 0x300   :  { %v2782_v5 = vadd.f32 %v2781_v26, %v2732_v20  ;;  %v5400_v48 = vpop.eup %5399  ;;  %v2878_v1 = vadd.f32 %v2877_v8, %v2828_v35  ;;  %v3523_v30 = vmul.f32 %v3238_v15, %v8939_v11  ;;  %v3272_v18 = vsub.f32 1.0, %v3271_v56 }
 0x301   :  { %v5402_v47 = vpop.eup %5401  ;;  %v3279_v23 = vand.u32 2147483647, %v7823_v16  ;;  %v3302_v27 = vsub.f32 1.0, %v3301_v44  ;;  %v3525_v4 = vmul.f32 %v3268_v22, %v8940_v59  ;;  %v7944_v52 = vadd.f32 1.0, %v5400_v48 }
 0x302   :  { %v3556_v2 = vmul.f32 %v3524_v63, %v2782_v5  ;;  %5403 = vpow2.f32 %v4839_v17  ;;  %v3281_v20 = vand.u32 2147483648, %v7823_v16  ;;  %v3287_v35 = vsub.f32 1.0, %v3286_v34  ;;  %v8960_v63 = vld [vmem:[#allocation44_spill] sm:$0xff] }
 0x303   :  { %v7947_v8 = vadd.f32 1.0, %v5402_v47  ;;  %5405 = vpow2.f32 %v4837_v46  ;;  %v3317_v39 = vsub.f32 1.0, %v3316_v24  ;;  %v4842_v37 = vmul.f32 -1.442695, %v7935_v53 }
 0x304   :  { %v2830_v62 = vpop.f32.mrf.mxu2  ;;  %v7937_v61 = vpack.c.bf16 %v3556_v2, %v3554_v6  ;;  %v3555_v41 = vmul.f32 %v3523_v30, %v2878_v1  ;;  %v3273_v0 = vmul.f32 %v7884_v14, %v3272_v18  ;;  %vm3275_vm0 = vweird.f32 %v7823_v16 }
 0x305   :  { %v2879_v51 = vpop.f32.mrf.mxu3  ;;  %v3303_v38 = vmul.f32 %v7888_v49, %v3302_v27  ;;  %v3294_v26 = vand.u32 2147483647, %v7836_v32  ;;  %5407 = vrcp.f32 %v7944_v52  ;;  %v4840_v19 = vmul.f32 -1.442695, %v8941_v29 }
 0x306   :  { %v7941_v13 = vpop.f32.mrf.mxu0  ;;  %v2880_v43 = vadd.f32 %v2879_v51, %v2830_v62  ;;  %vm7960_vm1 = vcmp.eq.f32.partialorder %v3279_v23, 8.507059e+37  ;;  %v3282_v40 = vor.u32 1.1754944e-38, %v3281_v20  ;;  %v3288_v5 = vmul.f32 %v7912_v33, %v3287_v35  ;;  %v8952_v23 = vld [vmem:[#allocation27_spill] sm:$0xff] }
 0x307   :  { %v7949_v28 = vpop.f32.mrf.mxu1  ;;  %vm3290_vm2 = vweird.f32 %v7836_v32  ;;  %5409 = vrcp.f32 %v7947_v8  ;;  %vm3276_vm3 = vweird.f32 %v7884_v14  ;;  %v3296_v44 = vand.u32 2147483648, %v7836_v32 }
 0x308   :  { %v3557_v3 = vmul.f32 %v3525_v4, %v2880_v43  ;;  %v5404_v56 = vpop.eup %5403  ;;  %v3318_v15 = vmul.f32 %v7919_v36, %v3317_v39  ;;  %5411 = vpow2.f32 %v4842_v37  ;;  %v3274_v6 = vadd.f32 %v7884_v14, %v3273_v0  ;;  %vm7990_vm7 = vmor %vm3275_vm0, %vm3276_vm3 }
 0x309   :  { %v5406_v17 = vpop.eup %5405  ;;  %v3304_v2 = vadd.f32 %v7888_v49, %v3303_v38  ;;  %vm3306_vm4 = vweird.f32 %v7888_v49  ;;  %v3309_v48 = vand.u32 2147483647, %v7825_v55  ;;  %3881 = vmatmul.bf16.gmra.mxu1 %v7874_v7  ;;  %3979 = vmatmul.bf16.gmra.mxu3 %v7874_v7  ;;  %vm7980_vm5 = vcmp.eq.f32.partialorder %v3294_v26, 8.507059e+37 }
 0x30a   :  { %v7958_v54 = vpack.c.bf16 %v3557_v3, %v3555_v41  ;;  %vm3305_vm6 = vweird.f32 %v7825_v55  ;;  %v3311_v62 = vand.u32 2147483648, %v7825_v55  ;;  %5413 = vpow2.f32 %v4840_v19 }
 0x30b   :  { %v3289_v7 = vadd.f32 %v7912_v33, %v3288_v5  ;;  %vm3291_vm8 = vweird.f32 %v7912_v33  ;;  %v7996_v24 = vadd.f32 1.0, %v5404_v56  ;;  %v8000_v1 = vadd.f32 %v8949_v31, %v8948_v25  ;;  %v8002_v11 = vpop.eup %5407  ;;  %vm8006_vm9 = vmor %vm3305_vm6, %vm3306_vm4  ;;  %v8959_v56 = vld [vmem:[#allocation42_spill] sm:$0xff] }
 0x30c   :  { %v7967_v21 = vpop.f32.mrf.mxu2  ;;  %v3297_v30 = vor.u32 1.1754944e-38, %v3296_v44  ;;  %v3319_v18 = vadd.f32 %v7919_v36, %v3318_v15  ;;  %vm3321_vm10 = vweird.f32 %v7919_v36  ;;  %v4841_v27 = vmul.f32 -1.442695, %v8952_v23  ;;  %vm8031_vm12 = vmor %vm3290_vm2, %vm3291_vm8 }
 0x30d   :  { %v7978_v34 = vpop.f32.mrf.mxu3  ;;  %v8013_v51 = vpop.eup %5409  ;;  %v3278_v59 = vsel %vm7990_vm7, %v7884_v14, %v3274_v6  ;;  %v3308_v4 = vsel %vm8006_vm9, %v7888_v49, %v3304_v2  ;;  %vm8021_vm11 = vcmp.eq.f32.partialorder %v3309_v48, 8.507059e+37  ;;  %v8025_v20 = vadd.f32 1.0, %v5406_v17 }
 0x30e   :  { %v2737_v22 = vpop.f32.mrf.mxu0  ;;  %v5412_v35 = vpop.eup %5411  ;;  %v3312_v14 = vor.u32 1.1754944e-38, %v3311_v62  ;;  %vm3320_vm13 = vweird.f32 %v7843_v12  ;;  %v3324_v49 = vand.u32 2147483647, %v7843_v12  ;;  %v3326_v37 = vand.u32 2147483648, %v7843_v12 }
 0x30f   :  { %v2786_v55 = vpop.f32.mrf.mxu1  ;;  %v3293_v41 = vsel %vm8031_vm12, %v7912_v33, %v3289_v7  ;;  %vm8041_vm14 = vmor %vm3320_vm13, %vm3321_vm10  ;;  %v3361_v32 = vmul.f32 %v8002_v11, %v7944_v52  ;;  %5415 = vrcp.f32 %v7996_v24  ;;  %v4843_v0 = vmul.f32 -1.442695, %v8000_v1  ;;  %3837 = vmatmul.bf16.gmra.mxu0 %v7937_v61  ;;  %3935 = vmatmul.bf16.gmra.mxu2 %v7937_v61 }
 0x310   :  { %v5414_v12 = vpop.eup %5413  ;;  %v3283_v38 = vsel %vm7960_vm1, %v3282_v40, %v3278_v59  ;;  %v3313_v33 = vsel %vm8021_vm11, %v3312_v14, %v3308_v4  ;;  %v3323_v26 = vsel %vm8041_vm14, %v7919_v36, %v3319_v18  ;;  %5417 = vpow2.f32 %v4841_v27 }
 0x311   :  { %v3331_v5 = vmul.f32 %v8013_v51, %v7947_v8  ;;  %5419 = vrcp.f32 %v8025_v20  ;;  %v8063_v61 = vadd.f32 1.0, %v5412_v35  ;;  %v8067_v40 = vadd.f32 %v8960_v63, %v8959_v56 }
 0x312   :  { %v3298_v36 = vsel %vm7980_vm5, %v3297_v30, %v3293_v41  ;;  %vm3325_vm15 = vcmp.eq.f32.partialorder %v3324_v49, 8.507059e+37  ;;  %v3327_v17 = vor.u32 1.1754944e-38, %v3326_v37  ;;  %v3341_v6 = vand.u32 2147483648, %v7947_v8 }
 0x313   :  { %v3362_v2 = vsub.f32 1.0, %v3361_v32  ;;  %v8074_v48 = vadd.f32 1.0, %v5414_v12  ;;  %5421 = vpow2.f32 %v4843_v0  ;;  %v2787_v62 = vadd.f32 %v2786_v55, %v2737_v22 }
 0x314   :  { %v8058_v19 = vpop.f32.mrf.mxu2  ;;  %v3526_v7 = vmul.f32 %v3283_v38, %v7250_v58  ;;  %v3528_v25 = vmul.f32 %v3313_v33, %v7686_v60  ;;  %v3328_v31 = vsel %vm3325_vm15, %v3327_v17, %v3323_v26  ;;  %v3332_v46 = vsub.f32 1.0, %v3331_v5  ;;  %v8961_v60 = vld [vmem:[#allocation40_spill] sm:$0xff]  ;;  %v8964_v26 = vld [vmem:[#allocation45_spill] sm:$0xff]  ;;  %v8965_v5 = vld [vmem:[#allocation46_spill] sm:$0xff] }
 0x315   :  { %v2884_v15 = vpop.f32.mrf.mxu3  ;;  %v8080_v16 = vpop.eup %5415  ;;  %5423 = vrcp.f32 %v8063_v61  ;;  %v4846_v30 = vmul.f32 -1.442695, %v8067_v40  ;;  %v2785_v18 = vadd.f32 %v7949_v28, %v7941_v13  ;;  %v8087_v22 = vmul.f32 %v3298_v36, %v7252_v42 }
 0x316   :  { %v8069_v44 = vpop.f32.mrf.mxu0  ;;  %v5418_v27 = vpop.eup %5417  ;;  %vm3335_vm0 = vweird.f32 %v7947_v8  ;;  %v3339_v58 = vand.u32 2147483647, %v7947_v8  ;;  %v4844_v55 = vmul.f32 -1.442695, %v8961_v60  ;;  %v8094_v4 = vor.u32 1.1754944e-38, %v3341_v6  ;;  %v8972_v8 = vld [vmem:[#allocation47_spill] sm:$0xff] }
 0x317   :  { %v8076_v47 = vpop.f32.mrf.mxu1  ;;  %v8092_v59 = vpop.eup %5419  ;;  %v3363_v43 = vmul.f32 %v8002_v11, %v3362_v2  ;;  %5425 = vrcp.f32 %v8074_v48  ;;  %v3560_v35 = vmul.f32 %v3528_v25, %v2787_v62  ;;  %v3529_v13 = vmul.f32 %v3328_v31, %v7739_v57 }
 0x318   :  { %v3354_v42 = vand.u32 2147483647, %v8025_v20  ;;  %v3356_v28 = vand.u32 2147483648, %v8025_v20  ;;  %v3376_v39 = vmul.f32 %v8080_v16, %v7996_v24  ;;  %v3333_v49 = vmul.f32 %v8013_v51, %v3332_v46 }
 0x319   :  { %v5422_v14 = vpop.eup %5421  ;;  %v8104_v37 = vadd.f32 1.0, %v5418_v27  ;;  %5427 = vpow2.f32 %v4846_v30  ;;  %v3558_v41 = vmul.f32 %v3526_v7, %v2785_v18  ;;  %3886 = vmatmul.bf16.gmra.mxu1 %v7958_v54  ;;  %3984 = vmatmul.bf16.gmra.mxu3 %v7958_v54  ;;  %vm3336_vm1 = vweird.f32 %v8013_v51 }
 0x31a   :  { %v3346_v57 = vmul.f32 %v8092_v59, %v8025_v20  ;;  %v3369_v32 = vand.u32 2147483647, %v7944_v52  ;;  %5429 = vpow2.f32 %v4844_v55  ;;  %vm8118_vm2 = vcmp.eq.f32.partialorder %v3339_v58, 8.507059e+37  ;;  %vm8162_vm8 = vmor %vm3335_vm0, %vm3336_vm1 }
 0x31b   :  { %v8116_v38 = vpop.eup %5423  ;;  %v3364_v54 = vadd.f32 %v8002_v11, %v3363_v43  ;;  %vm3366_vm3 = vweird.f32 %v8002_v11  ;;  %v8126_v56 = vadd.f32 %v8965_v5, %v8964_v26  ;;  %v3614_v63 = vpack.c.bf16 %v3560_v35, %v3558_v41 }
 0x31c   :  { %v8114_v0 = vpop.f32.mrf.mxu2  ;;  %v8128_v17 = vor.u32 1.1754944e-38, %v3356_v28  ;;  %v3371_v6 = vand.u32 2147483648, %v7944_v52  ;;  %v3377_v2 = vsub.f32 1.0, %v3376_v39  ;;  %v8131_v62 = vadd.f32 1.0, %v5422_v14 }
 0x31d   :  { %v8108_v3 = vpop.f32.mrf.mxu3  ;;  %v8133_v7 = vpop.eup %5425  ;;  %v3334_v25 = vadd.f32 %v8013_v51, %v3333_v49  ;;  %vm3365_vm4 = vweird.f32 %v7944_v52  ;;  %5431 = vrcp.f32 %v8104_v37  ;;  %v2885_v31 = vadd.f32 %v2884_v15, %v8058_v19 }
 0x31e   :  { %v2742_v12 = vpop.f32.mrf.mxu0  ;;  %v3347_v46 = vsub.f32 1.0, %v3346_v57  ;;  %vm8139_vm5 = vmor %vm3365_vm4, %vm3366_vm3  ;;  %vm3380_vm6 = vweird.f32 %v7996_v24  ;;  %v3384_v18 = vand.u32 2147483647, %v7996_v24  ;;  %v3386_v27 = vand.u32 2147483648, %v7996_v24 }
 0x31f   :  { %v2791_v36 = vpop.f32.mrf.mxu1  ;;  %v3421_v58 = vmul.f32 %v8116_v38, %v8063_v61  ;;  %v5428_v55 = vpop.eup %5427  ;;  %v3368_v52 = vsel %vm8139_vm5, %v8002_v11, %v3364_v54  ;;  %vm8151_vm7 = vcmp.eq.f32.partialorder %v3369_v32, 8.507059e+37  ;;  %v4847_v15 = vmul.f32 -1.442695, %v8126_v56  ;;  %3842 = vmatmul.bf16.gmra.mxu0 %v3614_v63  ;;  %3940 = vmatmul.bf16.gmra.mxu2 %v3614_v63 }
 0x320   :  { %v2883_v43 = vadd.f32 %v7978_v34, %v7967_v21  ;;  %v5430_v35 = vpop.eup %5429  ;;  %vm3350_vm9 = vweird.f32 %v8025_v20  ;;  %v3372_v11 = vor.u32 1.1754944e-38, %v3371_v6  ;;  %v3378_v39 = vmul.f32 %v8080_v16, %v3377_v2 }
 0x321   :  { %v3391_v14 = vmul.f32 %v8133_v7, %v8074_v48  ;;  %5433 = vrcp.f32 %v8131_v62  ;;  %v3338_v21 = vsel %vm8162_vm8, %v8013_v51, %v3334_v25  ;;  %vm3351_vm10 = vweird.f32 %v8092_v59 }
 0x322   :  { %v4845_v34 = vmul.f32 -1.442695, %v8972_v8  ;;  %v3561_v49 = vmul.f32 %v3529_v13, %v2885_v31  ;;  %v3348_v41 = vmul.f32 %v8092_v59, %v3347_v46  ;;  %v3373_v57 = vsel %vm8151_vm7, %v3372_v11, %v3368_v52  ;;  %vm8232_vm0 = vmor %vm3350_vm9, %vm3351_vm10 }
 0x323   :  { %v3422_v32 = vsub.f32 1.0, %v3421_v58  ;;  %v8179_v54 = vadd.f32 1.0, %v5428_v55  ;;  %v8181_v5 = vpop.eup %5431  ;;  %v8183_v63 = vadd.f32 1.0, %v5430_v35  ;;  %5435 = vpow2.f32 %v4847_v15 }
 0x324   :  { %v3559_v51 = vmul.f32 %v8087_v22, %v2883_v43  ;;  %v2792_v6 = vadd.f32 %v2791_v36, %v2742_v12  ;;  %v3343_v13 = vsel %vm8118_vm2, %v8094_v4, %v3338_v21  ;;  %vm8193_vm11 = vcmp.eq.f32.partialorder %v3354_v42, 8.507059e+37  ;;  %v2840_v30 = vpop.f32.mrf.mxu2 }
 0x325   :  { %v2889_v26 = vpop.f32.mrf.mxu3  ;;  %v3379_v31 = vadd.f32 %v8080_v16, %v3378_v39  ;;  %vm3381_vm12 = vweird.f32 %v8080_v16  ;;  %v3392_v46 = vsub.f32 1.0, %v3391_v14  ;;  %v3532_v12 = vmul.f32 %v3373_v57, %v7833_v9 }
 0x326   :  { %v8199_v22 = vpop.f32.mrf.mxu0  ;;  %5437 = vpow2.f32 %v4845_v34  ;;  %v2790_v4 = vadd.f32 %v8076_v47, %v8069_v44  ;;  %v3615_v33 = vpack.c.bf16 %v3561_v49, %v3559_v51  ;;  %v3349_v42 = vadd.f32 %v8092_v59, %v3348_v41  ;;  %vm8214_vm13 = vmor %vm3380_vm6, %vm3381_vm12 }
 0x327   :  { %v8186_v2 = vpop.f32.mrf.mxu1  ;;  %v8204_v36 = vpop.eup %5433  ;;  %v3406_v58 = vmul.f32 %v8181_v5, %v8104_v37  ;;  %v3423_v55 = vmul.f32 %v8116_v38, %v3422_v32  ;;  %5439 = vrcp.f32 %v8179_v54  ;;  %v3530_v52 = vmul.f32 %v3343_v13, %v8927_v50 }
 0x328   :  { %v3399_v44 = vand.u32 2147483647, %v8074_v48  ;;  %5441 = vrcp.f32 %v8183_v63  ;;  %v3564_v47 = vmul.f32 %v3532_v12, %v2792_v6  ;;  %v3383_v19 = vsel %vm8214_vm13, %v8080_v16, %v3379_v31 }
 0x329   :  { %vm8223_vm14 = vcmp.eq.f32.partialorder %v3384_v18, 8.507059e+37  ;;  %v3387_v50 = vor.u32 1.1754944e-38, %v3386_v27  ;;  %vm3395_vm15 = vweird.f32 %v8074_v48  ;;  %v5436_v24 = vpop.eup %5435  ;;  %v3393_v35 = vmul.f32 %v8133_v7, %v3392_v46  ;;  %3891 = vmatmul.bf16.gmra.mxu1 %v3615_v33  ;;  %3989 = vmatmul.bf16.gmra.mxu3 %v3615_v33 }
 0x32a   :  { %v3401_v16 = vand.u32 2147483648, %v8074_v48  ;;  %v3436_v18 = vmul.f32 %v8204_v36, %v8131_v62  ;;  %v3562_v28 = vmul.f32 %v3530_v52, %v2790_v4  ;;  %v3353_v27 = vsel %vm8232_vm0, %v8092_v59, %v3349_v42 }
 0x32b   :  { %v3407_v11 = vsub.f32 1.0, %v3406_v58  ;;  %v3424_v20 = vadd.f32 %v8116_v38, %v3423_v55  ;;  %vm3426_vm1 = vweird.f32 %v8116_v38  ;;  %vm3396_vm2 = vweird.f32 %v8133_v7 }
 0x32c   :  { %v5438_v39 = vpop.eup %5437  ;;  %vm8246_vm3 = vcmp.eq.f32.partialorder %v3399_v44, 8.507059e+37  ;;  %v3431_v21 = vand.u32 2147483648, %v8063_v61  ;;  %v3616_v34 = vpack.c.bf16 %v3564_v47, %v3562_v28  ;;  %v3388_v59 = vsel %vm8223_vm14, %v3387_v50, %v3383_v19  ;;  %vm8291_vm6 = vmor %vm3395_vm15, %vm3396_vm2 }
 0x32d   :  { %v8251_v49 = vpop.eup %5439  ;;  %vm3425_vm4 = vweird.f32 %v8063_v61  ;;  %v3429_v41 = vand.u32 2147483647, %v8063_v61  ;;  %v8257_v57 = vadd.f32 1.0, %v5436_v24  ;;  %v8259_v32 = vpop.f32.mrf.mxu3  ;;  %v3358_v13 = vsel %vm8193_vm11, %v8128_v17, %v3353_v27 }
 0x32e   :  { %v8261_v6 = vpop.eup %5441  ;;  %v3394_v31 = vadd.f32 %v8133_v7, %v3393_v35  ;;  %vm8269_vm5 = vmor %vm3425_vm4, %vm3426_vm1  ;;  %v3437_v61 = vsub.f32 1.0, %v3436_v18  ;;  %v2890_v12 = vadd.f32 %v2889_v26, %v2840_v30  ;;  %v3402_v4 = vor.u32 1.1754944e-38, %v3401_v16  ;;  %v8279_v17 = vpop.f32.mrf.mxu2 }
 0x32f   :  { %v2796_v51 = vpop.f32.mrf.mxu1  ;;  %v3408_v33 = vmul.f32 %v8181_v5, %v3407_v11  ;;  %v3428_v42 = vsel %vm8269_vm5, %v8116_v38, %v3424_v20  ;;  %v8277_v58 = vadd.f32 1.0, %v5438_v39  ;;  %v2747_v25 = vpop.f32.mrf.mxu0  ;;  %v3533_v55 = vmul.f32 %v3388_v59, %v7901_v10  ;;  %3847 = vmatmul.bf16.gmra.mxu0 %v3616_v34  ;;  %3945 = vmatmul.bf16.gmra.mxu2 %v3616_v34  ;;  %v3576_v38 = vld [vmem:[%s8591_s3 + $0x10] sm:$0xff] }
 0x330   :  { %v3432_v52 = vor.u32 1.1754944e-38, %v3431_v21  ;;  %v3481_v9 = vmul.f32 %v8251_v49, %v8179_v54  ;;  %v2888_v26 = vadd.f32 %v8108_v3, %v8114_v0  ;;  %v3531_v30 = vmul.f32 %v3358_v13, %v8936_v45 }
 0x331   :  { %vm3430_vm7 = vcmp.eq.f32.partialorder %v3429_v41, 8.507059e+37  ;;  %v3451_v10 = vmul.f32 %v8261_v6, %v8183_v63  ;;  %5443 = vrcp.f32 %v8257_v57  ;;  %v3398_v3 = vsel %vm8291_vm6, %v8133_v7, %v3394_v31 }
 0x332   :  { %v3433_v0 = vsel %vm3430_vm7, %v3432_v52, %v3428_v42  ;;  %v3438_v45 = vmul.f32 %v8204_v36, %v3437_v61  ;;  %v3565_v44 = vmul.f32 %v3533_v55, %v2890_v12  ;;  %v3409_v48 = vadd.f32 %v8181_v5, %v3408_v33 }
 0x333   :  { %vm3410_vm8 = vweird.f32 %v8104_v37  ;;  %vm3411_vm9 = vweird.f32 %v8181_v5  ;;  %5445 = vrcp.f32 %v8277_v58  ;;  %v3414_v47 = vand.u32 2147483647, %v8104_v37 }
 0x334   :  { %v3482_v19 = vsub.f32 1.0, %v3481_v9  ;;  %v3563_v15 = vmul.f32 %v3531_v30, %v2888_v26  ;;  %v2797_v50 = vadd.f32 %v2796_v51, %v2747_v25  ;;  %v3403_v7 = vsel %vm8246_vm3, %v3402_v4, %v3398_v3  ;;  %vm8311_vm10 = vmor %vm3410_vm8, %vm3411_vm9 }
 0x335   :  { %v3416_v24 = vand.u32 2147483648, %v8104_v37  ;;  %v3536_v43 = vmul.f32 %v3433_v0, %v7935_v53  ;;  %v3452_v35 = vsub.f32 1.0, %v3451_v10  ;;  %v3439_v18 = vadd.f32 %v8204_v36, %v3438_v45  ;;  %v2894_v39 = vpop.f32.mrf.mxu3 }
 0x336   :  { %vm3441_vm11 = vweird.f32 %v8204_v36  ;;  %v2795_v28 = vadd.f32 %v8186_v2, %v8199_v22  ;;  %v3617_v27 = vpack.c.bf16 %v3565_v44, %v3563_v15  ;;  %v3413_v37 = vsel %vm8311_vm10, %v8181_v5, %v3409_v48  ;;  %v2845_v51 = vpop.f32.mrf.mxu2  ;;  %v3577_v44 = vld [vmem:[%s8591_s3 + $0x18] sm:$0xff] }
 0x337   :  { %v8319_v11 = vpop.eup %5443  ;;  %v3444_v53 = vand.u32 2147483647, %v8131_v62  ;;  %v3446_v20 = vand.u32 2147483648, %v8131_v62  ;;  %v8326_v14 = vpop.f32.mrf.mxu1  ;;  %v3534_v21 = vmul.f32 %v3403_v7, %v8941_v29  ;;  %vm3440_vm12 = vweird.f32 %v8131_v62 }
 0x338   :  { %v3483_v2 = vmul.f32 %v8251_v49, %v3482_v19  ;;  %v3568_v22 = vmul.f32 %v3536_v43, %v2797_v50  ;;  %v3417_v59 = vor.u32 1.1754944e-38, %v3416_v24  ;;  %vm8335_vm13 = vmor %vm3440_vm12, %vm3441_vm11  ;;  %v3453_v41 = vmul.f32 %v8261_v6, %v3452_v35  ;;  %v2750_v13 = vpop.f32.mrf.mxu0 }
 0x339   :  { %v8331_v34 = vpop.eup %5445  ;;  %vm3415_vm14 = vcmp.eq.f32.partialorder %v3414_v47, 8.507059e+37  ;;  %v3443_v29 = vsel %vm8335_vm13, %v8204_v36, %v3439_v18  ;;  %v3496_v62 = vmul.f32 %v8319_v11, %v8257_v57  ;;  %v3566_v31 = vmul.f32 %v3534_v21, %v2795_v28  ;;  %3896 = vmatmul.bf16.gmra.mxu1 %v3617_v27  ;;  %3994 = vmatmul.bf16.gmra.mxu3 %v3617_v27 }
 0x33a   :  { %v3418_v46 = vsel %vm3415_vm14, %v3417_v59, %v3413_v37  ;;  %vm3445_vm15 = vcmp.eq.f32.partialorder %v3444_v53, 8.507059e+37  ;;  %v3447_v61 = vor.u32 1.1754944e-38, %v3446_v20  ;;  %vm3455_vm0 = vweird.f32 %v8183_v63 }
 0x33b   :  { %v3466_v12 = vmul.f32 %v8331_v34, %v8277_v58  ;;  %v3484_v4 = vadd.f32 %v8251_v49, %v3483_v2  ;;  %vm3486_vm1 = vweird.f32 %v8251_v49  ;;  %v3618_v33 = vpack.c.bf16 %v3568_v22, %v3566_v31 }
 0x33c   :  { %v3448_v36 = vsel %vm3445_vm15, %v3447_v61, %v3443_v29  ;;  %vm3485_vm2 = vweird.f32 %v8179_v54  ;;  %v3489_v42 = vand.u32 2147483647, %v8179_v54  ;;  %v3491_v25 = vand.u32 2147483648, %v8179_v54 }
 0x33d   :  { %v3454_v55 = vadd.f32 %v8261_v6, %v3453_v41  ;;  %vm3456_vm3 = vweird.f32 %v8261_v6  ;;  %v3497_v52 = vsub.f32 1.0, %v3496_v62  ;;  %v2895_v9 = vadd.f32 %v2894_v39, %v2845_v51  ;;  %vm8357_vm4 = vmor %vm3485_vm2, %vm3486_vm1 }
 0x33e   :  { %v3459_v26 = vand.u32 2147483647, %v8183_v63  ;;  %v3461_v30 = vand.u32 2147483648, %v8183_v63  ;;  %v3537_v10 = vmul.f32 %v3448_v36, %v8000_v1  ;;  %v3467_v3 = vsub.f32 1.0, %v3466_v12  ;;  %vm8370_vm5 = vmor %vm3455_vm0, %vm3456_vm3  ;;  %v2897_v1 = vpop.f32.mrf.mxu3  ;;  %v3574_v36 = vld [vmem:[%s8591_s3] sm:$0xff] }
 0x33f   :  { %v3488_v54 = vsel %vm8357_vm4, %v8251_v49, %v3484_v4  ;;  %v2893_v0 = vadd.f32 %v8259_v32, %v8279_v17  ;;  %3852 = vmatmul.bf16.gmra.mxu0 %v3618_v33  ;;  %3950 = vmatmul.bf16.gmra.mxu2 %v3618_v33  ;;  %v3535_v45 = vmul.f32 %v3418_v46, %v8952_v23  ;;  %v3492_v48 = vor.u32 1.1754944e-38, %v3491_v25  ;;  %v2801_v47 = vpop.f32.mrf.mxu1  ;;  %v2848_v23 = vpop.f32.mrf.mxu2 }
 0x340   :  { %v3458_v49 = vsel %vm8370_vm5, %v8261_v6, %v3454_v55  ;;  %vm3490_vm6 = vcmp.eq.f32.partialorder %v3489_v42, 8.507059e+37  ;;  %v3498_v32 = vmul.f32 %v8319_v11, %v3497_v52  ;;  %v3569_v17 = vmul.f32 %v3537_v10, %v2895_v9  ;;  %v2752_v50 = vpop.f32.mrf.mxu0  ;;  %v3575_v52 = vld [vmem:[%s8591_s3 + $0x8] sm:$0xff] }
 0x341   :  { %v3462_v19 = vor.u32 1.1754944e-38, %v3461_v30  ;;  %v3493_v15 = vsel %vm3490_vm6, %v3492_v48, %v3488_v54  ;;  %vm3460_vm7 = vcmp.eq.f32.partialorder %v3459_v26, 8.507059e+37  ;;  %v3468_v63 = vmul.f32 %v8331_v34, %v3467_v3 }
 0x342   :  { %v3567_v7 = vmul.f32 %v3535_v45, %v2893_v0  ;;  %v2802_v24 = vadd.f32 %v2801_v47, %v2752_v50  ;;  %vm3501_vm8 = vweird.f32 %v8319_v11  ;;  %v3540_v35 = vmul.f32 %v3493_v15, %v8067_v40  ;;  %v3579_v50 = vld [vmem:[%s8591_s3 + $0x28] sm:$0xff] }
 0x343   :  { %v3463_v43 = vsel %vm3460_vm7, %v3462_v19, %v3458_v49  ;;  %v3499_v6 = vadd.f32 %v8319_v11, %v3498_v32  ;;  %v2800_v16 = vadd.f32 %v8326_v14, %v2750_v13  ;;  %vm3500_vm9 = vweird.f32 %v8257_v57  ;;  %v3578_v49 = vld [vmem:[%s8591_s3 + $0x20] sm:$0xff] }
 0x344   :  { %v3619_v18 = vpack.c.bf16 %v3569_v17, %v3567_v7  ;;  %v3504_v28 = vand.u32 2147483647, %v8257_v57  ;;  %v3506_v27 = vand.u32 2147483648, %v8257_v57  ;;  %v3538_v37 = vmul.f32 %v3463_v43, %v8961_v60  ;;  %vm3502_vm11 = vmor %vm3500_vm9, %vm3501_vm8  ;;  %v3580_v43 = vld [vmem:[%s8591_s3 + $0x30] sm:$0xff] }
 0x345   :  { %v3469_v53 = vadd.f32 %v8331_v34, %v3468_v63  ;;  %vm3471_vm10 = vweird.f32 %v8331_v34  ;;  %v3572_v20 = vmul.f32 %v3540_v35, %v2802_v24  ;;  %v3476_v40 = vand.u32 2147483648, %v8277_v58 }
 0x346   :  { %vm3470_vm12 = vweird.f32 %v8277_v58  ;;  %v3474_v39 = vand.u32 2147483647, %v8277_v58  ;;  %v3503_v14 = vsel %vm3502_vm11, %v8319_v11, %v3499_v6  ;;  %v3570_v21 = vmul.f32 %v3538_v37, %v2800_v16  ;;  %v2899_v60 = vpop.f32.mrf.mxu3 }
 0x347   :  { %vm3472_vm13 = vmor %vm3470_vm12, %vm3471_vm10  ;;  %v3507_v57 = vor.u32 1.1754944e-38, %v3506_v27  ;;  %vm3505_vm14 = vcmp.eq.f32.partialorder %v3504_v28, 8.507059e+37  ;;  %v3477_v59 = vor.u32 1.1754944e-38, %v3476_v40  ;;  %v2850_v41 = vpop.f32.mrf.mxu2  ;;  %v2898_v29 = vadd.f32 %v2897_v1, %v2848_v23  ;;  %v3581_v27 = vld [vmem:[%s8591_s3 + $0x38] sm:$0xff]  ;;  %v3582_v40 = vld [vmem:[%s8591_s3 + $0x40] sm:$0xff] }
 0x348   :  { %v3473_v2 = vsel %vm3472_vm13, %v8331_v34, %v3469_v53  ;;  %v3620_v22 = vpack.c.bf16 %v3572_v20, %v3570_v21  ;;  %vm3475_vm15 = vcmp.eq.f32.partialorder %v3474_v39, 8.507059e+37  ;;  %v2900_v51 = vadd.f32 %v2899_v60, %v2850_v41  ;;  %v3584_v41 = vld [vmem:[%s8591_s3 + $0x50] sm:$0xff] }
 0x349   :  { %3901 = vmatmul.bf16.gmra.mxu1 %v3619_v18  ;;  %3999 = vmatmul.bf16.gmra.mxu3 %v3619_v18  ;;  %v3508_v5 = vsel %vm3505_vm14, %v3507_v57, %v3503_v14  ;;  %v3478_v13 = vsel %vm3475_vm15, %v3477_v59, %v3473_v2  ;;  %v3583_v2 = vld [vmem:[%s8591_s3 + $0x48] sm:$0xff] }
 0x34a   :  { %v3541_v58 = vmul.f32 %v3508_v5, %v8126_v56  ;;  %v3539_v11 = vmul.f32 %v3478_v13, %v8972_v8 }
 0x34c   :  { %v3573_v62 = vmul.f32 %v3541_v58, %v2900_v51  ;;  %v3571_v31 = vmul.f32 %v3539_v11, %v2898_v29 }
 0x34e   :  { %v3621_v46 = vpack.c.bf16 %v3573_v62, %v3571_v31  ;;  %v3585_v62 = vld [vmem:[%s8591_s3 + $0x58] sm:$0xff] }
 0x34f   :  { %3857 = vmatmul.bf16.gmra.mxu0 %v3620_v22  ;;  %3955 = vmatmul.bf16.gmra.mxu2 %v3620_v22 }
 0x359   :  { %3906 = vmatmul.bf16.gmra.mxu1 %v3621_v46  ;;  %4004 = vmatmul.bf16.gmra.mxu3 %v3621_v46 }
 0x35c   :  { %v3823_v34 = vpop.f32.mrf.mxu0 }
 0x362   :  { %v3921_v61 = vpop.f32.mrf.mxu2 }
 0x364   :  { %v3825_v12 = vpop.f32.mrf.mxu0 }
 0x366   :  { %v3872_v4 = vpop.f32.mrf.mxu1 }
 0x367   :  { %v3873_v33 = vadd.f32 %v3872_v4, %v3823_v34 }
 0x369   :  { %v4010_v56 = vadd.f32 %v3873_v33, %v3574_v36 }
 0x36a   :  { %v3923_v42 = vpop.f32.mrf.mxu2 }
 0x36b   :  { %4042 = vst [vmem:[%s8591_s3] sm:$0xff] %v4010_v56 }
 0x36c   :  { %v3970_v8 = vpop.f32.mrf.mxu3  ;;  %v3828_v25 = vpop.f32.mrf.mxu0 }
 0x36d   :  { %v3971_v55 = vadd.f32 %v3970_v8, %v3921_v61  ;;  %v3586_v61 = vld [vmem:[%s8591_s3 + $0x60] sm:$0xff] }
 0x36e   :  { %v3874_v9 = vpop.f32.mrf.mxu1 }
 0x36f   :  { %v4011_v26 = vadd.f32 %v3971_v55, %v3575_v52  ;;  %v3875_v30 = vadd.f32 %v3874_v9, %v3825_v12  ;;  %v3588_v52 = vld [vmem:[%s8591_s3 + $0x70] sm:$0xff] }
 0x371   :  { %4043 = vst [vmem:[%s8591_s3 + $0x8] sm:$0xff] %v4011_v26  ;;  %v4012_v10 = vadd.f32 %v3875_v30, %v3576_v38 }
 0x372   :  { %v3926_v3 = vpop.f32.mrf.mxu2 }
 0x373   :  { %4044 = vst [vmem:[%s8591_s3 + $0x10] sm:$0xff] %v4012_v10 }
 0x374   :  { %v3972_v54 = vpop.f32.mrf.mxu3  ;;  %v3830_v0 = vpop.f32.mrf.mxu0 }
 0x375   :  { %v3973_v45 = vadd.f32 %v3972_v54, %v3923_v42  ;;  %v3587_v42 = vld [vmem:[%s8591_s3 + $0x68] sm:$0xff] }
 0x376   :  { %v3877_v48 = vpop.f32.mrf.mxu1 }
 0x377   :  { %v4013_v1 = vadd.f32 %v3973_v45, %v3577_v44  ;;  %v3878_v47 = vadd.f32 %v3877_v48, %v3828_v25  ;;  %v3590_v44 = vld [vmem:[%s8591_s3 + $0x80] sm:$0xff] }
 0x379   :  { %4045 = vst [vmem:[%s8591_s3 + $0x18] sm:$0xff] %v4013_v1  ;;  %v4014_v32 = vadd.f32 %v3878_v47, %v3578_v49 }
 0x37a   :  { %v3928_v17 = vpop.f32.mrf.mxu2 }
 0x37b   :  { %4046 = vst [vmem:[%s8591_s3 + $0x20] sm:$0xff] %v4014_v32 }
 0x37c   :  { %v3975_v19 = vpop.f32.mrf.mxu3  ;;  %v3833_v15 = vpop.f32.mrf.mxu0 }
 0x37d   :  { %v3976_v23 = vadd.f32 %v3975_v19, %v3926_v3  ;;  %v3589_v3 = vld [vmem:[%s8591_s3 + $0x78] sm:$0xff] }
 0x37e   :  { %v3879_v63 = vpop.f32.mrf.mxu1 }
 0x37f   :  { %v4015_v7 = vadd.f32 %v3976_v23, %v3579_v50  ;;  %v3880_v24 = vadd.f32 %v3879_v63, %v3830_v0  ;;  %v3592_v50 = vld [vmem:[%s8591_s3 + $0x90] sm:$0xff] }
 0x381   :  { %4047 = vst [vmem:[%s8591_s3 + $0x28] sm:$0xff] %v4015_v7  ;;  %v4016_v35 = vadd.f32 %v3880_v24, %v3580_v43 }
 0x382   :  { %v3931_v6 = vpop.f32.mrf.mxu2 }
 0x383   :  { %4048 = vst [vmem:[%s8591_s3 + $0x30] sm:$0xff] %v4016_v35  ;;  %v3593_v35 = vld [vmem:[%s8591_s3 + $0x98] sm:$0xff] }
 0x384   :  { %v3977_v16 = vpop.f32.mrf.mxu3  ;;  %v3835_v18 = vpop.f32.mrf.mxu0 }
 0x385   :  { %v3978_v28 = vadd.f32 %v3977_v16, %v3928_v17  ;;  %v3591_v17 = vld [vmem:[%s8591_s3 + $0x88] sm:$0xff] }
 0x386   :  { %v3882_v37 = vpop.f32.mrf.mxu1 }
 0x387   :  { %v4017_v53 = vadd.f32 %v3978_v28, %v3581_v27  ;;  %v3883_v20 = vadd.f32 %v3882_v37, %v3833_v15  ;;  %v3594_v27 = vld [vmem:[%s8591_s3 + $0xa0] sm:$0xff] }
 0x389   :  { %4049 = vst [vmem:[%s8591_s3 + $0x38] sm:$0xff] %v4017_v53  ;;  %v4018_v39 = vadd.f32 %v3883_v20, %v3582_v40 }
 0x38a   :  { %v3933_v14 = vpop.f32.mrf.mxu2 }
 0x38b   :  { %4050 = vst [vmem:[%s8591_s3 + $0x40] sm:$0xff] %v4018_v39  ;;  %v3595_v39 = vld [vmem:[%s8591_s3 + $0xa8] sm:$0xff] }
 0x38c   :  { %v3980_v21 = vpop.f32.mrf.mxu3  ;;  %v3838_v57 = vpop.f32.mrf.mxu0 }
 0x38d   :  { %v3981_v60 = vadd.f32 %v3980_v21, %v3931_v6 }
 0x38e   :  { %v3884_v22 = vpop.f32.mrf.mxu1 }
 0x38f   :  { %v4019_v59 = vadd.f32 %v3981_v60, %v3583_v2  ;;  %v3885_v5 = vadd.f32 %v3884_v22, %v3835_v18  ;;  %v3596_v60 = vld [vmem:[%s8591_s3 + $0xb0] sm:$0xff] }
 0x391   :  { %4051 = vst [vmem:[%s8591_s3 + $0x48] sm:$0xff] %v4019_v59  ;;  %v4020_v51 = vadd.f32 %v3885_v5, %v3584_v41  ;;  %v3597_v41 = vld [vmem:[%s8591_s3 + $0xb8] sm:$0xff] }
 0x392   :  { %v3936_v13 = vpop.f32.mrf.mxu2 }
 0x393   :  { %4052 = vst [vmem:[%s8591_s3 + $0x50] sm:$0xff] %v4020_v51 }
 0x394   :  { %v3982_v58 = vpop.f32.mrf.mxu3  ;;  %v3840_v29 = vpop.f32.mrf.mxu0 }
 0x395   :  { %v3983_v11 = vadd.f32 %v3982_v58, %v3933_v14 }
 0x396   :  { %v3887_v31 = vpop.f32.mrf.mxu1 }
 0x397   :  { %v4021_v46 = vadd.f32 %v3983_v11, %v3585_v62  ;;  %v3888_v34 = vadd.f32 %v3887_v31, %v3838_v57  ;;  %v3598_v11 = vld [vmem:[%s8591_s3 + $0xc0] sm:$0xff] }
 0x399   :  { %4053 = vst [vmem:[%s8591_s3 + $0x58] sm:$0xff] %v4021_v46  ;;  %v4022_v12 = vadd.f32 %v3888_v34, %v3586_v61  ;;  %v3599_v61 = vld [vmem:[%s8591_s3 + $0xc8] sm:$0xff] }
 0x39a   :  { %v3938_v4 = vpop.f32.mrf.mxu2 }
 0x39b   :  { %4054 = vst [vmem:[%s8591_s3 + $0x60] sm:$0xff] %v4022_v12 }
 0x39c   :  { %v3985_v33 = vpop.f32.mrf.mxu3  ;;  %v3843_v36 = vpop.f32.mrf.mxu0 }
 0x39d   :  { %v3986_v56 = vadd.f32 %v3985_v33, %v3936_v13 }
 0x39e   :  { %v3889_v8 = vpop.f32.mrf.mxu1 }
 0x39f   :  { %v4023_v25 = vadd.f32 %v3986_v56, %v3587_v42  ;;  %v3890_v55 = vadd.f32 %v3889_v8, %v3840_v29 }
 0x3a1   :  { %4055 = vst [vmem:[%s8591_s3 + $0x68] sm:$0xff] %v4023_v25  ;;  %v4024_v9 = vadd.f32 %v3890_v55, %v3588_v52  ;;  %v3601_v52 = vld [vmem:[%s8591_s3 + $0xd8] sm:$0xff] }
 0x3a2   :  { %v3941_v26 = vpop.f32.mrf.mxu2 }
 0x3a3   :  { %4056 = vst [vmem:[%s8591_s3 + $0x70] sm:$0xff] %v4024_v9 }
 0x3a4   :  { %v3987_v30 = vpop.f32.mrf.mxu3  ;;  %v3845_v38 = vpop.f32.mrf.mxu0 }
 0x3a5   :  { %v3988_v10 = vadd.f32 %v3987_v30, %v3938_v4 }
 0x3a6   :  { %v3892_v54 = vpop.f32.mrf.mxu1 }
 0x3a7   :  { %v4025_v0 = vadd.f32 %v3988_v10, %v3589_v3  ;;  %v3893_v45 = vadd.f32 %v3892_v54, %v3843_v36  ;;  %v3600_v36 = vld [vmem:[%s8591_s3 + $0xd0] sm:$0xff] }
 0x3a9   :  { %4057 = vst [vmem:[%s8591_s3 + $0x78] sm:$0xff] %v4025_v0  ;;  %v4026_v48 = vadd.f32 %v3893_v45, %v3590_v44  ;;  %v3603_v44 = vld [vmem:[%s8591_s3 + $0xe8] sm:$0xff] }
 0x3aa   :  { %v3943_v1 = vpop.f32.mrf.mxu2 }
 0x3ab   :  { %4058 = vst [vmem:[%s8591_s3 + $0x80] sm:$0xff] %v4026_v48 }
 0x3ac   :  { %v3990_v47 = vpop.f32.mrf.mxu3  ;;  %v3848_v49 = vpop.f32.mrf.mxu0 }
 0x3ad   :  { %v3991_v32 = vadd.f32 %v3990_v47, %v3941_v26 }
 0x3ae   :  { %v3894_v19 = vpop.f32.mrf.mxu1 }
 0x3af   :  { %v4027_v15 = vadd.f32 %v3991_v32, %v3591_v17  ;;  %v3895_v23 = vadd.f32 %v3894_v19, %v3845_v38  ;;  %v3602_v38 = vld [vmem:[%s8591_s3 + $0xe0] sm:$0xff] }
 0x3b1   :  { %4059 = vst [vmem:[%s8591_s3 + $0x88] sm:$0xff] %v4027_v15  ;;  %v4028_v63 = vadd.f32 %v3895_v23, %v3592_v50  ;;  %v3605_v23 = vld [vmem:[%s8591_s3 + $0xf8] sm:$0xff] }
 0x3b2   :  { %v3946_v7 = vpop.f32.mrf.mxu2 }
 0x3b3   :  { %4060 = vst [vmem:[%s8591_s3 + $0x90] sm:$0xff] %v4028_v63 }
 0x3b4   :  { %v3992_v24 = vpop.f32.mrf.mxu3  ;;  %v3850_v16 = vpop.f32.mrf.mxu0 }
 0x3b5   :  { %v3993_v43 = vadd.f32 %v3992_v24, %v3943_v1 }
 0x3b6   :  { %v3897_v6 = vpop.f32.mrf.mxu1 }
 0x3b7   :  { %v4029_v18 = vadd.f32 %v3993_v43, %v3593_v35  ;;  %v3898_v28 = vadd.f32 %v3897_v6, %v3848_v49  ;;  %v3604_v49 = vld [vmem:[%s8591_s3 + $0xf0] sm:$0xff] }
 0x3b9   :  { %4061 = vst [vmem:[%s8591_s3 + $0x98] sm:$0xff] %v4029_v18  ;;  %v4030_v37 = vadd.f32 %v3898_v28, %v3594_v27 }
 0x3ba   :  { %v3948_v20 = vpop.f32.mrf.mxu2 }
 0x3bb   :  { %4062 = vst [vmem:[%s8591_s3 + $0xa0] sm:$0xff] %v4030_v37 }
 0x3bc   :  { %v3995_v53 = vpop.f32.mrf.mxu3  ;;  %v3853_v2 = vpop.f32.mrf.mxu0 }
 0x3bd   :  { %v3996_v40 = vadd.f32 %v3995_v53, %v3946_v7 }
 0x3be   :  { %v3899_v14 = vpop.f32.mrf.mxu1 }
 0x3bf   :  { %v4031_v21 = vadd.f32 %v3996_v40, %v3595_v39  ;;  %v3900_v57 = vadd.f32 %v3899_v14, %v3850_v16 }
 0x3c1   :  { %4063 = vst [vmem:[%s8591_s3 + $0xa8] sm:$0xff] %v4031_v21  ;;  %v4032_v22 = vadd.f32 %v3900_v57, %v3596_v60 }
 0x3c2   :  { %v3951_v13 = vpop.f32.mrf.mxu2 }
 0x3c3   :  { %4064 = vst [vmem:[%s8591_s3 + $0xb0] sm:$0xff] %v4032_v22 }
 0x3c4   :  { %v3997_v59 = vpop.f32.mrf.mxu3  ;;  %v3855_v31 = vpop.f32.mrf.mxu0 }
 0x3c5   :  { %v3998_v5 = vadd.f32 %v3997_v59, %v3948_v20 }
 0x3c6   :  { %v3902_v51 = vpop.f32.mrf.mxu1 }
 0x3c7   :  { %v4033_v58 = vadd.f32 %v3998_v5, %v3597_v41  ;;  %v3903_v29 = vadd.f32 %v3902_v51, %v3853_v2 }
 0x3c9   :  { %4065 = vst [vmem:[%s8591_s3 + $0xb8] sm:$0xff] %v4033_v58  ;;  %v4034_v62 = vadd.f32 %v3903_v29, %v3598_v11 }
 0x3ca   :  { %v3953_v56 = vpop.f32.mrf.mxu2 }
 0x3cb   :  { %4066 = vst [vmem:[%s8591_s3 + $0xc0] sm:$0xff] %v4034_v62 }
 0x3cc   :  { %v4000_v46 = vpop.f32.mrf.mxu3  ;;  %v3858_v8 = vpop.f32.mrf.mxu0 }
 0x3cd   :  { %v4001_v34 = vadd.f32 %v4000_v46, %v3951_v13 }
 0x3ce   :  { %v3904_v12 = vpop.f32.mrf.mxu1 }
 0x3cf   :  { %v4035_v4 = vadd.f32 %v4001_v34, %v3599_v61  ;;  %v3905_v33 = vadd.f32 %v3904_v12, %v3855_v31 }
 0x3d1   :  { %4067 = vst [vmem:[%s8591_s3 + $0xc8] sm:$0xff] %v4035_v4  ;;  %v4036_v42 = vadd.f32 %v3905_v33, %v3600_v36 }
 0x3d2   :  { %v3956_v3 = vpop.f32.mrf.mxu2 }
 0x3d3   :  { %4068 = vst [vmem:[%s8591_s3 + $0xd0] sm:$0xff] %v4036_v42 }
 0x3d4   :  { %v4002_v25 = vpop.f32.mrf.mxu3  ;;  %v3860_v45 = vpop.f32.mrf.mxu0 }
 0x3d5   :  { %v4003_v55 = vadd.f32 %v4002_v25, %v3953_v56 }
 0x3d6   :  { %v3907_v9 = vpop.f32.mrf.mxu1 }
 0x3d7   :  { %v4037_v26 = vadd.f32 %v4003_v55, %v3601_v52  ;;  %v3908_v30 = vadd.f32 %v3907_v9, %v3858_v8 }
 0x3d9   :  { %4069 = vst [vmem:[%s8591_s3 + $0xd8] sm:$0xff] %v4037_v26  ;;  %v4038_v10 = vadd.f32 %v3908_v30, %v3602_v38 }
 0x3da   :  { %v3958_v17 = vpop.f32.mrf.mxu2 }
 0x3db   :  { %4070 = vst [vmem:[%s8591_s3 + $0xe0] sm:$0xff] %v4038_v10 }
 0x3dc   :  { %v4005_v54 = vpop.f32.mrf.mxu3 }
 0x3dd   :  { %v4006_v0 = vadd.f32 %v4005_v54, %v3956_v3 }
 0x3de   :  { %v3909_v48 = vpop.f32.mrf.mxu1 }
 0x3df   :  { %v4039_v1 = vadd.f32 %v4006_v0, %v3603_v44  ;;  %v3910_v47 = vadd.f32 %v3909_v48, %v3860_v45 }
 0x3e1   :  { %4071 = vst [vmem:[%s8591_s3 + $0xe8] sm:$0xff] %v4039_v1  ;;  %v4040_v32 = vadd.f32 %v3910_v47, %v3604_v49 }
 0x3e3   :  { %4072 = vst [vmem:[%s8591_s3 + $0xf0] sm:$0xff] %v4040_v32 }
 0x3e4   :  { %v4007_v19 = vpop.f32.mrf.mxu3 }
 0x3e5   :  { %v4008_v15 = vadd.f32 %v4007_v19, %v3958_v17 }
 0x3e7   :  { %v4041_v50 = vadd.f32 %v4008_v15, %v3605_v23 }
 0x3e9   :  { %4073 = vst [vmem:[%s8591_s3 + $0xf8] sm:$0xff] %v4041_v50 }
 0x3ea   :  { %4078 = vsyncpa [#allocation3], 1 }
 0x3eb   :  { %4079 = vsyncpa [#allocation5], 1 }

</bundles_post_ra>
